<compile_context>
chip_gen: v5e
topology: v5e:2x2
jax: 0.10.0
libtpu: 0.0.40
codegen_flags: <defaults>
</compile_context>

<pallas_src>
import functools

import numpy as np
import jax
import jax.numpy as jnp
from jax.experimental import pallas as pl
from jax.experimental.pallas import tpu as pltpu


def _round_up(x, m):
    return ((x + m - 1) // m) * m


# ---------------------------------------------------------------------------
# Pallas conv2d kernel (the hot path of h_conv)
# ---------------------------------------------------------------------------
def conv2d_pallas(x, w, stride=1, padding=0, *, compute_dtype=jnp.bfloat16,
                  oh_tile=None):
    """2-D cross-correlation (same semantics as F.conv2d, no bias).

    x: (N, H, W, Cin) float32      w: (KH, KW, Cin, Cout) float32
    returns (N, OH, OW, Cout) float32
    """
    N, H, Wd, Cin = x.shape
    KH, KW, Cin_w, Cout = w.shape
    assert Cin_w == Cin, (Cin_w, Cin)
    sh = sw = int(stride)
    out_dtype = jnp.float32

    # Filters are tiny: cast host-side.  Activations stay in their original
    # dtype in HBM and are cast inside the kernel (saves a full HBM pass).
    w = w.astype(compute_dtype)

    # TODO(synk): conv `padding` is materialized with jnp.pad (one extra HBM
    # pass over x); folding it into the in-kernel halo DMA + masking would
    # remove that pass, at the cost of edge-case logic.
    if padding:
        x = jnp.pad(x, ((0, 0), (padding, padding), (padding, padding), (0, 0)))
    Hp, Wp = x.shape[1], x.shape[2]
    OH = (Hp - KH) // sh + 1
    OW = (Wp - KW) // sw + 1
    assert OH > 0 and OW > 0

    K_dim = KH * KW * Cin
    # Lane-dense (128-padded) output stores only pay off once Cout >= 128;
    # below that the zero-pad would inflate f32 HBM writeback (e.g. 4x for
    # Cout=32), so keep the true Cout and accept masked stores.
    Cout_p = Cout if Cout < 128 else _round_up(Cout, 128)
    use_im2col = Cin < 128              # big-Cin path skips the im2col buffer

    x_item = jnp.dtype(x.dtype).itemsize
    cd_item = jnp.dtype(compute_dtype).itemsize
    out_item = jnp.dtype(out_dtype).itemsize

    def tile_vmem_bytes(oht):
        """Approx VMEM working set of one grid step (incl. (8,128) padding)."""
        st_h = (oht - 1) * sh + KH
        m = oht * OW
        strip = 2 * st_h * _round_up(Wp, 8) * _round_up(Cin, 128) * x_item
        filt = _round_up(K_dim, 8) * _round_up(Cout_p, 128) * cd_item
        outb = 2 * _round_up(m, 8) * _round_up(Cout_p, 128) * out_item
        patch = (_round_up(m, 8) * _round_up(K_dim, 128) * cd_item
                 if use_im2col else 0)
        acc = _round_up(m, 8) * _round_up(Cout_p, 128) * out_item
        return strip + filt + outb + patch + acc

    # Row-tile so that M = oh_tile*OW output pixels feed one big matmul.
    # Target M ~512 (fills the 256-wide MXU M dim on v6e/v7x, amortizes the
    # per-step pipeline overhead and the (KH-sh)-row halo re-read), but stay
    # inside a v7x-safe VMEM budget (64 MiB physical; target <= 40 MiB).
    VMEM_TILE_BUDGET = 40 << 20
    TARGET_M = 512
    if oh_tile is None:
        oh_tile = max(1, min(OH, pl.cdiv(TARGET_M, OW)))
        while oh_tile > 1 and tile_vmem_bytes(oh_tile) > VMEM_TILE_BUDGET:
            oh_tile = max(1, oh_tile // 2)
        # TODO(synk): if even oh_tile=1 exceeds the budget (very wide images),
        # an additional OW tiling axis would be needed.
    else:
        oh_tile = max(1, min(int(oh_tile), OH))

    T = pl.cdiv(OH, oh_tile)            # total number of row tiles
    # v7x has 2 TensorCores; when N==1 split the row tiles into an outer
    # "parallel" axis so both cores get work.  Each outer chunk runs its own
    # independent prefetch chain over the inner "arbitrary" axis.
    TO = min(2, T) if N == 1 else 1
    TI = pl.cdiv(T, TO)
    OH_pad = TO * TI * oh_tile
    strip_h = (oh_tile - 1) * sh + KH   # input rows per tile (incl. halo)
    Hp_need = (OH_pad - 1) * sh + KH
    if Hp_need > Hp:                    # bottom-pad so every strip is in-bounds
        x = jnp.pad(x, ((0, 0), (0, Hp_need - Hp), (0, 0), (0, 0)))
        Hp = Hp_need

    w2d = w.reshape(K_dim, Cout)
    if Cout_p != Cout:
        w2d = jnp.pad(w2d, ((0, 0), (0, Cout_p - Cout)))
    M = oh_tile * OW

    need = tile_vmem_bytes(oh_tile)
    vmem_limit = int(min(100 << 20, max(32 << 20, int(need * 1.25) + (4 << 20))))

    def rsl(start, size, step):         # static (optionally strided) ref slice
        return pl.ds(start, size) if step == 1 else pl.ds(start, size, step)

    def kernel(x_hbm, w_ref, o_ref, x_buf, *rest):
        if use_im2col:
            patch_ref, copy_sem = rest
        else:
            (copy_sem,) = rest

        n = pl.program_id(0)
        to = pl.program_id(1)
        ti = pl.program_id(2)
        nti = pl.num_programs(2)
        tile = to * nti + ti            # global row-tile index
        slot = ti & 1

        def strip_copy(tile_idx, slot_idx):
            row0 = tile_idx * (oh_tile * sh)
            return pltpu.make_async_copy(
                x_hbm.at[n, pl.ds(row0, strip_h)],
                x_buf.at[slot_idx],
                copy_sem.at[slot_idx])

        # First tile of this (image, outer-chunk) chain: nothing prefetched.
        # TODO(synk): this first strip stays an exposed DMA; prefetching it
        # from the previous chain would cross the "parallel" N / outer-tile
        # axes and race the semaphore under megacore sharding.
        @pl.when(ti == 0)
        def _():
            strip_copy(tile, slot).start()

        strip_copy(tile, slot).wait()

        # Prefetch the next strip of the same chain while computing this one.
        @pl.when(ti + 1 < nti)
        def _():
            strip_copy(tile + 1, 1 - slot).start()

        def tap(kh, kw):
            # (oh_tile, OW, Cin) activation slice feeding filter tap (kh, kw);
            # cast to the MXU dtype here (fused with the load, no HBM pass).
            piece = x_buf[slot, rsl(kh, oh_tile, sh), rsl(kw, OW, sw), :]
            return piece.reshape(M, Cin).astype(compute_dtype)

        if use_im2col:
            # Small Cin: build an im2col patch and run ONE big MXU matmul so
            # the contraction dim is KH*KW*Cin instead of a tiny Cin.
            # TODO(synk): the Cin-wide patch stores are lane-masked when
            # Cin < 128; packing (W, Cin) into a >=128-wide trailing dim would
            # make them dense but needs a minor-dim-splitting relayout.
            for kh in range(KH):
                for kw in range(KW):
                    c0 = (kh * KW + kw) * Cin
                    patch_ref[:, c0:c0 + Cin] = tap(kh, kw)
            acc = jnp.dot(patch_ref[...], w_ref[...],
                          preferred_element_type=jnp.float32)
        else:
            # Cin >= 128: every tap already fills the MXU contraction dim, so
            # skip the patch buffer and accumulate KH*KW matmuls in f32.
            acc = None
            for kh in range(KH):
                for kw in range(KW):
                    c0 = (kh * KW + kw) * Cin
                    part = jnp.dot(tap(kh, kw), w_ref[c0:c0 + Cin, :],
                                   preferred_element_type=jnp.float32)
                    acc = part if acc is None else acc + part

        o_ref[0, 0, 0] = acc.astype(o_ref.dtype)

    cost = pl.CostEstimate(
        flops=2 * N * OH * OW * K_dim * Cout,
        transcendentals=0,
        bytes_accessed=int(x.size * x_item + K_dim * Cout * cd_item
                           + N * OH * OW * Cout * out_item))

    scratch_shapes = [pltpu.VMEM((2, strip_h, Wp, Cin), x.dtype)]  # halo strips
    if use_im2col:
        scratch_shapes.append(pltpu.VMEM((M, K_dim), compute_dtype))  # im2col
    scratch_shapes.append(pltpu.SemaphoreType.DMA((2,)))

    out = pl.pallas_call(
        kernel,
        out_shape=jax.ShapeDtypeStruct((N, TO, TI, M, Cout_p), out_dtype),
        grid_spec=pltpu.PrefetchScalarGridSpec(
            num_scalar_prefetch=0,
            grid=(N, TO, TI),
            in_specs=[
                # x stays in HBM; halo strips are DMA'd manually in the kernel.
                pl.BlockSpec(memory_space=pl.ANY),
                # Filter is small and constant across the grid: keep ONE copy
                # resident in VMEM (no per-step double buffering).
                pl.BlockSpec(memory_space=pltpu.MemorySpace.VMEM),
            ],
            out_specs=pl.BlockSpec((1, 1, 1, M, Cout_p),
                                   lambda n, to, ti: (n, to, ti, 0, 0)),
            scratch_shapes=scratch_shapes),
        compiler_params=pltpu.CompilerParams(
            # N and the outer row-tile axis are independent (megacore
            # shardable on v7x).  The inner row-tile axis must stay
            # "arbitrary": the manual prefetch chain carries state across
            # consecutive tiles of one chunk.
            dimension_semantics=("parallel", "parallel", "arbitrary"),
            vmem_limit_bytes=vmem_limit),
        cost_estimate=cost,
    )(x, w2d)

    out = out.reshape(N, OH_pad, OW, Cout_p)
    return out[:, :OH, :, :Cout]


def conv2d_reference(x, w, stride=1, padding=0, *, compute_dtype=jnp.bfloat16):
    """Pure-JAX reference (same cross-correlation semantics as F.conv2d)."""
    x = x.astype(compute_dtype)
    w = w.astype(compute_dtype)
    return jax.lax.conv_general_dilated(
        x, w, window_strides=(stride, stride),
        padding=[(padding, padding), (padding, padding)],
        dimension_numbers=("NHWC", "HWIO", "NHWC"),
        preferred_element_type=jnp.float32)


# ---------------------------------------------------------------------------
# Harmonic filter synthesis (glue; mirrors hnet_lite helper functions)
# ---------------------------------------------------------------------------
def n_samples(filter_size):
    return int(np.maximum(np.ceil(np.pi * filter_size), 101))


def l2_grid(center, shape):
    lin = np.arange(shape) + 0.5
    J, I = np.meshgrid(lin, lin)
    I = I - center[1]
    J = J - center[0]
    return np.vstack((np.reshape(I, -1), np.reshape(J, -1)))


def get_interpolation_weights(filter_size, m, n_rings=None):
    if n_rings is None:
        n_rings = np.maximum(filter_size / 2, 2)
    n_rings = int(n_rings)
    radii = np.linspace(float(m != 0), n_rings - 0.5, n_rings)
    foveal_center = np.asarray([filter_size, filter_size]) / 2.0
    N = n_samples(filter_size)
    lin = (2 * np.pi * np.arange(N)) / N
    ring_locations = np.vstack([-np.sin(lin), np.cos(lin)])
    coords = l2_grid(foveal_center, filter_size)
    radii = radii[:, np.newaxis, np.newaxis, np.newaxis]
    ring_locations = ring_locations[np.newaxis, :, :, np.newaxis]
    diff = radii * ring_locations - coords[np.newaxis, :, np.newaxis, :]
    dist2 = np.sum(diff ** 2, axis=1)
    bandwidth = 0.5
    weights = np.exp(-0.5 * dist2 / (bandwidth ** 2))
    return weights / np.sum(weights, axis=2, keepdims=True)   # (n_rings, N, k*k)


def dft(N):
    i = np.arange(N)
    u, v = np.meshgrid(i, i)
    return np.exp(-2.0 * np.pi * 1j * u * v / N)


def get_filter_weights(Q, fs, P=None, n_rings=None):
    """Single-frequency DFT on each ring of a polar-resampled patch."""
    k = fs
    N = n_samples(k)
    filters = {}
    for m, r in Q.items():
        rsh = r.shape                                    # (n_rings, Cin, Cout)
        weights = get_interpolation_weights(k, m, n_rings=n_rings)
        DFT = dft(N)[m, :]
        LPF = np.dot(DFT, weights).T                     # (k*k, n_rings) complex
        cosine = jnp.asarray(np.real(LPF).astype(np.float32))
        sine = jnp.asarray(np.imag(LPF).astype(np.float32))
        r_flat = r.reshape(rsh[0], rsh[1] * rsh[2])
        ucos = jnp.matmul(cosine, r_flat).reshape(k, k, rsh[1], rsh[2])
        usin = jnp.matmul(sine, r_flat).reshape(k, k, rsh[1], rsh[2])
        if P is not None:
            ucos_ = jnp.cos(P[m]) * ucos + jnp.sin(P[m]) * usin
            usin = -jnp.sin(P[m]) * ucos + jnp.cos(P[m]) * usin
            ucos = ucos_
        filters[m] = (ucos, usin)
    return filters


def h_conv(X, W, strides=1, padding=0, max_order=1, conv_fn=conv2d_pallas):
    """X: [N, H, W, order, complex, channels] -> R: [N, H', W', max_order+1, 2, Cout]."""
    Xsh = X.shape
    X_ = X.reshape(Xsh[0], Xsh[1], Xsh[2], -1)           # flatten (order,complex,ch)
    Q_ = []
    for output_order in range(max_order + 1):
        Qr, Qi = [], []
        for input_order in range(Xsh[3]):
            weight_order = output_order - input_order
            Wr, Wi = W[weight_order]
            if Xsh[4] == 2:
                Qr += [Wr, -Wi]
                Qi += [Wi, Wr]
            else:
                Qr += [Wr]
                Qi += [Wi]
        Q_ += [jnp.concatenate(Qr, axis=2), jnp.concatenate(Qi, axis=2)]
    Q_ = jnp.concatenate(Q_, axis=3)                     # (k, k, Cin_tot, Cout_tot) HWIO
    R = conv_fn(X_, Q_.astype(jnp.float32), stride=strides, padding=padding)  # NHWC
    Rsh = R.shape
    ns = max_order + 1
    return R.reshape(Rsh[0], Rsh[1], Rsh[2], ns, 2, Rsh[3] // (2 * ns))


# ---------------------------------------------------------------------------
# JAX port of hnet_lite.Conv2d (deterministic in-script parameter init)
# ---------------------------------------------------------------------------
class HConv2dLite:
    def __init__(self, in_channels, out_channels, kernel_size, stride=1, padding=0,
                 phase=True, max_order=1, stddev=0.4, n_rings=None, *, key):
        self.in_channels = in_channels
        self.out_channels = out_channels
        self.kernel_size = kernel_size
        self.stride = stride
        self.padding = padding
        self.phase = phase
        self.max_order = max_order
        self.stddev = stddev
        self.n_rings = n_rings

        orders = list(range(-max_order, max_order + 1))
        keys = jax.random.split(key, 2 * len(orders))
        ring_count = int(n_rings) if n_rings is not None else int(np.maximum(kernel_size / 2, 2))
        self.Q = {}
        self.P = {} if phase else None
        for i, m in enumerate(orders):
            fs = (ring_count, in_channels, out_channels)
            w_std = stddev * np.sqrt(2.0 / float(np.prod(fs)))      # He init (get_weights)
            self.Q[m] = (w_std * jax.random.normal(keys[i], fs)).astype(jnp.float32)
            if phase:
                self.P[m] = (2.0 * np.pi * jax.random.uniform(
                    keys[len(orders) + i],
                    (1, 1, in_channels, out_channels))).astype(jnp.float32)
        # TODO(synk): PyTorch uses torch.normal / np.random.rand for init; replaced
        # with deterministic jax.random equivalents (same shapes/distributions).

    def forward(self, X, conv_fn=conv2d_pallas):
        W = get_filter_weights(self.Q, fs=self.kernel_size, P=self.P, n_rings=self.n_rings)
        return h_conv(X, W, strides=self.stride, padding=self.padding,
                      max_order=self.max_order, conv_fn=conv_fn)


# ---------------------------------------------------------------------------
if __name__ == "__main__":
    key = jax.random.PRNGKey(0)
    k_x, k_mod, k_xc, k_wc, k_xb, k_wb = jax.random.split(key, 6)

    in_channels, out_channels, kernel_size, max_order = 4, 8, 3, 1
    batch, H, W = 2, 16, 16

    module = HConv2dLite(in_channels, out_channels, kernel_size,
                         stride=1, padding=0, phase=True,
                         max_order=max_order, stddev=0.4, n_rings=None, key=k_mod)

    # Input feature tensor: [N, H, W, order, complex, channels] (h_conv convention)
    X = jax.random.normal(
        k_x, (batch, H, W, max_order + 1, 2, in_channels), dtype=jnp.float32)

    # --- Production path: bf16 MXU inputs, f32 accumulation -----------------
    out = jax.block_until_ready(module.forward(X, conv_fn=conv2d_pallas))
    ref = jax.block_until_ready(module.forward(X, conv_fn=conv2d_reference))
    expected_shape = (batch, H - kernel_size + 1, W - kernel_size + 1,
                      max_order + 1, 2, out_channels)
    assert out.shape == expected_shape, (out.shape, expected_shape)
    np.testing.assert_allclose(np.asarray(out), np.asarray(ref),
                               rtol=2e-2, atol=2e-2)

    # --- Strict f32 check of the same kernel path ---------------------------
    conv_f32 = functools.partial(conv2d_pallas, compute_dtype=jnp.float32)
    ref_f32 = functools.partial(conv2d_reference, compute_dtype=jnp.float32)
    out32 = jax.block_until_ready(module.forward(X, conv_fn=conv_f32))
    ref32 = jax.block_until_ready(module.forward(X, conv_fn=ref_f32))
    np.testing.assert_allclose(np.asarray(out32), np.asarray(ref32),
                               rtol=2e-3, atol=1e-3)

    # --- Direct conv check with spatial padding (exercises halo/pad paths) --
    xc = jax.random.normal(k_xc, (2, 16, 16, 16), dtype=jnp.float32)
    wc = 0.1 * jax.random.normal(k_wc, (3, 3, 16, 32), dtype=jnp.float32)
    yp = jax.block_until_ready(conv2d_pallas(xc, wc, stride=1, padding=1,
                                             compute_dtype=jnp.float32))
    yr = jax.block_until_ready(conv2d_reference(xc, wc, stride=1, padding=1,
                                                compute_dtype=jnp.float32))
    np.testing.assert_allclose(np.asarray(yp), np.asarray(yr),
                               rtol=2e-3, atol=1e-3)

    # --- Direct conv check for the Cin>=128 no-im2col path (N=1 -> TO split)
    xb = jax.random.normal(k_xb, (1, 10, 10, 128), dtype=jnp.float32)
    wb = 0.05 * jax.random.normal(k_wb, (3, 3, 128, 8), dtype=jnp.float32)
    yb = jax.block_until_ready(conv2d_pallas(xb, wb, stride=1, padding=0,
                                             compute_dtype=jnp.float32))
    yrb = jax.block_until_ready(conv2d_reference(xb, wb, stride=1, padding=0,
                                                 compute_dtype=jnp.float32))
    np.testing.assert_allclose(np.asarray(yb), np.asarray(yrb),
                               rtol=2e-3, atol=1e-3)

    print("KERNEL_OK")
</pallas_src>

<mosaic_0001>
module attributes {stable_mosaic.version = 11 : i64} {
  func.func @kernel(%arg0: i32, %arg1: i32, %arg2: i32, %arg3: memref<2x16x16x16xf32, #tpu.memory_space<any>>, %arg4: memref<144x32xbf16, #tpu.memory_space<vmem>>, %arg5: memref<1x1x1x196x32xf32, #tpu.memory_space<vmem>>, %arg6: memref<2x16x16x16xf32, #tpu.memory_space<vmem>>, %arg7: memref<196x144xbf16, #tpu.memory_space<vmem>>, %arg8: memref<2x!tpu.dma_semaphore, #tpu.memory_space<semaphore_mem>>) attributes {dimension_semantics = [#tpu.dimension_semantics<parallel>, #tpu.dimension_semantics<parallel>, #tpu.dimension_semantics<arbitrary>], iteration_bounds = array<i64: 2, 1, 1>, scalar_prefetch = 0 : i64, scratch_operands = 3 : i64, tpu.core_type = #tpu.core_type<tc>, window_params = [{}, {pipeline_mode = #tpu.pipeline_mode<synchronous>, transform_indices = @transform_1, window_bounds = array<i64: 144, 32>}, {transform_indices = @transform_2, window_bounds = array<i64: 1, 1, 1, 196, 32>}]} {
    %c1_i32 = arith.constant 1 : i32
    %0 = arith.muli %arg1, %c1_i32 : i32
    %1 = arith.addi %0, %arg2 : i32
    %c1_i32_0 = arith.constant 1 : i32
    %2 = arith.andi %arg2, %c1_i32_0 : i32
    %c0_i32 = arith.constant 0 : i32
    %3 = arith.cmpi eq, %arg2, %c0_i32 : i32
    %4 = arith.extui %3 : i1 to i32
    %c0_i32_1 = arith.constant 0 : i32
    %5 = arith.cmpi ne, %4, %c0_i32_1 : i32
    scf.if %5 {
      %c14_i32_53 = arith.constant 14 : i32
      %77 = arith.muli %1, %c14_i32_53 : i32
      %c0_i32_54 = arith.constant 0 : i32
      %c0_i32_55 = arith.constant 0 : i32
      %78 = tpu.memref_slice %arg3[%arg0, %77, %c0_i32_54, %c0_i32_55] : memref<2x16x16x16xf32, #tpu.memory_space<any>> -> memref<1x16x16x16xf32, #tpu.memory_space<any>>
      %79 = tpu.memref_squeeze %78 : memref<1x16x16x16xf32, #tpu.memory_space<any>> -> memref<16x16x16xf32, #tpu.memory_space<any>>
      %c0_i32_56 = arith.constant 0 : i32
      %c0_i32_57 = arith.constant 0 : i32
      %c0_i32_58 = arith.constant 0 : i32
      %80 = tpu.memref_slice %arg6[%2, %c0_i32_56, %c0_i32_57, %c0_i32_58] : memref<2x16x16x16xf32, #tpu.memory_space<vmem>> -> memref<1x16x16x16xf32, #tpu.memory_space<vmem>>
      %81 = tpu.memref_squeeze %80 : memref<1x16x16x16xf32, #tpu.memory_space<vmem>> -> memref<16x16x16xf32, #tpu.memory_space<vmem>>
      %82 = tpu.memref_slice %arg8[%2] : memref<2x!tpu.dma_semaphore, #tpu.memory_space<semaphore_mem>> -> memref<1x!tpu.dma_semaphore, #tpu.memory_space<semaphore_mem>>
      %83 = tpu.memref_squeeze %82 : memref<1x!tpu.dma_semaphore, #tpu.memory_space<semaphore_mem>> -> memref<!tpu.dma_semaphore, #tpu.memory_space<semaphore_mem>>
      tpu.enqueue_dma source(%79 : memref<16x16x16xf32, #tpu.memory_space<any>>) target(%81 : memref<16x16x16xf32, #tpu.memory_space<vmem>>) target_semaphore(%83 : memref<!tpu.dma_semaphore, #tpu.memory_space<semaphore_mem>>)
    } else {
    }
    %c14_i32 = arith.constant 14 : i32
    %6 = arith.muli %1, %c14_i32 : i32
    %c0_i32_2 = arith.constant 0 : i32
    %c0_i32_3 = arith.constant 0 : i32
    %7 = tpu.memref_slice %arg3[%arg0, %6, %c0_i32_2, %c0_i32_3] : memref<2x16x16x16xf32, #tpu.memory_space<any>> -> memref<1x16x16x16xf32, #tpu.memory_space<any>>
    %8 = tpu.memref_squeeze %7 : memref<1x16x16x16xf32, #tpu.memory_space<any>> -> memref<16x16x16xf32, #tpu.memory_space<any>>
    %c0_i32_4 = arith.constant 0 : i32
    %c0_i32_5 = arith.constant 0 : i32
    %c0_i32_6 = arith.constant 0 : i32
    %9 = tpu.memref_slice %arg6[%2, %c0_i32_4, %c0_i32_5, %c0_i32_6] : memref<2x16x16x16xf32, #tpu.memory_space<vmem>> -> memref<1x16x16x16xf32, #tpu.memory_space<vmem>>
    %10 = tpu.memref_squeeze %9 : memref<1x16x16x16xf32, #tpu.memory_space<vmem>> -> memref<16x16x16xf32, #tpu.memory_space<vmem>>
    %11 = tpu.memref_slice %arg8[%2] : memref<2x!tpu.dma_semaphore, #tpu.memory_space<semaphore_mem>> -> memref<1x!tpu.dma_semaphore, #tpu.memory_space<semaphore_mem>>
    %12 = tpu.memref_squeeze %11 : memref<1x!tpu.dma_semaphore, #tpu.memory_space<semaphore_mem>> -> memref<!tpu.dma_semaphore, #tpu.memory_space<semaphore_mem>>
    tpu.wait_dma2 semaphore(%12 : memref<!tpu.dma_semaphore, #tpu.memory_space<semaphore_mem>>) src(%8 : memref<16x16x16xf32, #tpu.memory_space<any>>) dst(%10 : memref<16x16x16xf32, #tpu.memory_space<vmem>>)
    %c1_i32_7 = arith.constant 1 : i32
    %13 = arith.addi %arg2, %c1_i32_7 : i32
    %c1_i32_8 = arith.constant 1 : i32
    %14 = arith.cmpi slt, %13, %c1_i32_8 : i32
    %15 = arith.extui %14 : i1 to i32
    %c0_i32_9 = arith.constant 0 : i32
    %16 = arith.cmpi ne, %15, %c0_i32_9 : i32
    scf.if %16 {
      %c1_i32_53 = arith.constant 1 : i32
      %77 = arith.addi %1, %c1_i32_53 : i32
      %c1_i32_54 = arith.constant 1 : i32
      %78 = arith.subi %c1_i32_54, %2 : i32
      %c14_i32_55 = arith.constant 14 : i32
      %79 = arith.muli %77, %c14_i32_55 : i32
      %c0_i32_56 = arith.constant 0 : i32
      %c0_i32_57 = arith.constant 0 : i32
      %80 = tpu.memref_slice %arg3[%arg0, %79, %c0_i32_56, %c0_i32_57] : memref<2x16x16x16xf32, #tpu.memory_space<any>> -> memref<1x16x16x16xf32, #tpu.memory_space<any>>
      %81 = tpu.memref_squeeze %80 : memref<1x16x16x16xf32, #tpu.memory_space<any>> -> memref<16x16x16xf32, #tpu.memory_space<any>>
      %c0_i32_58 = arith.constant 0 : i32
      %c0_i32_59 = arith.constant 0 : i32
      %c0_i32_60 = arith.constant 0 : i32
      %82 = tpu.memref_slice %arg6[%78, %c0_i32_58, %c0_i32_59, %c0_i32_60] : memref<2x16x16x16xf32, #tpu.memory_space<vmem>> -> memref<1x16x16x16xf32, #tpu.memory_space<vmem>>
      %83 = tpu.memref_squeeze %82 : memref<1x16x16x16xf32, #tpu.memory_space<vmem>> -> memref<16x16x16xf32, #tpu.memory_space<vmem>>
      %84 = tpu.memref_slice %arg8[%78] : memref<2x!tpu.dma_semaphore, #tpu.memory_space<semaphore_mem>> -> memref<1x!tpu.dma_semaphore, #tpu.memory_space<semaphore_mem>>
      %85 = tpu.memref_squeeze %84 : memref<1x!tpu.dma_semaphore, #tpu.memory_space<semaphore_mem>> -> memref<!tpu.dma_semaphore, #tpu.memory_space<semaphore_mem>>
      tpu.enqueue_dma source(%81 : memref<16x16x16xf32, #tpu.memory_space<any>>) target(%83 : memref<16x16x16xf32, #tpu.memory_space<vmem>>) target_semaphore(%85 : memref<!tpu.dma_semaphore, #tpu.memory_space<semaphore_mem>>)
    } else {
    }
    %17 = arith.index_cast %2 : i32 to index
    %c0 = arith.constant 0 : index
    %c0_10 = arith.constant 0 : index
    %c0_11 = arith.constant 0 : index
    %18 = vector.load %arg6[%17, %c0, %c0_10, %c0_11] : memref<2x16x16x16xf32, #tpu.memory_space<vmem>>, vector<1x14x14x16xf32>
    %19 = vector.shape_cast %18 : vector<1x14x14x16xf32> to vector<14x14x16xf32>
    %20 = vector.shape_cast %19 : vector<14x14x16xf32> to vector<196x16xf32>
    %21 = arith.truncf %20 : vector<196x16xf32> to vector<196x16xbf16>
    %c0_12 = arith.constant 0 : index
    %c0_13 = arith.constant 0 : index
    %22 = vector.load %arg7[%c0_12, %c0_13] : memref<196x144xbf16, #tpu.memory_space<vmem>>, vector<196x16xbf16>
    tpu.vector_store %arg7[%c0_12, %c0_13], %21 {strides = array<i32>} : memref<196x144xbf16, #tpu.memory_space<vmem>>, vector<196x16xbf16>,
    %23 = arith.index_cast %2 : i32 to index
    %c0_14 = arith.constant 0 : index
    %c1 = arith.constant 1 : index
    %c0_15 = arith.constant 0 : index
    %24 = vector.load %arg6[%23, %c0_14, %c1, %c0_15] : memref<2x16x16x16xf32, #tpu.memory_space<vmem>>, vector<1x14x14x16xf32>
    %25 = vector.shape_cast %24 : vector<1x14x14x16xf32> to vector<14x14x16xf32>
    %26 = vector.shape_cast %25 : vector<14x14x16xf32> to vector<196x16xf32>
    %27 = arith.truncf %26 : vector<196x16xf32> to vector<196x16xbf16>
    %c0_16 = arith.constant 0 : index
    %c16 = arith.constant 16 : index
    %28 = vector.load %arg7[%c0_16, %c16] : memref<196x144xbf16, #tpu.memory_space<vmem>>, vector<196x16xbf16>
    tpu.vector_store %arg7[%c0_16, %c16], %27 {strides = array<i32>} : memref<196x144xbf16, #tpu.memory_space<vmem>>, vector<196x16xbf16>,
    %29 = arith.index_cast %2 : i32 to index
    %c0_17 = arith.constant 0 : index
    %c2 = arith.constant 2 : index
    %c0_18 = arith.constant 0 : index
    %30 = vector.load %arg6[%29, %c0_17, %c2, %c0_18] : memref<2x16x16x16xf32, #tpu.memory_space<vmem>>, vector<1x14x14x16xf32>
    %31 = vector.shape_cast %30 : vector<1x14x14x16xf32> to vector<14x14x16xf32>
    %32 = vector.shape_cast %31 : vector<14x14x16xf32> to vector<196x16xf32>
    %33 = arith.truncf %32 : vector<196x16xf32> to vector<196x16xbf16>
    %c0_19 = arith.constant 0 : index
    %c32 = arith.constant 32 : index
    %34 = vector.load %arg7[%c0_19, %c32] : memref<196x144xbf16, #tpu.memory_space<vmem>>, vector<196x16xbf16>
    tpu.vector_store %arg7[%c0_19, %c32], %33 {strides = array<i32>} : memref<196x144xbf16, #tpu.memory_space<vmem>>, vector<196x16xbf16>,
    %35 = arith.index_cast %2 : i32 to index
    %c1_20 = arith.constant 1 : index
    %c0_21 = arith.constant 0 : index
    %c0_22 = arith.constant 0 : index
    %36 = vector.load %arg6[%35, %c1_20, %c0_21, %c0_22] : memref<2x16x16x16xf32, #tpu.memory_space<vmem>>, vector<1x14x14x16xf32>
    %37 = vector.shape_cast %36 : vector<1x14x14x16xf32> to vector<14x14x16xf32>
    %38 = vector.shape_cast %37 : vector<14x14x16xf32> to vector<196x16xf32>
    %39 = arith.truncf %38 : vector<196x16xf32> to vector<196x16xbf16>
    %c0_23 = arith.constant 0 : index
    %c48 = arith.constant 48 : index
    %40 = vector.load %arg7[%c0_23, %c48] : memref<196x144xbf16, #tpu.memory_space<vmem>>, vector<196x16xbf16>
    tpu.vector_store %arg7[%c0_23, %c48], %39 {strides = array<i32>} : memref<196x144xbf16, #tpu.memory_space<vmem>>, vector<196x16xbf16>,
    %41 = arith.index_cast %2 : i32 to index
    %c1_24 = arith.constant 1 : index
    %c1_25 = arith.constant 1 : index
    %c0_26 = arith.constant 0 : index
    %42 = vector.load %arg6[%41, %c1_24, %c1_25, %c0_26] : memref<2x16x16x16xf32, #tpu.memory_space<vmem>>, vector<1x14x14x16xf32>
    %43 = vector.shape_cast %42 : vector<1x14x14x16xf32> to vector<14x14x16xf32>
    %44 = vector.shape_cast %43 : vector<14x14x16xf32> to vector<196x16xf32>
    %45 = arith.truncf %44 : vector<196x16xf32> to vector<196x16xbf16>
    %c0_27 = arith.constant 0 : index
    %c64 = arith.constant 64 : index
    %46 = vector.load %arg7[%c0_27, %c64] : memref<196x144xbf16, #tpu.memory_space<vmem>>, vector<196x16xbf16>
    tpu.vector_store %arg7[%c0_27, %c64], %45 {strides = array<i32>} : memref<196x144xbf16, #tpu.memory_space<vmem>>, vector<196x16xbf16>,
    %47 = arith.index_cast %2 : i32 to index
    %c1_28 = arith.constant 1 : index
    %c2_29 = arith.constant 2 : index
    %c0_30 = arith.constant 0 : index
    %48 = vector.load %arg6[%47, %c1_28, %c2_29, %c0_30] : memref<2x16x16x16xf32, #tpu.memory_space<vmem>>, vector<1x14x14x16xf32>
    %49 = vector.shape_cast %48 : vector<1x14x14x16xf32> to vector<14x14x16xf32>
    %50 = vector.shape_cast %49 : vector<14x14x16xf32> to vector<196x16xf32>
    %51 = arith.truncf %50 : vector<196x16xf32> to vector<196x16xbf16>
    %c0_31 = arith.constant 0 : index
    %c80 = arith.constant 80 : index
    %52 = vector.load %arg7[%c0_31, %c80] : memref<196x144xbf16, #tpu.memory_space<vmem>>, vector<196x16xbf16>
    tpu.vector_store %arg7[%c0_31, %c80], %51 {strides = array<i32>} : memref<196x144xbf16, #tpu.memory_space<vmem>>, vector<196x16xbf16>,
    %53 = arith.index_cast %2 : i32 to index
    %c2_32 = arith.constant 2 : index
    %c0_33 = arith.constant 0 : index
    %c0_34 = arith.constant 0 : index
    %54 = vector.load %arg6[%53, %c2_32, %c0_33, %c0_34] : memref<2x16x16x16xf32, #tpu.memory_space<vmem>>, vector<1x14x14x16xf32>
    %55 = vector.shape_cast %54 : vector<1x14x14x16xf32> to vector<14x14x16xf32>
    %56 = vector.shape_cast %55 : vector<14x14x16xf32> to vector<196x16xf32>
    %57 = arith.truncf %56 : vector<196x16xf32> to vector<196x16xbf16>
    %c0_35 = arith.constant 0 : index
    %c96 = arith.constant 96 : index
    %58 = vector.load %arg7[%c0_35, %c96] : memref<196x144xbf16, #tpu.memory_space<vmem>>, vector<196x16xbf16>
    tpu.vector_store %arg7[%c0_35, %c96], %57 {strides = array<i32>} : memref<196x144xbf16, #tpu.memory_space<vmem>>, vector<196x16xbf16>,
    %59 = arith.index_cast %2 : i32 to index
    %c2_36 = arith.constant 2 : index
    %c1_37 = arith.constant 1 : index
    %c0_38 = arith.constant 0 : index
    %60 = vector.load %arg6[%59, %c2_36, %c1_37, %c0_38] : memref<2x16x16x16xf32, #tpu.memory_space<vmem>>, vector<1x14x14x16xf32>
    %61 = vector.shape_cast %60 : vector<1x14x14x16xf32> to vector<14x14x16xf32>
    %62 = vector.shape_cast %61 : vector<14x14x16xf32> to vector<196x16xf32>
    %63 = arith.truncf %62 : vector<196x16xf32> to vector<196x16xbf16>
    %c0_39 = arith.constant 0 : index
    %c112 = arith.constant 112 : index
    %64 = vector.load %arg7[%c0_39, %c112] : memref<196x144xbf16, #tpu.memory_space<vmem>>, vector<196x16xbf16>
    tpu.vector_store %arg7[%c0_39, %c112], %63 {strides = array<i32>} : memref<196x144xbf16, #tpu.memory_space<vmem>>, vector<196x16xbf16>,
    %65 = arith.index_cast %2 : i32 to index
    %c2_40 = arith.constant 2 : index
    %c2_41 = arith.constant 2 : index
    %c0_42 = arith.constant 0 : index
    %66 = vector.load %arg6[%65, %c2_40, %c2_41, %c0_42] : memref<2x16x16x16xf32, #tpu.memory_space<vmem>>, vector<1x14x14x16xf32>
    %67 = vector.shape_cast %66 : vector<1x14x14x16xf32> to vector<14x14x16xf32>
    %68 = vector.shape_cast %67 : vector<14x14x16xf32> to vector<196x16xf32>
    %69 = arith.truncf %68 : vector<196x16xf32> to vector<196x16xbf16>
    %c0_43 = arith.constant 0 : index
    %c128 = arith.constant 128 : index
    %70 = vector.load %arg7[%c0_43, %c128] : memref<196x144xbf16, #tpu.memory_space<vmem>>, vector<196x16xbf16>
    tpu.vector_store %arg7[%c0_43, %c128], %69 {strides = array<i32>} : memref<196x144xbf16, #tpu.memory_space<vmem>>, vector<196x16xbf16>,
    %c0_44 = arith.constant 0 : index
    %c0_45 = arith.constant 0 : index
    %71 = vector.load %arg7[%c0_44, %c0_45] : memref<196x144xbf16, #tpu.memory_space<vmem>>, vector<196x144xbf16>
    %c0_46 = arith.constant 0 : index
    %c0_47 = arith.constant 0 : index
    %72 = vector.load %arg4[%c0_46, %c0_47] : memref<144x32xbf16, #tpu.memory_space<vmem>>, vector<144x32xbf16>
    %cst = arith.constant dense<0.000000e+00> : vector<196x32xf32>
    %73 = tpu.matmul %71, %72, %cst {dimension_numbers = #tpu.dot_dimension_numbers<[1], [0], [0], [1], [0, 0, 1, 1], [], []>} : vector<196x144xbf16>, vector<144x32xbf16>, vector<196x32xf32> -> vector<196x32xf32>
    %c0_48 = arith.constant 0 : index
    %c0_49 = arith.constant 0 : index
    %c0_50 = arith.constant 0 : index
    %c0_51 = arith.constant 0 : index
    %c0_52 = arith.constant 0 : index
    %74 = vector.load %arg5[%c0_48, %c0_49, %c0_50, %c0_51, %c0_52] : memref<1x1x1x196x32xf32, #tpu.memory_space<vmem>>, vector<1x1x1x196x32xf32>
    %75 = vector.shape_cast %74 : vector<1x1x1x196x32xf32> to vector<196x32xf32>
    %76 = vector.shape_cast %73 : vector<196x32xf32> to vector<1x1x1x196x32xf32>
    tpu.vector_store %arg5[%c0_48, %c0_49, %c0_50, %c0_51, %c0_52], %76 {strides = array<i32>} : memref<1x1x1x196x32xf32, #tpu.memory_space<vmem>>, vector<1x1x1x196x32xf32>,
    return
  }
  func.func @transform_1(%arg0: i32, %arg1: i32, %arg2: i32) -> (i32, i32) {
    %c0_i32 = arith.constant 0 : i32
    %c0_i32_0 = arith.constant 0 : i32
    %c0_i32_1 = arith.constant 0 : i32
    return %c0_i32, %c0_i32_0 : i32, i32
  }
  func.func @transform_2(%arg0: i32, %arg1: i32, %arg2: i32) -> (i32, i32, i32, i32, i32) {
    %c0_i32 = arith.constant 0 : i32
    %c0_i32_0 = arith.constant 0 : i32
    %c0_i32_1 = arith.constant 0 : i32
    return %arg0, %arg1, %arg2, %c0_i32, %c0_i32_0 : i32, i32, i32, i32, i32
  }
}

</mosaic_0001>

<bundles_post_ra>
// kernel: tpu_custom_call.1
= control target key start
LH: loop header
LB: loop body
LE: loop exit
PB: predicated region body
PF: predicated region fallthrough
CT: control target
= control target key end

     0   :  { %s4924_s9 = smov 0   ;;  %s4926_s10 = smov 0   ;;  %s7010_s0 = inlined_call_operand.hbm [shape: f32[2,16,16,16], index: 0, kind: input, shape index: {}]   ;;  %s7011_s1 = inlined_call_operand.vmem [shape: bf16[144,32], index: 1, kind: input, shape index: {}]   ;;  %s7012_s2 = inlined_call_operand.vmem [shape: f32[2,1,1,196,32], index: 2, kind: output, shape index: {}]  }
   0x1   :  { %s4928_s11 = smov 0  }
   0x2 LB: > { %s31_s12 = sadd.s32 1, %s4895_s10  ;;  %p4455_p0 = scmp.ge.s32.totalorder %s4899_s11, 1  ;;  %s4899_s11 = sphi %s4928_s11, %s12_s11   ;;  %s4895_s10 = sphi %s4926_s10, %s7316_s10   ;;  %s4891_s9 = sphi %s4924_s9, %s7315_s9  }
   0x3   : > { %p33_p1 = scmp.ge.s32.totalorder %s31_s12, 2  ;;  %p101_p2 = scmp.lt.s32.totalorder %s4899_s11, 3 }
   0x5   : > { %s7318_s12 = smov (%p33_p1, %s31_s12), 0  ;;  %p102_p3 = pnand %p4455_p0, %p101_p2 }
   0x7   : > { %105 = sbr.rel (%p102_p3) target bundleno = 1709 (0x6ad), region = 24 }
   0xc   : > { %p124_p4 = scmp.lt.s32.totalorder %s4891_s9, 1  ;;  %s4457_s13 = sshll.u32 %s4891_s9, 8 }
   0xd   : > { %s148_s16 = scalar_lea.hbm %s7010_s0, %s4457_s13  ;;  %s4901_s18 = smov [#allocation2]  }
   0xe   : > { %s7320_s9 = smov (!%p124_p4, %s4891_s9), 1  ;;  %s159_s17 = sshll.u32 %s148_s16, 4  ;;  %s160_s17 = int_to_ptr.hbm [resolvable:$true] %s159_s17 }
   0xf   : > { %s161_s19 = sshll.u32 %s4901_s18, 4  ;;  %s4818_s20 = smul.u32 200, %s7320_s9  ;;  %s162_s19 = int_to_ptr.vmem [resolvable:$true] %s161_s19 }
  0x10   : > { %s4851_s24 = sshra.s32 %s160_s17, 4  ;;  %s4855_s28 = scalar_lea.hbm %s7010_s0, 512  ;;  %s4852_s24 = int_to_ptr.hbm [resolvable:$true] %s4851_s24 }
  0x11   : > { %s4948_s23 = scalar_lea.vmem %s7012_s2, %s4818_s20  ;;  %s4853_s25 = scalar_lea.hbm %s4852_s24, 256 }
  0x12   : > { %p4854_p5 = scmp.ne.s32.totalorder %s4852_s24, %s4853_s25  ;;  %p4856_p6 = scmp.lt.s32.totalorder %s4852_s24, %s7010_s0 }
  0x13   : > { %p4857_p7 = scmp.lt.s32.totalorder %s4855_s28, %s4853_s25 }
  0x15   : > { %p4858_p8 = por %p4857_p7, %p4856_p6 }
  0x17   : > { %p4859_p9 = pnand %p4858_p8, %p4854_p5 }
  0x19   : > { %4862 = shalt.err (!%p4859_p9)  }
  0x1a   : > { %164 = dma.hbm_to_vmem [thread:$0]  %s160_s17, 4096, %s162_s19, [#allocation4] }
  0x1b   : > { %4887 = dma.done.wait [#allocation4], 4096 }
  0x1c   : > { %4888 = vsyncadd [#allocation4], 4294963200  ;;  %v201_v0 = vld [vmem:[#allocation2 + $0x8] sm:$0x3f]  ;;  %v202_v3 = vld [vmem:[#allocation2 + $0x10] sm:$0xff]  ;;  %s4902_s3 = smov 16  }
  0x1d   : > { %v259_v1 = vrot.slane %v201_v0, 2  ;;  %v260_v2 = vrot.slane %v201_v0, 4  ;;  %334 = vst [vmem:[#allocation1 + $0x20] ss:$4 sm:$0xff] %v201_v0  ;;  %v200_v4 = vld [vmem:[#allocation2] sm:$0xff]  ;;  %v206_v15 = vld [vmem:[#allocation2 + $0x30] sm:$0xff] }
  0x1e   : > { %340 = vst [vmem:[#allocation1 + $0x23] ss:$4 sm:$0xff] %v202_v3  ;;  %v203_v5 = vld [vmem:[#allocation2 + $0x18] sm:$0x3f]  ;;  %v204_v6 = vld [vmem:[#allocation2 + $0x20] sm:$0xff]  ;;  %v256_v11 = vrot.slane %v200_v4, 2 }
  0x1f   : > { %336 = vst [vmem:[#allocation1 + $0x21] ss:$4 sm:$0xff] %v259_v1  ;;  %v264_v7 = vrot.slane %v203_v5, 2  ;;  %v265_v8 = vrot.slane %v203_v5, 4  ;;  %v266_v9 = vrot.slane %v204_v6, 2  ;;  %v257_v12 = vrot.slane %v200_v4, 4 }
  0x20   : > { %338 = vst [vmem:[#allocation1 + $0x22] ss:$4 sm:$0xff] %v260_v2  ;;  %v258_v13 = vrot.slane %v200_v4, 6  ;;  %v205_v14 = vld [vmem:[#allocation2 + $0x28] sm:$0x3f]  ;;  %v271_v17 = vrot.slane %v206_v15, 2 }
  0x21   : > { %326 = vst [vmem:[#allocation1] ss:$4 sm:$0xff] %v200_v4  ;;  %v270_v16 = vrot.slane %v205_v14, 4  ;;  %v272_v18 = vrot.slane %v206_v15, 4  ;;  %v261_v20 = vrot.slane %v202_v3, 2  ;;  %v262_v21 = vrot.slane %v202_v3, 4 }
  0x22   : > { %328 = vst [vmem:[#allocation1 + $0x1] ss:$4 sm:$0xff] %v256_v11  ;;  %v263_v22 = vrot.slane %v202_v3, 6  ;;  %v208_v24 = vld [vmem:[#allocation2 + $0x40] sm:$0xff]  ;;  %v267_v29 = vrot.slane %v204_v6, 4  ;;  %v268_v30 = vrot.slane %v204_v6, 6 }
  0x23   : > { %330 = vst [vmem:[#allocation1 + $0x2] ss:$4 sm:$0xff] %v257_v12  ;;  %v276_v25 = vrot.slane %v208_v24, 2  ;;  %v277_v26 = vrot.slane %v208_v24, 4  ;;  %v278_v27 = vrot.slane %v208_v24, 6  ;;  %v269_v31 = vrot.slane %v205_v14, 2 }
  0x24   : > { %332 = vst [vmem:[#allocation1 + $0x3] ss:$4 sm:$0xff] %v258_v13  ;;  %v210_v33 = vld [vmem:[#allocation2 + $0x50] sm:$0xff]  ;;  %v207_v37 = vld [vmem:[#allocation2 + $0x38] sm:$0x3f]  ;;  %v273_v39 = vrot.slane %v206_v15, 6 }
  0x25   : > { %v281_v34 = vrot.slane %v210_v33, 2  ;;  %v282_v35 = vrot.slane %v210_v33, 4  ;;  %v283_v36 = vrot.slane %v210_v33, 6  ;;  %v211_v40 = vld [vmem:[#allocation2 + $0x58] sm:$0x3f]  ;;  %v274_v41 = vrot.slane %v207_v37, 2 }
  0x26   : > { %v275_v42 = vrot.slane %v207_v37, 4  ;;  %v212_v44 = vld [vmem:[#allocation2 + $0x60] sm:$0xff]  ;;  %v213_v45 = vld [vmem:[#allocation2 + $0x68] sm:$0x3f]  ;;  %v214_v54 = vld [vmem:[#allocation2 + $0x70] sm:$0xff]  ;;  %v284_v60 = vrot.slane %v211_v40, 2 }
  0x27   : > { %v4956_v10 = vld.sshfl [vmem:[#allocation1 + $0x20] sm:$0xff pattern:$0x73625140]  ;;  %v287_v46 = vrot.slane %v212_v44, 4  ;;  %v288_v47 = vrot.slane %v212_v44, 6  ;;  %v289_v49 = vrot.slane %v213_v45, 2 }
  0x28   : > { %347 = vst [vmem:[#allocation1 + $0x20] ss:$4 sm:$0xff] %v264_v7  ;;  %v209_v48 = vld [vmem:[#allocation2 + $0x48] sm:$0x3f]  ;;  %v215_v55 = vld [vmem:[#allocation2 + $0x78] sm:$0x3f] }
  0x29   : > { %348 = vst [vmem:[#allocation1 + $0x21] ss:$4 sm:$0xff] %v265_v8  ;;  %v279_v51 = vrot.slane %v209_v48, 2  ;;  %v280_v52 = vrot.slane %v209_v48, 4  ;;  %v293_v56 = vrot.slane %v214_v54, 6  ;;  %v294_v57 = vrot.slane %v215_v55, 2 }
  0x2a   : > { %349 = vst [vmem:[#allocation1 + $0x22] ss:$4 sm:$0xff] %v204_v6  ;;  %v295_v58 = vrot.slane %v215_v55, 4  ;;  %v285_v61 = vrot.slane %v211_v40, 4  ;;  %v286_v62 = vrot.slane %v212_v44, 2  ;;  %v290_v4 = vrot.slane %v213_v45, 4 }
  0x2b   : > { %350 = vst [vmem:[#allocation1 + $0x23] ss:$4 sm:$0xff] %v266_v9  ;;  %v4960_v23 = vld.sshfl [vmem:[#allocation1] sm:$0xff pattern:$0x73625140]  ;;  %v291_v6 = vrot.slane %v214_v54, 2 }
  0x2c   : > { %343 = vst [vmem:[#allocation1] ss:$4 sm:$0xff] %v261_v20  ;;  %v217_v0 = vld [vmem:[#allocation2 + $0x88] sm:$0x3f]  ;;  %v292_v7 = vrot.slane %v214_v54, 4  ;;  %v220_v11 = vld [vmem:[#allocation2 + $0xa0] sm:$0xff] }
  0x2d   : > { %344 = vst [vmem:[#allocation1 + $0x1] ss:$4 sm:$0xff] %v262_v21  ;;  %v299_v1 = vrot.slane %v217_v0, 2  ;;  %v300_v2 = vrot.slane %v217_v0, 4  ;;  %v219_v9 = vld [vmem:[#allocation2 + $0x98] sm:$0x3f] }
  0x2e   : > { %345 = vst [vmem:[#allocation1 + $0x2] ss:$4 sm:$0xff] %v263_v22  ;;  %v304_v12 = vrot.slane %v219_v9, 2  ;;  %v305_v13 = vrot.slane %v219_v9, 4  ;;  %v221_v22 = vld [vmem:[#allocation2 + $0xa8] sm:$0x3f] }
  0x2f   : > { %346 = vst [vmem:[#allocation1 + $0x3] ss:$4 sm:$0xff] %v203_v5  ;;  %v218_v5 = vld [vmem:[#allocation2 + $0x90] sm:$0xff]  ;;  %s4903_s4 = smov 32   ;;  %vm506_vm0 = vcmask 125952   ;;  %vm939_vm1 = vcmask 257152  }
  0x30   : > { %s4904_s5 = smov 48   ;;  %vm1372_vm2 = vcmask 388352   ;;  %s4905_s6 = smov 64   ;;  %vm531_vm3 = vcmask 123904   ;;  %vm964_vm4 = vcmask 255104   ;;  %vm1397_vm5 = vcmask 386304  }
  0x31   : > { %s4906_s7 = smov 80   ;;  %vm1807_vm6 = vcmask 519552   ;;  %s4907_s8 = smov 96   ;;  %vm2240_vm7 = vcmask 650752   ;;  %vm1832_vm8 = vcmask 517504   ;;  %vm2673_vm9 = vcmask 781952  }
  0x32   : > { %v4958_v19 = vld.sshfl [vmem:[#allocation1 + $0x20] sm:$0xff pattern:$0x73625140]  ;;  %s4908_s9 = smov 112   ;;  %vm3108_vm10 = vcmask 913152   ;;  %vm3541_vm11 = vcmask 1044352  }
  0x33   : > { %357 = vst [vmem:[#allocation1 + $0x20] ss:$4 sm:$0xff] %v270_v16  ;;  %vm4110_vm12 = vcmask 130048   ;;  %vm4296_vm13 = vcmask 261120   ;;  %vm2265_vm14 = vcmask 648704   ;;  %vm2698_vm15 = vcmask 779904  }
  0x34   : > { %358 = vst [vmem:[#allocation1 + $0x21] ss:$4 sm:$0xff] %v206_v15  ;;  %v306_v15 = vrot.slane %v220_v11, 2 }
  0x35   : > { %359 = vst [vmem:[#allocation1 + $0x22] ss:$4 sm:$0xff] %v271_v17 }
  0x36   : > { %360 = vst [vmem:[#allocation1 + $0x23] ss:$4 sm:$0xff] %v272_v18  ;;  %v4964_v32 = vld.sshfl [vmem:[#allocation1] sm:$0xff pattern:$0x73625140] }
  0x37   : > { %353 = vst [vmem:[#allocation1] ss:$4 sm:$0xff] %v267_v29 }
  0x38   : > { %354 = vst [vmem:[#allocation1 + $0x1] ss:$4 sm:$0xff] %v268_v30  ;;  %v301_v30 = vrot.slane %v218_v5, 2 }
  0x39   : > { %355 = vst [vmem:[#allocation1 + $0x2] ss:$4 sm:$0xff] %v205_v14  ;;  %v216_v14 = vld [vmem:[#allocation2 + $0x80] sm:$0xff] }
  0x3a   : > { %356 = vst [vmem:[#allocation1 + $0x3] ss:$4 sm:$0xff] %v269_v31  ;;  %v296_v17 = vrot.slane %v216_v14, 2  ;;  %v297_v18 = vrot.slane %v216_v14, 4  ;;  %v298_v20 = vrot.slane %v216_v14, 6  ;;  %v302_v31 = vrot.slane %v218_v5, 4 }
  0x3d   : > { %v4962_v28 = vld.sshfl [vmem:[#allocation1 + $0x20] sm:$0xff pattern:$0x73625140] }
  0x3e   : > { %367 = vst [vmem:[#allocation1 + $0x20] ss:$4 sm:$0xff] %v208_v24  ;;  %v222_v24 = vld [vmem:[#allocation2 + $0xb0] sm:$0xff] }
  0x3f   : > { %368 = vst [vmem:[#allocation1 + $0x21] ss:$4 sm:$0xff] %v276_v25  ;;  %v310_v25 = vrot.slane %v221_v22, 4 }
  0x40   : > { %369 = vst [vmem:[#allocation1 + $0x22] ss:$4 sm:$0xff] %v277_v26  ;;  %v311_v26 = vrot.slane %v222_v24, 2 }
  0x41   : > { %370 = vst [vmem:[#allocation1 + $0x23] ss:$4 sm:$0xff] %v278_v27  ;;  %v4968_v43 = vld.sshfl [vmem:[#allocation1] sm:$0xff pattern:$0x73625140]  ;;  %v312_v27 = vrot.slane %v222_v24, 4 }
  0x42   : > { %363 = vst [vmem:[#allocation1] ss:$4 sm:$0xff] %v273_v39 }
  0x43   : > { %364 = vst [vmem:[#allocation1 + $0x1] ss:$4 sm:$0xff] %v207_v37 }
  0x44   : > { %365 = vst [vmem:[#allocation1 + $0x2] ss:$4 sm:$0xff] %v274_v41  ;;  %v307_v41 = vrot.slane %v220_v11, 4 }
  0x45   : > { %366 = vst [vmem:[#allocation1 + $0x3] ss:$4 sm:$0xff] %v275_v42  ;;  %v308_v42 = vrot.slane %v220_v11, 6 }
  0x48   : > { %v4966_v38 = vld.sshfl [vmem:[#allocation1 + $0x20] sm:$0xff pattern:$0x73625140] }
  0x49   : > { %377 = vst [vmem:[#allocation1 + $0x20] ss:$4 sm:$0xff] %v281_v34 }
  0x4a   : > { %378 = vst [vmem:[#allocation1 + $0x21] ss:$4 sm:$0xff] %v282_v35  ;;  %v224_v35 = vld [vmem:[#allocation2 + $0xc0] sm:$0xff] }
  0x4b   : > { %379 = vst [vmem:[#allocation1 + $0x22] ss:$4 sm:$0xff] %v283_v36  ;;  %v316_v36 = vrot.slane %v224_v35, 2  ;;  %v317_v37 = vrot.slane %v224_v35, 4  ;;  %v318_v39 = vrot.slane %v224_v35, 6 }
  0x4c   : > { %380 = vst [vmem:[#allocation1 + $0x23] ss:$4 sm:$0xff] %v211_v40  ;;  %v4972_v53 = vld.sshfl [vmem:[#allocation1] sm:$0xff pattern:$0x73625140] }
  0x4d   : > { %373 = vst [vmem:[#allocation1] ss:$4 sm:$0xff] %v209_v48 }
  0x4e   : > { %374 = vst [vmem:[#allocation1 + $0x1] ss:$4 sm:$0xff] %v279_v51  ;;  %v223_v51 = vld [vmem:[#allocation2 + $0xb8] sm:$0x3f] }
  0x4f   : > { %375 = vst [vmem:[#allocation1 + $0x2] ss:$4 sm:$0xff] %v280_v52 }
  0x50   : > { %376 = vst [vmem:[#allocation1 + $0x3] ss:$4 sm:$0xff] %v210_v33  ;;  %v303_v33 = vrot.slane %v218_v5, 6 }
  0x53   : > { %v4970_v50 = vld.sshfl [vmem:[#allocation1 + $0x20] sm:$0xff pattern:$0x73625140] }
  0x54   : > { %387 = vst [vmem:[#allocation1 + $0x20] ss:$4 sm:$0xff] %v287_v46  ;;  %v226_v46 = vld [vmem:[#allocation2 + $0xd0] sm:$0xff] }
  0x55   : > { %388 = vst [vmem:[#allocation1 + $0x21] ss:$4 sm:$0xff] %v288_v47  ;;  %v321_v47 = vrot.slane %v226_v46, 2  ;;  %v322_v48 = vrot.slane %v226_v46, 4 }
  0x56   : > { %389 = vst [vmem:[#allocation1 + $0x22] ss:$4 sm:$0xff] %v213_v45 }
  0x57   : > { %390 = vst [vmem:[#allocation1 + $0x23] ss:$4 sm:$0xff] %v289_v49  ;;  %v4976_v63 = vld.sshfl [vmem:[#allocation1] sm:$0xff pattern:$0x73625140]  ;;  %v323_v49 = vrot.slane %v226_v46, 6 }
  0x58   : > { %383 = vst [vmem:[#allocation1] ss:$4 sm:$0xff] %v284_v60  ;;  %v534_v60 = vld [vmem:[#allocation2 + $0x9] sm:$0x3f] }
  0x59   : > { %384 = vst [vmem:[#allocation1 + $0x1] ss:$4 sm:$0xff] %v285_v61  ;;  %v592_v61 = vrot.slane %v534_v60, 2 }
  0x5a   : > { %385 = vst [vmem:[#allocation1 + $0x2] ss:$4 sm:$0xff] %v212_v44  ;;  %v309_v44 = vrot.slane %v221_v22, 2 }
  0x5b   : > { %386 = vst [vmem:[#allocation1 + $0x3] ss:$4 sm:$0xff] %v286_v62  ;;  %v225_v62 = vld [vmem:[#allocation2 + $0xc8] sm:$0x3f] }
  0x5e   : > { %v4974_v59 = vld.sshfl [vmem:[#allocation1 + $0x20] sm:$0xff pattern:$0x73625140] }
  0x5f   : > { %397 = vst [vmem:[#allocation1 + $0x20] ss:$4 sm:$0xff] %v293_v56  ;;  %v314_v56 = vrot.slane %v223_v51, 2 }
  0x60   : > { %398 = vst [vmem:[#allocation1 + $0x21] ss:$4 sm:$0xff] %v215_v55  ;;  %v227_v55 = vld [vmem:[#allocation2 + $0xd8] sm:$0x3f] }
  0x61   : > { %399 = vst [vmem:[#allocation1 + $0x22] ss:$4 sm:$0xff] %v294_v57  ;;  %v315_v57 = vrot.slane %v223_v51, 4 }
  0x62   : > { %400 = vst [vmem:[#allocation1 + $0x23] ss:$4 sm:$0xff] %v295_v58  ;;  %v4980_v8 = vld.sshfl [vmem:[#allocation1] sm:$0xff pattern:$0x73625140] }
  0x63   : > { %393 = vst [vmem:[#allocation1] ss:$4 sm:$0xff] %v290_v4  ;;  %v319_v4 = vrot.slane %v225_v62, 2 }
  0x64   : > { %394 = vst [vmem:[#allocation1 + $0x1] ss:$4 sm:$0xff] %v214_v54  ;;  %v313_v54 = vrot.slane %v222_v24, 6 }
  0x65   : > { %395 = vst [vmem:[#allocation1 + $0x2] ss:$4 sm:$0xff] %v291_v6 }
  0x66   : > { %396 = vst [vmem:[#allocation1 + $0x3] ss:$4 sm:$0xff] %v292_v7  ;;  %v536_v7 = vld [vmem:[#allocation2 + $0x19] sm:$0x3f] }
  0x69   : > { %v4978_v3 = vld.sshfl [vmem:[#allocation1 + $0x20] sm:$0xff pattern:$0x73625140] }
  0x6a   : > { %407 = vst [vmem:[#allocation1 + $0x20] ss:$4 sm:$0xff] %v217_v0  ;;  %v593_v0 = vrot.slane %v534_v60, 4 }
  0x6b   : > { %408 = vst [vmem:[#allocation1 + $0x21] ss:$4 sm:$0xff] %v299_v1 }
  0x6c   : > { %409 = vst [vmem:[#allocation1 + $0x22] ss:$4 sm:$0xff] %v300_v2  ;;  %v535_v2 = vld [vmem:[#allocation2 + $0x11] sm:$0xff] }
  0x6d   : > { %410 = vst [vmem:[#allocation1 + $0x23] ss:$4 sm:$0xff] %v218_v5  ;;  %v4984_v21 = vld.sshfl [vmem:[#allocation1] sm:$0xff pattern:$0x73625140]  ;;  %v320_v5 = vrot.slane %v225_v62, 4 }
  0x6e   : > { %403 = vst [vmem:[#allocation1] ss:$4 sm:$0xff] %v216_v14 }
  0x6f   : > { %404 = vst [vmem:[#allocation1 + $0x1] ss:$4 sm:$0xff] %v296_v17  ;;  %v325_v17 = vrot.slane %v227_v55, 4 }
  0x70   : > { %405 = vst [vmem:[#allocation1 + $0x2] ss:$4 sm:$0xff] %v297_v18 }
  0x71   : > { %406 = vst [vmem:[#allocation1 + $0x3] ss:$4 sm:$0xff] %v298_v20 }
  0x74   : > { %v4982_v16 = vld.sshfl [vmem:[#allocation1 + $0x20] sm:$0xff pattern:$0x73625140] }
  0x75   : > { %417 = vst [vmem:[#allocation1 + $0x20] ss:$4 sm:$0xff] %v304_v12  ;;  %v598_v12 = vrot.slane %v536_v7, 4 }
  0x76   : > { %418 = vst [vmem:[#allocation1 + $0x21] ss:$4 sm:$0xff] %v305_v13 }
  0x77   : > { %419 = vst [vmem:[#allocation1 + $0x22] ss:$4 sm:$0xff] %v220_v11  ;;  %v597_v11 = vrot.slane %v536_v7, 2 }
  0x78   : > { %420 = vst [vmem:[#allocation1 + $0x23] ss:$4 sm:$0xff] %v306_v15  ;;  %v4988_v34 = vld.sshfl [vmem:[#allocation1] sm:$0xff pattern:$0x73625140]  ;;  %v324_v15 = vrot.slane %v227_v55, 2 }
  0x79   : > { %413 = vst [vmem:[#allocation1] ss:$4 sm:$0xff] %v301_v30  ;;  %v5009_v30 = vld [vmem:[#allocation2 + $0x31] sm:$0xff] }
  0x7a   : > { %414 = vst [vmem:[#allocation1 + $0x1] ss:$4 sm:$0xff] %v302_v31 }
  0x7b   : > { %415 = vst [vmem:[#allocation1 + $0x2] ss:$4 sm:$0xff] %v303_v33 }
  0x7c   : > { %416 = vst [vmem:[#allocation1 + $0x3] ss:$4 sm:$0xff] %v219_v9  ;;  %v5002_v9 = vld [vmem:[#allocation2 + $0x21] sm:$0xff] }
  0x7d   : > { %v599_v13 = vrot.slane %v5002_v9, 2 }
  0x7f   : > { %v4986_v29 = vld.sshfl [vmem:[#allocation1 + $0x20] sm:$0xff pattern:$0x73625140] }
  0x80   : > { %427 = vst [vmem:[#allocation1 + $0x20] ss:$4 sm:$0xff] %v310_v25 }
  0x81   : > { %428 = vst [vmem:[#allocation1 + $0x21] ss:$4 sm:$0xff] %v222_v24  ;;  %v533_v24 = vld [vmem:[#allocation2 + $0x1] sm:$0xff] }
  0x82   : > { %429 = vst [vmem:[#allocation1 + $0x22] ss:$4 sm:$0xff] %v311_v26  ;;  %v589_v26 = vrot.slane %v533_v24, 2  ;;  %v590_v31 = vrot.slane %v533_v24, 4 }
  0x83   : > { %430 = vst [vmem:[#allocation1 + $0x23] ss:$4 sm:$0xff] %v312_v27  ;;  %v4992_v45 = vld.sshfl [vmem:[#allocation1] sm:$0xff pattern:$0x73625140] }
  0x84   : > { %423 = vst [vmem:[#allocation1] ss:$4 sm:$0xff] %v307_v41  ;;  %v594_v41 = vrot.slane %v535_v2, 2 }
  0x85   : > { %424 = vst [vmem:[#allocation1 + $0x1] ss:$4 sm:$0xff] %v308_v42  ;;  %v595_v42 = vrot.slane %v535_v2, 4 }
  0x86   : > { %425 = vst [vmem:[#allocation1 + $0x2] ss:$4 sm:$0xff] %v221_v22  ;;  %v538_v22 = vld [vmem:[#allocation2 + $0x29] sm:$0x3f] }
  0x87   : > { %426 = vst [vmem:[#allocation1 + $0x3] ss:$4 sm:$0xff] %v309_v44  ;;  %v603_v25 = vrot.slane %v538_v22, 4  ;;  %v596_v44 = vrot.slane %v535_v2, 6 }
  0x8a   : > { %v4990_v40 = vld.sshfl [vmem:[#allocation1 + $0x20] sm:$0xff pattern:$0x73625140] }
  0x8b   : > { %437 = vst [vmem:[#allocation1 + $0x20] ss:$4 sm:$0xff] %v224_v35  ;;  %v591_v35 = vrot.slane %v533_v24, 6 }
  0x8c   : > { %438 = vst [vmem:[#allocation1 + $0x21] ss:$4 sm:$0xff] %v316_v36 }
  0x8d   : > { %439 = vst [vmem:[#allocation1 + $0x22] ss:$4 sm:$0xff] %v317_v37  ;;  %v604_v37 = vrot.slane %v5009_v30, 2 }
  0x8e   : > { %440 = vst [vmem:[#allocation1 + $0x23] ss:$4 sm:$0xff] %v318_v39  ;;  %v4996_v58 = vld.sshfl [vmem:[#allocation1] sm:$0xff pattern:$0x73625140]  ;;  %v605_v39 = vrot.slane %v5009_v30, 4 }
  0x8f   : > { %433 = vst [vmem:[#allocation1] ss:$4 sm:$0xff] %v313_v54 }
  0x90   : > { %434 = vst [vmem:[#allocation1 + $0x1] ss:$4 sm:$0xff] %v223_v51 }
  0x91   : > { %435 = vst [vmem:[#allocation1 + $0x2] ss:$4 sm:$0xff] %v314_v56  ;;  %v600_v56 = vrot.slane %v5002_v9, 4 }
  0x92   : > { %436 = vst [vmem:[#allocation1 + $0x3] ss:$4 sm:$0xff] %v315_v57  ;;  %v601_v57 = vrot.slane %v5002_v9, 6 }
  0x95   : > { %v4994_v52 = vld.sshfl [vmem:[#allocation1 + $0x20] sm:$0xff pattern:$0x73625140] }
  0x96   : > { %447 = vst [vmem:[#allocation1 + $0x20] ss:$4 sm:$0xff] %v321_v47 }
  0x97   : > { %448 = vst [vmem:[#allocation1 + $0x21] ss:$4 sm:$0xff] %v322_v48 }
  0x98   : > { %449 = vst [vmem:[#allocation1 + $0x22] ss:$4 sm:$0xff] %v323_v49 }
  0x99   : > { %450 = vst [vmem:[#allocation1 + $0x23] ss:$4 sm:$0xff] %v227_v55  ;;  %v5000_v6 = vld.sshfl [vmem:[#allocation1] sm:$0xff pattern:$0x73625140] }
  0x9a   : > { %443 = vst [vmem:[#allocation1] ss:$4 sm:$0xff] %v225_v62  ;;  %v602_v62 = vrot.slane %v538_v22, 2 }
  0x9b   : > { %444 = vst [vmem:[#allocation1 + $0x1] ss:$4 sm:$0xff] %v319_v4 }
  0x9c   : > { %445 = vst [vmem:[#allocation1 + $0x2] ss:$4 sm:$0xff] %v320_v5 }
  0x9d   : > { %446 = vst [vmem:[#allocation1 + $0x3] ss:$4 sm:$0xff] %v226_v46  ;;  %v541_v46 = vld [vmem:[#allocation2 + $0x41] sm:$0xff] }
  0x9e   : > { %v609_v49 = vrot.slane %v541_v46, 2  ;;  %v610_v54 = vrot.slane %v541_v46, 4  ;;  %v611_v55 = vrot.slane %v541_v46, 6 }
  0xa0   : > { %v4998_v1 = vld.sshfl [vmem:[#allocation1 + $0x20] sm:$0xff pattern:$0x73625140] }
  0xa1   : > { %667 = vst [vmem:[#allocation1 + $0x20] ss:$4 sm:$0xff] %v534_v60  ;;  %v543_v60 = vld [vmem:[#allocation2 + $0x51] sm:$0xff] }
  0xa2   : > { %669 = vst [vmem:[#allocation1 + $0x21] ss:$4 sm:$0xff] %v592_v61  ;;  %v614_v4 = vrot.slane %v543_v60, 2  ;;  %v615_v5 = vrot.slane %v543_v60, 4 }
  0xa3   : > { %671 = vst [vmem:[#allocation1 + $0x22] ss:$4 sm:$0xff] %v593_v0 }
  0xa4   : > { %673 = vst [vmem:[#allocation1 + $0x23] ss:$4 sm:$0xff] %v535_v2  ;;  %v5006_v20 = vld.sshfl [vmem:[#allocation1] sm:$0xff pattern:$0x73625140] }
  0xa5   : > { %453 = vst [vmem:[#allocation1] ss:$4 sm:$0xff] %v324_v15  ;;  %v5020_v2 = vld [vmem:[#allocation2 + $0x59] sm:$0x3f] }
  0xa6   : > { %454 = vst [vmem:[#allocation1 + $0x1] ss:$4 sm:$0xff] %v325_v17 }
  0xab   : > { %v675_v14 = vld.sshfl [vmem:[#allocation1 + $0x20] sm:$0xff pattern:$0x73625140] }
  0xac   : > { %680 = vst [vmem:[#allocation1 + $0x20] ss:$4 sm:$0xff] %v597_v11  ;;  %v815_v18 = vpack.c.bf16 %v675_v14, %v675_v14  ;;  %v616_v11 = vrot.slane %v543_v60, 6  ;;  %v545_v14 = vld [vmem:[#allocation2 + $0x61] sm:$0xff] }
  0xad   : > { %681 = vst [vmem:[#allocation1 + $0x21] ss:$4 sm:$0xff] %v598_v12  ;;  %v5011_v36 = vld.sshfl [vmem:[#allocation1] sm:$0xff pattern:$0x73625140] }
  0xae   : > { %682 = vst [vmem:[#allocation1 + $0x22] ss:$4 sm:$0xff] %v5002_v9  ;;  %866 = vrot.lane.b32.xlu0 %v815_v18, %s4902_s3  ;;  %v540_v9 = vld [vmem:[#allocation2 + $0x39] sm:$0x3f] }
  0xaf   : > { %683 = vst [vmem:[#allocation1 + $0x23] ss:$4 sm:$0xff] %v599_v13  ;;  %v606_v13 = vrot.slane %v5009_v30, 6  ;;  %v607_v15 = vrot.slane %v540_v9, 2  ;;  %v608_v17 = vrot.slane %v540_v9, 4 }
  0xb0   : > { %659 = vst [vmem:[#allocation1] ss:$4 sm:$0xff] %v533_v24  ;;  %v620_v24 = vrot.slane %v545_v14, 4 }
  0xb1   : > { %661 = vst [vmem:[#allocation1 + $0x1] ss:$4 sm:$0xff] %v589_v26 }
  0xb2   : > { %663 = vst [vmem:[#allocation1 + $0x2] ss:$4 sm:$0xff] %v590_v31 }
  0xb3   : > { %665 = vst [vmem:[#allocation1 + $0x3] ss:$4 sm:$0xff] %v591_v35 }
  0xb6   : > { %v685_v27 = vld.sshfl [vmem:[#allocation1 + $0x20] sm:$0xff pattern:$0x73625140] }
  0xb7   : > { %v817_v33 = vpack.c.bf16 %v685_v27, %v685_v27  ;;  %690 = vst [vmem:[#allocation1 + $0x20] ss:$4 sm:$0xff] %v603_v25  ;;  %v621_v25 = vrot.slane %v545_v14, 6 }
  0xb8   : > { %691 = vst [vmem:[#allocation1 + $0x21] ss:$4 sm:$0xff] %v5009_v30 }
  0xb9   : > { %870 = vrot.lane.b32.xlu1 %v817_v33, %s4902_s3  ;;  %692 = vst [vmem:[#allocation1 + $0x22] ss:$4 sm:$0xff] %v604_v37  ;;  %v542_v33 = vld [vmem:[#allocation2 + $0x49] sm:$0x3f]  ;;  %v547_v37 = vld [vmem:[#allocation2 + $0x71] sm:$0xff] }
  0xba   : > { %693 = vst [vmem:[#allocation1 + $0x23] ss:$4 sm:$0xff] %v605_v39  ;;  %v674_v47 = vld.sshfl [vmem:[#allocation1] sm:$0xff pattern:$0x73625140]  ;;  %v612_v30 = vrot.slane %v542_v33, 2 }
  0xbb   : > { %676 = vst [vmem:[#allocation1] ss:$4 sm:$0xff] %v594_v41  ;;  %v814_v48 = vpack.c.bf16 %v674_v47, %v674_v47  ;;  %v613_v35 = vrot.slane %v542_v33, 4 }
  0xbc   : > { %677 = vst [vmem:[#allocation1 + $0x1] ss:$4 sm:$0xff] %v595_v42  ;;  %v548_v42 = vld [vmem:[#allocation2 + $0x79] sm:$0x3f] }
  0xbd   : > { %678 = vst [vmem:[#allocation1 + $0x2] ss:$4 sm:$0xff] %v596_v44  ;;  %864 = vrot.lane.b32.xlu0 %v814_v48, %s4902_s3  ;;  %v626_v44 = vrot.slane %v547_v37, 6  ;;  %v628_v47 = vrot.slane %v548_v42, 4 }
  0xbe   : > { %679 = vst [vmem:[#allocation1 + $0x3] ss:$4 sm:$0xff] %v536_v7 }
  0xc1   : > { %v695_v51 = vld.sshfl [vmem:[#allocation1 + $0x20] sm:$0xff pattern:$0x73625140] }
  0xc2   : > { %700 = vst [vmem:[#allocation1 + $0x20] ss:$4 sm:$0xff] %v541_v46  ;;  %v819_v26 = vpack.c.bf16 %v695_v51, %v695_v51  ;;  %v627_v46 = vrot.slane %v548_v42, 2  ;;  %v617_v51 = vrot.slane %v5020_v2, 2 }
  0xc3   : > { %701 = vst [vmem:[#allocation1 + $0x21] ss:$4 sm:$0xff] %v609_v49 }
  0xc4   : > { %702 = vst [vmem:[#allocation1 + $0x22] ss:$4 sm:$0xff] %v610_v54  ;;  %874 = vrot.lane.b32.xlu2 %v819_v26, %s4902_s3  ;;  %v618_v54 = vrot.slane %v5020_v2, 4 }
  0xc5   : > { %703 = vst [vmem:[#allocation1 + $0x23] ss:$4 sm:$0xff] %v611_v55  ;;  %v684_v61 = vld.sshfl [vmem:[#allocation1] sm:$0xff pattern:$0x73625140]  ;;  %v619_v55 = vrot.slane %v545_v14, 2 }
  0xc6   : > { %v816_v0 = vpack.c.bf16 %v684_v61, %v684_v61  ;;  %686 = vst [vmem:[#allocation1] ss:$4 sm:$0xff] %v600_v56 }
  0xc7   : > { %687 = vst [vmem:[#allocation1 + $0x1] ss:$4 sm:$0xff] %v601_v57  ;;  %v550_v57 = vld [vmem:[#allocation2 + $0x89] sm:$0x3f] }
  0xc8   : > { %868 = vrot.lane.b32.xlu1 %v816_v0, %s4902_s3  ;;  %688 = vst [vmem:[#allocation1 + $0x2] ss:$4 sm:$0xff] %v538_v22  ;;  %v546_v22 = vld [vmem:[#allocation2 + $0x69] sm:$0x3f]  ;;  %v632_v61 = vrot.slane %v550_v57, 2  ;;  %v633_v0 = vrot.slane %v550_v57, 4 }
  0xc9   : > { %689 = vst [vmem:[#allocation1 + $0x3] ss:$4 sm:$0xff] %v602_v62  ;;  %v622_v31 = vrot.slane %v546_v22, 2 }
  0xcc   : > { %v705_v7 = vld.sshfl [vmem:[#allocation1 + $0x20] sm:$0xff pattern:$0x73625140] }
  0xcd   : > { %713 = vst [vmem:[#allocation1 + $0x23] ss:$4 sm:$0xff] %v5020_v2  ;;  %v821_v12 = vpack.c.bf16 %v705_v7, %v705_v7  ;;  %v552_v2 = vld [vmem:[#allocation2 + $0x99] sm:$0x3f] }
  0xce   : > { %710 = vst [vmem:[#allocation1 + $0x20] ss:$4 sm:$0xff] %v614_v4  ;;  %v623_v4 = vrot.slane %v546_v22, 4 }
  0xcf   : > { %711 = vst [vmem:[#allocation1 + $0x21] ss:$4 sm:$0xff] %v615_v5  ;;  %v624_v5 = vrot.slane %v547_v37, 2 }
  0xd0   : > { %712 = vst [vmem:[#allocation1 + $0x22] ss:$4 sm:$0xff] %v616_v11  ;;  %878 = vrot.lane.b32.xlu1 %v821_v12, %s4902_s3  ;;  %v5026_v18 = vld.sshfl [vmem:[#allocation1] sm:$0xff pattern:$0x73625140]  ;;  %v625_v11 = vrot.slane %v547_v37, 4 }
  0xd1   : > { %696 = vst [vmem:[#allocation1] ss:$4 sm:$0xff] %v606_v13  ;;  %v818_v12 = vpack.c.bf16 %v5026_v18, %v5026_v18  ;;  %v5040_v13 = vld [vmem:[#allocation2 + $0xa1] sm:$0xff] }
  0xd2   : > { %697 = vst [vmem:[#allocation1 + $0x1] ss:$4 sm:$0xff] %v540_v9 }
  0xd3   : > { %698 = vst [vmem:[#allocation1 + $0x2] ss:$4 sm:$0xff] %v607_v15  ;;  %872 = vrot.lane.b32.xlu2 %v818_v12, %s4902_s3  ;;  %v638_v15 = vrot.slane %v552_v2, 4 }
  0xd4   : > { %699 = vst [vmem:[#allocation1 + $0x3] ss:$4 sm:$0xff] %v608_v17 }
  0xd7   : > { %v715_v27 = vld.sshfl [vmem:[#allocation1 + $0x20] sm:$0xff pattern:$0x73625140] }
  0xd8   : > { %720 = vst [vmem:[#allocation1 + $0x20] ss:$4 sm:$0xff] %v620_v24  ;;  %v823_v49 = vpack.c.bf16 %v715_v27, %v715_v27  ;;  %v549_v24 = vld [vmem:[#allocation2 + $0x81] sm:$0xff] }
  0xd9   : > { %721 = vst [vmem:[#allocation1 + $0x21] ss:$4 sm:$0xff] %v621_v25  ;;  %v629_v18 = vrot.slane %v549_v24, 2  ;;  %v630_v27 = vrot.slane %v549_v24, 4 }
  0xda   : > { %722 = vst [vmem:[#allocation1 + $0x22] ss:$4 sm:$0xff] %v546_v22  ;;  %v639_v22 = vrot.slane %v5040_v13, 2 }
  0xdb   : > { %723 = vst [vmem:[#allocation1 + $0x23] ss:$4 sm:$0xff] %v622_v31  ;;  %v704_v39 = vld.sshfl [vmem:[#allocation1] sm:$0xff pattern:$0x73625140] }
  0xdc   : > { %706 = vst [vmem:[#allocation1] ss:$4 sm:$0xff] %v542_v33  ;;  %v820_v41 = vpack.c.bf16 %v704_v39, %v704_v39  ;;  %v554_v31 = vld [vmem:[#allocation2 + $0xa9] sm:$0x3f]  ;;  %v631_v33 = vrot.slane %v549_v24, 6 }
  0xdd   : > { %707 = vst [vmem:[#allocation1 + $0x1] ss:$4 sm:$0xff] %v612_v30  ;;  %v643_v39 = vrot.slane %v554_v31, 4 }
  0xde   : > { %708 = vst [vmem:[#allocation1 + $0x2] ss:$4 sm:$0xff] %v613_v35  ;;  %876 = vrot.lane.b32.xlu0 %v820_v41, %s4902_s3 }
  0xdf   : > { %709 = vst [vmem:[#allocation1 + $0x3] ss:$4 sm:$0xff] %v543_v60  ;;  %v5035_v60 = vld [vmem:[#allocation2 + $0x91] sm:$0xff] }
  0xe2   : > { %v5030_v48 = vld.sshfl [vmem:[#allocation1 + $0x20] sm:$0xff pattern:$0x73625140] }
  0xe3   : > { %730 = vst [vmem:[#allocation1 + $0x20] ss:$4 sm:$0xff] %v626_v44 }
  0xe4   : > { %731 = vst [vmem:[#allocation1 + $0x21] ss:$4 sm:$0xff] %v548_v42 }
  0xe5   : > { %732 = vst [vmem:[#allocation1 + $0x22] ss:$4 sm:$0xff] %v627_v46 }
  0xe6   : > { %733 = vst [vmem:[#allocation1 + $0x23] ss:$4 sm:$0xff] %v628_v47  ;;  %v714_v56 = vld.sshfl [vmem:[#allocation1] sm:$0xff pattern:$0x73625140]  ;;  %882 = vrot.lane.b32.xlu0 %v823_v49, %s4902_s3  ;;  %v634_v47 = vrot.slane %v5035_v60, 2 }
  0xe7   : > { %716 = vst [vmem:[#allocation1] ss:$4 sm:$0xff] %v617_v51  ;;  %v822_v26 = vpack.c.bf16 %v714_v56, %v714_v56  ;;  %v635_v49 = vrot.slane %v5035_v60, 4  ;;  %v636_v51 = vrot.slane %v5035_v60, 6 }
  0xe8   : > { %717 = vst [vmem:[#allocation1 + $0x1] ss:$4 sm:$0xff] %v618_v54 }
  0xe9   : > { %718 = vst [vmem:[#allocation1 + $0x2] ss:$4 sm:$0xff] %v545_v14  ;;  %v637_v14 = vrot.slane %v552_v2, 2  ;;  %880 = vrot.lane.b32.xlu2 %v822_v26, %s4902_s3 }
  0xea   : > { %719 = vst [vmem:[#allocation1 + $0x3] ss:$4 sm:$0xff] %v619_v55  ;;  %v557_v55 = vld [vmem:[#allocation2 + $0xc1] sm:$0xff] }
  0xeb   : > { %v649_v56 = vrot.slane %v557_v55, 2 }
  0xed   : > { %v735_v62 = vld.sshfl [vmem:[#allocation1 + $0x20] sm:$0xff pattern:$0x73625140] }
  0xee   : > { %743 = vst [vmem:[#allocation1 + $0x23] ss:$4 sm:$0xff] %v5035_v60  ;;  %v827_v25 = vpack.c.bf16 %v735_v62, %v735_v62  ;;  %v651_v62 = vrot.slane %v557_v55, 6  ;;  %v559_v60 = vld [vmem:[#allocation2 + $0xd1] sm:$0xff] }
  0xef   : > { %740 = vst [vmem:[#allocation1 + $0x20] ss:$4 sm:$0xff] %v550_v57  ;;  %v650_v57 = vrot.slane %v557_v55, 4  ;;  %v655_v12 = vrot.slane %v559_v60, 4 }
  0xf0   : > { %741 = vst [vmem:[#allocation1 + $0x21] ss:$4 sm:$0xff] %v632_v61 }
  0xf1   : > { %742 = vst [vmem:[#allocation1 + $0x22] ss:$4 sm:$0xff] %v633_v0  ;;  %v724_v7 = vld.sshfl [vmem:[#allocation1] sm:$0xff pattern:$0x73625140]  ;;  %v640_v0 = vrot.slane %v5040_v13, 4 }
  0xf2   : > { %v824_v9 = vpack.c.bf16 %v724_v7, %v724_v7  ;;  %726 = vst [vmem:[#allocation1] ss:$4 sm:$0xff] %v623_v4  ;;  %v641_v4 = vrot.slane %v5040_v13, 6  ;;  %v642_v7 = vrot.slane %v554_v31, 2 }
  0xf3   : > { %727 = vst [vmem:[#allocation1 + $0x1] ss:$4 sm:$0xff] %v547_v37  ;;  %v5048_v37 = vld [vmem:[#allocation2 + $0xb1] sm:$0xff] }
  0xf4   : > { %884 = vrot.lane.b32.xlu1 %v824_v9, %s4902_s3  ;;  %728 = vst [vmem:[#allocation1 + $0x2] ss:$4 sm:$0xff] %v624_v5  ;;  %v644_v41 = vrot.slane %v5048_v37, 2  ;;  %v645_v42 = vrot.slane %v5048_v37, 4  ;;  %v825_v9 = vpack.c.bf16 %v5030_v48, %v5030_v48 }
  0xf5   : > { %729 = vst [vmem:[#allocation1 + $0x3] ss:$4 sm:$0xff] %v625_v11 }
  0xf6   : > { %886 = vrot.lane.b32.xlu2 %v825_v9, %s4902_s3  ;;  %v966_v9 = vld [vmem:[#allocation2 + $0x2] sm:$0xff] }
  0xf8   : > { %v745_v17 = vld.sshfl [vmem:[#allocation1 + $0x20] sm:$0xff pattern:$0x73625140] }
  0xf9   : > { %750 = vst [vmem:[#allocation1 + $0x20] ss:$4 sm:$0xff] %v637_v14  ;;  %v829_v46 = vpack.c.bf16 %v745_v17, %v745_v17  ;;  %v656_v14 = vrot.slane %v559_v60, 6  ;;  %v556_v17 = vld [vmem:[#allocation2 + $0xb9] sm:$0x3f] }
  0xfa   : > { %751 = vst [vmem:[#allocation1 + $0x21] ss:$4 sm:$0xff] %v638_v15  ;;  %v560_v15 = vld [vmem:[#allocation2 + $0xd9] sm:$0x3f]  ;;  %v647_v48 = vrot.slane %v556_v17, 2  ;;  %v648_v26 = vrot.slane %v556_v17, 4 }
  0xfb   : > { %752 = vst [vmem:[#allocation1 + $0x22] ss:$4 sm:$0xff] %v5040_v13 }
  0xfc   : > { %753 = vst [vmem:[#allocation1 + $0x23] ss:$4 sm:$0xff] %v639_v22  ;;  %890 = vrot.lane.b32.xlu1 %v827_v25, %s4902_s3  ;;  %v734_v30 = vld.sshfl [vmem:[#allocation1] sm:$0xff pattern:$0x73625140]  ;;  %v646_v25 = vrot.slane %v5048_v37, 6 }
  0xfd   : > { %736 = vst [vmem:[#allocation1] ss:$4 sm:$0xff] %v549_v24  ;;  %v826_v35 = vpack.c.bf16 %v734_v30, %v734_v30 }
  0xfe   : > { %737 = vst [vmem:[#allocation1 + $0x1] ss:$4 sm:$0xff] %v629_v18 }
  0xff   : > { %738 = vst [vmem:[#allocation1 + $0x2] ss:$4 sm:$0xff] %v630_v27  ;;  %888 = vrot.lane.b32.xlu0 %v826_v35, %s4902_s3  ;;  %v967_v27 = vld [vmem:[#allocation2 + $0xa] sm:$0x3f] }
 0x100   : > { %739 = vst [vmem:[#allocation1 + $0x3] ss:$4 sm:$0xff] %v631_v33  ;;  %v1025_v33 = vrot.slane %v967_v27, 2  ;;  %v1026_v30 = vrot.slane %v967_v27, 4 }
 0x103   : > { %v5053_v44 = vld.sshfl [vmem:[#allocation1 + $0x20] sm:$0xff pattern:$0x73625140] }
 0x104   : > { %760 = vst [vmem:[#allocation1 + $0x20] ss:$4 sm:$0xff] %v643_v39  ;;  %v5072_v39 = vld [vmem:[#allocation2 + $0x12] sm:$0xff] }
 0x105   : > { %761 = vst [vmem:[#allocation1 + $0x21] ss:$4 sm:$0xff] %v5048_v37  ;;  %v558_v37 = vld [vmem:[#allocation2 + $0xc9] sm:$0x3f] }
 0x106   : > { %762 = vst [vmem:[#allocation1 + $0x22] ss:$4 sm:$0xff] %v644_v41 }
 0x107   : > { %763 = vst [vmem:[#allocation1 + $0x23] ss:$4 sm:$0xff] %v645_v42  ;;  %v744_v54 = vld.sshfl [vmem:[#allocation1] sm:$0xff pattern:$0x73625140]  ;;  %894 = vrot.lane.b32.xlu0 %v829_v46, %s4902_s3  ;;  %v652_v42 = vrot.slane %v558_v37, 2 }
 0x108   : > { %746 = vst [vmem:[#allocation1] ss:$4 sm:$0xff] %v634_v47  ;;  %v828_v24 = vpack.c.bf16 %v744_v54, %v744_v54  ;;  %v653_v46 = vrot.slane %v558_v37, 4  ;;  %v5075_v47 = vld [vmem:[#allocation2 + $0x1a] sm:$0x3f]  ;;  %v5080_v54 = vld [vmem:[#allocation2 + $0x22] sm:$0xff] }
 0x109   : > { %747 = vst [vmem:[#allocation1 + $0x1] ss:$4 sm:$0xff] %v635_v49 }
 0x10a   : > { %748 = vst [vmem:[#allocation1 + $0x2] ss:$4 sm:$0xff] %v636_v51  ;;  %892 = vrot.lane.b32.xlu2 %v828_v24, %s4902_s3  ;;  %v831_v51 = vpack.c.bf16 %v5053_v44, %v5053_v44  ;;  %v658_v44 = vrot.slane %v560_v15, 4 }
 0x10b   : > { %749 = vst [vmem:[#allocation1 + $0x3] ss:$4 sm:$0xff] %v552_v2  ;;  %v654_v2 = vrot.slane %v559_v60, 2 }
 0x10e   : > { %v765_v61 = vld.sshfl [vmem:[#allocation1 + $0x20] sm:$0xff pattern:$0x73625140] }
 0x10f   : > { %770 = vst [vmem:[#allocation1 + $0x20] ss:$4 sm:$0xff] %v557_v55  ;;  %v833_v22 = vpack.c.bf16 %v765_v61, %v765_v61  ;;  %v1030_v55 = vrot.slane %v5075_v47, 2 }
 0x110   : > { %771 = vst [vmem:[#allocation1 + $0x21] ss:$4 sm:$0xff] %v649_v56  ;;  %v1031_v56 = vrot.slane %v5075_v47, 4 }
 0x111   : > { %772 = vst [vmem:[#allocation1 + $0x22] ss:$4 sm:$0xff] %v650_v57  ;;  %v1032_v57 = vrot.slane %v5080_v54, 2 }
 0x112   : > { %773 = vst [vmem:[#allocation1 + $0x23] ss:$4 sm:$0xff] %v651_v62  ;;  %v754_v5 = vld.sshfl [vmem:[#allocation1] sm:$0xff pattern:$0x73625140]  ;;  %898 = vrot.lane.b32.xlu2 %v831_v51, %s4902_s3 }
 0x113   : > { %v830_v11 = vpack.c.bf16 %v754_v5, %v754_v5  ;;  %756 = vst [vmem:[#allocation1] ss:$4 sm:$0xff] %v640_v0  ;;  %v657_v0 = vrot.slane %v560_v15, 2 }
 0x114   : > { %757 = vst [vmem:[#allocation1 + $0x1] ss:$4 sm:$0xff] %v641_v4  ;;  %v5089_v4 = vld [vmem:[#allocation2 + $0x2a] sm:$0x3f] }
 0x115   : > { %896 = vrot.lane.b32.xlu1 %v830_v11, %s4902_s3  ;;  %758 = vst [vmem:[#allocation1 + $0x2] ss:$4 sm:$0xff] %v554_v31  ;;  %v1036_v11 = vrot.slane %v5089_v4, 4 }
 0x116   : > { %759 = vst [vmem:[#allocation1 + $0x3] ss:$4 sm:$0xff] %v642_v7 }
 0x119   : > { %v775_v13 = vld.sshfl [vmem:[#allocation1 + $0x20] sm:$0xff pattern:$0x73625140] }
 0x11a   : > { %780 = vst [vmem:[#allocation1 + $0x20] ss:$4 sm:$0xff] %v654_v2  ;;  %v835_v41 = vpack.c.bf16 %v775_v13, %v775_v13  ;;  %v1022_v13 = vrot.slane %v966_v9, 2 }
 0x11b   : > { %781 = vst [vmem:[#allocation1 + $0x21] ss:$4 sm:$0xff] %v655_v12 }
 0x11c   : > { %782 = vst [vmem:[#allocation1 + $0x22] ss:$4 sm:$0xff] %v656_v14 }
 0x11d   : > { %783 = vst [vmem:[#allocation1 + $0x23] ss:$4 sm:$0xff] %v560_v15  ;;  %902 = vrot.lane.b32.xlu1 %v833_v22, %s4902_s3  ;;  %v764_v18 = vld.sshfl [vmem:[#allocation1] sm:$0xff pattern:$0x73625140]  ;;  %v1024_v22 = vrot.slane %v966_v9, 6 }
 0x11e   : > { %766 = vst [vmem:[#allocation1] ss:$4 sm:$0xff] %v646_v25  ;;  %v832_v31 = vpack.c.bf16 %v764_v18, %v764_v18 }
 0x11f   : > { %767 = vst [vmem:[#allocation1 + $0x1] ss:$4 sm:$0xff] %v556_v17  ;;  %v1023_v17 = vrot.slane %v966_v9, 4 }
 0x120   : > { %768 = vst [vmem:[#allocation1 + $0x2] ss:$4 sm:$0xff] %v647_v48  ;;  %900 = vrot.lane.b32.xlu0 %v832_v31, %s4902_s3  ;;  %v974_v48 = vld [vmem:[#allocation2 + $0x42] sm:$0xff] }
 0x121   : > { %769 = vst [vmem:[#allocation1 + $0x3] ss:$4 sm:$0xff] %v648_v26  ;;  %v1042_v26 = vrot.slane %v974_v48, 2  ;;  %v1043_v18 = vrot.slane %v974_v48, 4 }
 0x124   : > { %v5070_v35 = vld.sshfl [vmem:[#allocation1 + $0x20] sm:$0xff pattern:$0x73625140] }
 0x125   : > { %1100 = vst [vmem:[#allocation1 + $0x20] ss:$4 sm:$0xff] %v967_v27  ;;  %v1044_v27 = vrot.slane %v974_v48, 6  ;;  %v837_v51 = vpack.c.bf16 %v5070_v35, %v5070_v35  ;;  %v1033_v35 = vrot.slane %v5080_v54, 4 }
 0x126   : > { %1102 = vst [vmem:[#allocation1 + $0x21] ss:$4 sm:$0xff] %v1025_v33  ;;  %v1028_v33 = vrot.slane %v5072_v39, 4 }
 0x127   : > { %1104 = vst [vmem:[#allocation1 + $0x22] ss:$4 sm:$0xff] %v1026_v30  ;;  %v1027_v30 = vrot.slane %v5072_v39, 2 }
 0x128   : > { %1106 = vst [vmem:[#allocation1 + $0x23] ss:$4 sm:$0xff] %v5072_v39  ;;  %v774_v49 = vld.sshfl [vmem:[#allocation1] sm:$0xff pattern:$0x73625140]  ;;  %906 = vrot.lane.b32.xlu0 %v835_v41, %s4902_s3  ;;  %v1029_v41 = vrot.slane %v5072_v39, 6 }
 0x129   : > { %776 = vst [vmem:[#allocation1] ss:$4 sm:$0xff] %v558_v37  ;;  %v834_v62 = vpack.c.bf16 %v774_v49, %v774_v49 }
 0x12a   : > { %777 = vst [vmem:[#allocation1 + $0x1] ss:$4 sm:$0xff] %v652_v42 }
 0x12b   : > { %778 = vst [vmem:[#allocation1 + $0x2] ss:$4 sm:$0xff] %v653_v46  ;;  %904 = vrot.lane.b32.xlu2 %v834_v62, %s4902_s3  ;;  %v5104_v46 = vld [vmem:[#allocation2 + $0x52] sm:$0xff] }
 0x12c   : > { %779 = vst [vmem:[#allocation1 + $0x3] ss:$4 sm:$0xff] %v559_v60  ;;  %v5092_v60 = vld [vmem:[#allocation2 + $0x32] sm:$0xff]  ;;  %v1048_v39 = vrot.slane %v5104_v46, 4 }
 0x12d   : > { %v1037_v2 = vrot.slane %v5092_v60, 2  ;;  %v1038_v14 = vrot.slane %v5092_v60, 4 }
 0x12f   : > { %v5086_v61 = vld.sshfl [vmem:[#allocation1 + $0x20] sm:$0xff pattern:$0x73625140] }
 0x130   : > { %1113 = vst [vmem:[#allocation1 + $0x20] ss:$4 sm:$0xff] %v1030_v55  ;;  %v1047_v55 = vrot.slane %v5104_v46, 2  ;;  %v1248_v62 = vpack.c.bf16 %v5086_v61, %v5086_v61 }
 0x131   : > { %1114 = vst [vmem:[#allocation1 + $0x21] ss:$4 sm:$0xff] %v1031_v56  ;;  %v1049_v56 = vrot.slane %v5104_v46, 6 }
 0x132   : > { %1115 = vst [vmem:[#allocation1 + $0x22] ss:$4 sm:$0xff] %v5080_v54 }
 0x133   : > { %1116 = vst [vmem:[#allocation1 + $0x23] ss:$4 sm:$0xff] %v1032_v57  ;;  %v784_v5 = vld.sshfl [vmem:[#allocation1] sm:$0xff pattern:$0x73625140]  ;;  %910 = vrot.lane.b32.xlu2 %v837_v51, %s4902_s3 }
 0x134   : > { %v836_v7 = vpack.c.bf16 %v784_v5, %v784_v5  ;;  %786 = vst [vmem:[#allocation1] ss:$4 sm:$0xff] %v657_v0  ;;  %v1034_v0 = vrot.slane %v5080_v54, 6  ;;  %v5130_v54 = vld [vmem:[#allocation2 + $0x6a] sm:$0x3f] }
 0x135   : > { %787 = vst [vmem:[#allocation1 + $0x1] ss:$4 sm:$0xff] %v658_v44  ;;  %v1035_v44 = vrot.slane %v5089_v4, 2 }
 0x136   : > { %908 = vrot.lane.b32.xlu1 %v836_v7, %s4902_s3 }
 0x13a   : > { %v1118_v12 = vld.sshfl [vmem:[#allocation1 + $0x20] sm:$0xff pattern:$0x73625140] }
 0x13b   : > { %1123 = vst [vmem:[#allocation1 + $0x20] ss:$4 sm:$0xff] %v1036_v11  ;;  %v1250_v15 = vpack.c.bf16 %v1118_v12, %v1118_v12  ;;  %1299 = vrot.lane.b32.xlu2 %v1248_v62, %s4903_s4  ;;  %v5126_v11 = vld [vmem:[#allocation2 + $0x62] sm:$0xff] }
 0x13c   : > { %1124 = vst [vmem:[#allocation1 + $0x21] ss:$4 sm:$0xff] %v5092_v60  ;;  %v788_v24 = vld.sshfl [vmem:[#allocation1] sm:$0xff pattern:$0x73625140]  ;;  %v1053_v61 = vrot.slane %v5126_v11, 4 }
 0x13d   : > { %1125 = vst [vmem:[#allocation1 + $0x22] ss:$4 sm:$0xff] %v1037_v2  ;;  %v838_v25 = vpack.c.bf16 %v788_v24, %v788_v24  ;;  %v973_v2 = vld [vmem:[#allocation2 + $0x3a] sm:$0x3f]  ;;  %v5138_v24 = vld [vmem:[#allocation2 + $0x72] sm:$0xff]  ;;  %v1052_v62 = vrot.slane %v5126_v11, 2 }
 0x13e   : > { %1126 = vst [vmem:[#allocation1 + $0x23] ss:$4 sm:$0xff] %v1038_v14  ;;  %1303 = vrot.lane.b32.xlu1 %v1250_v15, %s4903_s4  ;;  %v1055_v14 = vrot.slane %v5130_v54, 2 }
 0x13f   : > { %1092 = vst [vmem:[#allocation1] ss:$4 sm:$0xff] %v966_v9  ;;  %912 = vrot.lane.b32.xlu0 %v838_v25, %s4902_s3  ;;  %v1054_v9 = vrot.slane %v5126_v11, 6  ;;  %v981_v25 = vld [vmem:[#allocation2 + $0x7a] sm:$0x3f] }
 0x140   : > { %1094 = vst [vmem:[#allocation1 + $0x1] ss:$4 sm:$0xff] %v1022_v13  ;;  %v1039_v13 = vrot.slane %v5092_v60, 6  ;;  %v1059_v60 = vrot.slane %v5138_v24, 6 }
 0x141   : > { %1096 = vst [vmem:[#allocation1 + $0x2] ss:$4 sm:$0xff] %v1023_v17  ;;  %v1040_v17 = vrot.slane %v973_v2, 2 }
 0x142   : > { %1098 = vst [vmem:[#allocation1 + $0x3] ss:$4 sm:$0xff] %v1024_v22 }
 0x145   : > { %v1128_v31 = vld.sshfl [vmem:[#allocation1 + $0x20] sm:$0xff pattern:$0x73625140] }
 0x146   : > { %1133 = vst [vmem:[#allocation1 + $0x20] ss:$4 sm:$0xff] %v974_v48  ;;  %v1252_v49 = vpack.c.bf16 %v1128_v31, %v1128_v31  ;;  %v1060_v48 = vrot.slane %v981_v25, 2 }
 0x147   : > { %1134 = vst [vmem:[#allocation1 + $0x21] ss:$4 sm:$0xff] %v1042_v26  ;;  %v975_v26 = vld [vmem:[#allocation2 + $0x4a] sm:$0x3f] }
 0x148   : > { %1135 = vst [vmem:[#allocation1 + $0x22] ss:$4 sm:$0xff] %v1043_v18  ;;  %1307 = vrot.lane.b32.xlu0 %v1252_v49, %s4903_s4  ;;  %v1061_v18 = vrot.slane %v981_v25, 4  ;;  %v1045_v31 = vrot.slane %v975_v26, 2  ;;  %v983_v49 = vld [vmem:[#allocation2 + $0x8a] sm:$0x3f] }
 0x149   : > { %v1107_v37 = vld.sshfl [vmem:[#allocation1] sm:$0xff pattern:$0x73625140]  ;;  %1136 = vst [vmem:[#allocation1 + $0x23] ss:$4 sm:$0xff] %v1044_v27  ;;  %v1065_v51 = vrot.slane %v983_v49, 2 }
 0x14a   : > { %1110 = vst [vmem:[#allocation1 + $0x1] ss:$4 sm:$0xff] %v1028_v33  ;;  %v1247_v42 = vpack.c.bf16 %v1107_v37, %v1107_v37 }
 0x14b   : > { %1112 = vst [vmem:[#allocation1 + $0x3] ss:$4 sm:$0xff] %v5075_v47  ;;  %v5117_v47 = vld [vmem:[#allocation2 + $0x5a] sm:$0x3f] }
 0x14c   : > { %1297 = vrot.lane.b32.xlu1 %v1247_v42, %s4903_s4  ;;  %1109 = vst [vmem:[#allocation1] ss:$4 sm:$0xff] %v1027_v30  ;;  %v1046_v30 = vrot.slane %v975_v26, 4 }
 0x14d   : > { %1111 = vst [vmem:[#allocation1 + $0x2] ss:$4 sm:$0xff] %v1029_v41 }
 0x150   : > { %v5115_v57 = vld.sshfl [vmem:[#allocation1 + $0x20] sm:$0xff pattern:$0x73625140] }
 0x151   : > { %1143 = vst [vmem:[#allocation1 + $0x20] ss:$4 sm:$0xff] %v1047_v55  ;;  %v1254_v42 = vpack.c.bf16 %v5115_v57, %v5115_v57  ;;  %v1066_v55 = vrot.slane %v983_v49, 4 }
 0x152   : > { %1144 = vst [vmem:[#allocation1 + $0x21] ss:$4 sm:$0xff] %v1048_v39 }
 0x153   : > { %1145 = vst [vmem:[#allocation1 + $0x22] ss:$4 sm:$0xff] %v1049_v56  ;;  %1311 = vrot.lane.b32.xlu2 %v1254_v42, %s4903_s4  ;;  %v5150_v56 = vld [vmem:[#allocation2 + $0x92] sm:$0xff] }
 0x154   : > { %1146 = vst [vmem:[#allocation1 + $0x23] ss:$4 sm:$0xff] %v5117_v47  ;;  %v1117_v5 = vld.sshfl [vmem:[#allocation1] sm:$0xff pattern:$0x73625140] }
 0x155   : > { %1119 = vst [vmem:[#allocation1] ss:$4 sm:$0xff] %v1033_v35  ;;  %v1249_v7 = vpack.c.bf16 %v1117_v5, %v1117_v5  ;;  %v1051_v35 = vrot.slane %v5117_v47, 4  ;;  %v5156_v5 = vld [vmem:[#allocation2 + $0x9a] sm:$0x3f] }
 0x156   : > { %1120 = vst [vmem:[#allocation1 + $0x1] ss:$4 sm:$0xff] %v1034_v0 }
 0x157   : > { %1121 = vst [vmem:[#allocation1 + $0x2] ss:$4 sm:$0xff] %v5089_v4  ;;  %1301 = vrot.lane.b32.xlu0 %v1249_v7, %s4903_s4  ;;  %v1041_v4 = vrot.slane %v973_v2, 4  ;;  %v1070_v7 = vrot.slane %v5156_v5, 2 }
 0x158   : > { %1122 = vst [vmem:[#allocation1 + $0x3] ss:$4 sm:$0xff] %v1035_v44 }
 0x15b   : > { %v1148_v12 = vld.sshfl [vmem:[#allocation1 + $0x20] sm:$0xff pattern:$0x73625140] }
 0x15c   : > { %v1256_v15 = vpack.c.bf16 %v1148_v12, %v1148_v12  ;;  %1153 = vst [vmem:[#allocation1 + $0x20] ss:$4 sm:$0xff] %v1053_v61  ;;  %v1071_v61 = vrot.slane %v5156_v5, 4  ;;  %v1056_v12 = vrot.slane %v5130_v54, 4 }
 0x15d   : > { %1154 = vst [vmem:[#allocation1 + $0x21] ss:$4 sm:$0xff] %v1054_v9 }
 0x15e   : > { %1315 = vrot.lane.b32.xlu1 %v1256_v15, %s4903_s4  ;;  %1155 = vst [vmem:[#allocation1 + $0x22] ss:$4 sm:$0xff] %v5130_v54  ;;  %v5175_v54 = vld [vmem:[#allocation2 + $0xb2] sm:$0xff] }
 0x15f   : > { %v1127_v22 = vld.sshfl [vmem:[#allocation1] sm:$0xff pattern:$0x73625140]  ;;  %1156 = vst [vmem:[#allocation1 + $0x23] ss:$4 sm:$0xff] %v1055_v14 }
 0x160   : > { %1129 = vst [vmem:[#allocation1] ss:$4 sm:$0xff] %v1039_v13  ;;  %v1251_v57 = vpack.c.bf16 %v1127_v22, %v1127_v22  ;;  %v1057_v13 = vrot.slane %v5138_v24, 2  ;;  %v982_v22 = vld [vmem:[#allocation2 + $0x82] sm:$0xff] }
 0x161   : > { %1130 = vst [vmem:[#allocation1 + $0x1] ss:$4 sm:$0xff] %v973_v2 }
 0x162   : > { %1131 = vst [vmem:[#allocation1 + $0x2] ss:$4 sm:$0xff] %v1040_v17  ;;  %1305 = vrot.lane.b32.xlu2 %v1251_v57, %s4903_s4  ;;  %v5172_v17 = vld [vmem:[#allocation2 + $0xaa] sm:$0x3f] }
 0x163   : > { %1132 = vst [vmem:[#allocation1 + $0x3] ss:$4 sm:$0xff] %v1041_v4  ;;  %v1076_v4 = vrot.slane %v5172_v17, 4 }
 0x166   : > { %v1158_v27 = vld.sshfl [vmem:[#allocation1 + $0x20] sm:$0xff pattern:$0x73625140] }
 0x167   : > { %1163 = vst [vmem:[#allocation1 + $0x20] ss:$4 sm:$0xff] %v1059_v60  ;;  %v1258_v41 = vpack.c.bf16 %v1158_v27, %v1158_v27  ;;  %v1078_v60 = vrot.slane %v5175_v54, 4 }
 0x168   : > { %1164 = vst [vmem:[#allocation1 + $0x21] ss:$4 sm:$0xff] %v981_v25  ;;  %v1077_v25 = vrot.slane %v5175_v54, 2 }
 0x169   : > { %1165 = vst [vmem:[#allocation1 + $0x22] ss:$4 sm:$0xff] %v1060_v48  ;;  %1319 = vrot.lane.b32.xlu0 %v1258_v41, %s4903_s4 }
 0x16a   : > { %v1137_v33 = vld.sshfl [vmem:[#allocation1] sm:$0xff pattern:$0x73625140]  ;;  %1166 = vst [vmem:[#allocation1 + $0x23] ss:$4 sm:$0xff] %v1061_v18  ;;  %v1063_v18 = vrot.slane %v982_v22, 4 }
 0x16b   : > { %1142 = vst [vmem:[#allocation1 + $0x3] ss:$4 sm:$0xff] %v5104_v46  ;;  %v1253_v37 = vpack.c.bf16 %v1137_v33, %v1137_v33  ;;  %v1050_v46 = vrot.slane %v5117_v47, 2  ;;  %v5160_v47 = vld [vmem:[#allocation2 + $0xa2] sm:$0xff] }
 0x16c   : > { %1139 = vst [vmem:[#allocation1] ss:$4 sm:$0xff] %v975_v26  ;;  %v1072_v2 = vrot.slane %v5160_v47, 2  ;;  %v1062_v26 = vrot.slane %v982_v22, 2  ;;  %v990_v33 = vld [vmem:[#allocation2 + $0xc2] sm:$0xff] }
 0x16d   : > { %1309 = vrot.lane.b32.xlu1 %v1253_v37, %s4903_s4  ;;  %1140 = vst [vmem:[#allocation1 + $0x1] ss:$4 sm:$0xff] %v1045_v31  ;;  %v1083_v37 = vrot.slane %v990_v33, 4  ;;  %v1084_v41 = vrot.slane %v990_v33, 6 }
 0x16e   : > { %1141 = vst [vmem:[#allocation1 + $0x2] ss:$4 sm:$0xff] %v1046_v30  ;;  %v1082_v30 = vrot.slane %v990_v33, 2 }
 0x171   : > { %v5147_v39 = vld.sshfl [vmem:[#allocation1 + $0x20] sm:$0xff pattern:$0x73625140] }
 0x172   : > { %1173 = vst [vmem:[#allocation1 + $0x20] ss:$4 sm:$0xff] %v983_v49  ;;  %v1067_v49 = vrot.slane %v5150_v56, 2 }
 0x173   : > { %1174 = vst [vmem:[#allocation1 + $0x21] ss:$4 sm:$0xff] %v1065_v51  ;;  %v1068_v51 = vrot.slane %v5150_v56, 4 }
 0x174   : > { %1175 = vst [vmem:[#allocation1 + $0x22] ss:$4 sm:$0xff] %v1066_v55  ;;  %v1069_v55 = vrot.slane %v5150_v56, 6 }
 0x175   : > { %1176 = vst [vmem:[#allocation1 + $0x23] ss:$4 sm:$0xff] %v5150_v56  ;;  %v1147_v0 = vld.sshfl [vmem:[#allocation1] sm:$0xff pattern:$0x73625140]  ;;  %v871_v56 = vpop.permute.xlu1 %870 }
 0x176   : > { %1149 = vst [vmem:[#allocation1] ss:$4 sm:$0xff] %v1050_v46  ;;  %v1255_v44 = vpack.c.bf16 %v1147_v0, %v1147_v0  ;;  %v482_v0 = vpack.c.bf16 %v4956_v10, %v4956_v10  ;;  %v483_v10 = vpack.c.bf16 %v4964_v32, %v4964_v32 }
 0x177   : > { %1150 = vst [vmem:[#allocation1 + $0x1] ss:$4 sm:$0xff] %v1051_v35  ;;  %v484_v35 = vpack.c.bf16 %v4958_v19, %v4958_v19  ;;  %v486_v19 = vpack.c.bf16 %v4962_v28, %v4962_v28  ;;  %v1074_v28 = vrot.slane %v5160_v47, 6 }
 0x178   : > { %1151 = vst [vmem:[#allocation1 + $0x2] ss:$4 sm:$0xff] %v5126_v11  ;;  %1313 = vrot.lane.b32.xlu0 %v1255_v44, %s4903_s4  ;;  %v1058_v11 = vrot.slane %v5138_v24, 4 }
 0x179   : > { %1152 = vst [vmem:[#allocation1 + $0x3] ss:$4 sm:$0xff] %v1052_v62  ;;  %v1260_v62 = vpack.c.bf16 %v5147_v39, %v5147_v39 }
 0x17a   : > { %510 = vst.msk [vmem:[#allocation3 + $0x18] sm:$0xf] %vm506_vm0, %v484_v35  ;;  %v4462_v35 = vld [vmem:[#allocation2 + $0x28] sm:$0x3f] }
 0x17b   : > { %1323 = vrot.lane.b32.xlu2 %v1260_v62, %s4903_s4  ;;  %943 = vst.msk [vmem:[#allocation3 + $0x18] sm:$0xf] %vm939_vm1, %v871_v56  ;;  %v5245_v56 = vld [vmem:[#allocation2 + $0x30] sm:$0xff] }
 0x17c   : > { %v1178_v9 = vld.sshfl [vmem:[#allocation1 + $0x20] sm:$0xff pattern:$0x73625140]  ;;  %508 = vst.msk [vmem:[#allocation3 + $0x8] sm:$0xf] %vm506_vm0, %v482_v0 }
 0x17d   : > { %v1262_v14 = vpack.c.bf16 %v1178_v9, %v1178_v9  ;;  %1183 = vst [vmem:[#allocation1 + $0x20] ss:$4 sm:$0xff] %v1070_v7  ;;  %v867_v7 = vpop.permute.xlu0 %866 }
 0x17e   : > { %1184 = vst [vmem:[#allocation1 + $0x21] ss:$4 sm:$0xff] %v1071_v61 }
 0x17f   : > { %1327 = vrot.lane.b32.xlu1 %v1262_v14, %s4903_s4  ;;  %1185 = vst [vmem:[#allocation1 + $0x22] ss:$4 sm:$0xff] %v5160_v47  ;;  %v992_v14 = vld [vmem:[#allocation2 + $0xd2] sm:$0xff] }
 0x180   : > { %v5170_v15 = vld.sshfl [vmem:[#allocation1] sm:$0xff pattern:$0x73625140]  ;;  %1186 = vst [vmem:[#allocation1 + $0x23] ss:$4 sm:$0xff] %v1072_v2  ;;  %v875_v2 = vpop.permute.xlu2 %874 }
 0x181   : > { %1159 = vst [vmem:[#allocation1] ss:$4 sm:$0xff] %v1056_v12  ;;  %v1257_v9 = vpack.c.bf16 %v5170_v15, %v5170_v15  ;;  %v1075_v12 = vrot.slane %v5172_v17, 2  ;;  %v1088_v15 = vrot.slane %v992_v14, 4 }
 0x182   : > { %1160 = vst [vmem:[#allocation1 + $0x1] ss:$4 sm:$0xff] %v5138_v24  ;;  %v1064_v24 = vrot.slane %v982_v22, 6 }
 0x183   : > { %1161 = vst [vmem:[#allocation1 + $0x2] ss:$4 sm:$0xff] %v1057_v13  ;;  %1317 = vrot.lane.b32.xlu2 %v1257_v9, %s4903_s4  ;;  %v1087_v13 = vrot.slane %v992_v14, 2 }
 0x184   : > { %1162 = vst [vmem:[#allocation1 + $0x3] ss:$4 sm:$0xff] %v1058_v11  ;;  %v869_v11 = vpop.permute.xlu1 %868 }
 0x185   : > { %941 = vst.msk [vmem:[#allocation3 + $0x8] sm:$0xf] %vm939_vm1, %v867_v7 }
 0x186   : > { %512 = vst.msk [vmem:[#allocation3 + $0x28] sm:$0xf] %vm506_vm0, %v486_v19  ;;  %v1465_v19 = vrot.slane %v4462_v35, 2 }
 0x187   : > { %v1188_v48 = vld.sshfl [vmem:[#allocation1 + $0x20] sm:$0xff pattern:$0x73625140]  ;;  %945 = vst.msk [vmem:[#allocation3 + $0x28] sm:$0xf] %vm939_vm1, %v875_v2 }
 0x188   : > { %1193 = vst [vmem:[#allocation1 + $0x20] ss:$4 sm:$0xff] %v1076_v4  ;;  %v1264_v57 = vpack.c.bf16 %v1188_v48, %v1188_v48  ;;  %v1089_v4 = vrot.slane %v992_v14, 6 }
 0x189   : > { %1194 = vst [vmem:[#allocation1 + $0x21] ss:$4 sm:$0xff] %v5175_v54 }
 0x18a   : > { %1195 = vst [vmem:[#allocation1 + $0x22] ss:$4 sm:$0xff] %v1077_v25  ;;  %1331 = vrot.lane.b32.xlu0 %v1264_v57, %s4903_s4  ;;  %v1079_v25 = vrot.slane %v5175_v54, 6  ;;  %v488_v54 = vpack.c.bf16 %v4966_v38, %v4966_v38 }
 0x18b   : > { %v1167_v27 = vld.sshfl [vmem:[#allocation1] sm:$0xff pattern:$0x73625140]  ;;  %1196 = vst [vmem:[#allocation1 + $0x23] ss:$4 sm:$0xff] %v1078_v60 }
 0x18c   : > { %v1259_v31 = vpack.c.bf16 %v1167_v27, %v1167_v27  ;;  %1169 = vst [vmem:[#allocation1] ss:$4 sm:$0xff] %v982_v22  ;;  %v989_v22 = vld [vmem:[#allocation2 + $0xba] sm:$0x3f] }
 0x18d   : > { %1170 = vst [vmem:[#allocation1 + $0x1] ss:$4 sm:$0xff] %v1062_v26  ;;  %v1080_v60 = vrot.slane %v989_v22, 2  ;;  %v1081_v48 = vrot.slane %v989_v22, 4 }
 0x18e   : > { %1321 = vrot.lane.b32.xlu1 %v1259_v31, %s4903_s4  ;;  %1171 = vst [vmem:[#allocation1 + $0x2] ss:$4 sm:$0xff] %v1063_v18  ;;  %v481_v18 = vpack.c.bf16 %v4960_v23, %v4960_v23  ;;  %v865_v31 = vpop.permute.xlu0 %864  ;;  %v991_v23 = vld [vmem:[#allocation2 + $0xca] sm:$0x3f] }
 0x18f   : > { %1172 = vst [vmem:[#allocation1 + $0x3] ss:$4 sm:$0xff] %v1064_v24  ;;  %v1085_v38 = vrot.slane %v991_v23, 2 }
 0x190   : > { %509 = vst.msk [vmem:[#allocation3 + $0x10] sm:$0xf] %vm506_vm0, %v483_v10  ;;  %v4459_v10 = vld [vmem:[#allocation2 + $0x10] sm:$0xff] }
 0x191   : > { %942 = vst.msk [vmem:[#allocation3 + $0x10] sm:$0xf] %vm939_vm1, %v869_v11  ;;  %v1458_v9 = vrot.slane %v4459_v10, 4  ;;  %v1459_v2 = vrot.slane %v4459_v10, 6  ;;  %v487_v11 = vpack.c.bf16 %v4972_v53, %v4972_v53  ;;  %v489_v53 = vpack.c.bf16 %v4976_v63, %v4976_v63 }
 0x192   : > { %v5182_v42 = vld.sshfl [vmem:[#allocation1 + $0x20] sm:$0xff pattern:$0x73625140]  ;;  %507 = vst.msk [vmem:[#allocation3] sm:$0xf] %vm506_vm0, %v481_v18  ;;  %v491_v63 = vpack.c.bf16 %v4980_v8, %v4980_v8  ;;  %v1468_v8 = vrot.slane %v5245_v56, 4 }
 0x193   : > { %1203 = vst [vmem:[#allocation1 + $0x20] ss:$4 sm:$0xff] %v990_v33  ;;  %v1266_v27 = vpack.c.bf16 %v5182_v42, %v5182_v42  ;;  %v485_v33 = vpack.c.bf16 %v4968_v43, %v4968_v43  ;;  %v4460_v42 = vld [vmem:[#allocation2 + $0x18] sm:$0x3f] }
 0x194   : > { %1204 = vst [vmem:[#allocation1 + $0x21] ss:$4 sm:$0xff] %v1082_v30 }
 0x195   : > { %1205 = vst [vmem:[#allocation1 + $0x22] ss:$4 sm:$0xff] %v1083_v37  ;;  %1335 = vrot.lane.b32.xlu2 %v1266_v27, %s4903_s4  ;;  %v879_v37 = vpop.permute.xlu1 %878 }
 0x196   : > { %1206 = vst [vmem:[#allocation1 + $0x23] ss:$4 sm:$0xff] %v1084_v41  ;;  %v1177_v46 = vld.sshfl [vmem:[#allocation1] sm:$0xff pattern:$0x73625140]  ;;  %v873_v41 = vpop.permute.xlu2 %872 }
 0x197   : > { %1179 = vst [vmem:[#allocation1] ss:$4 sm:$0xff] %v1067_v49  ;;  %v1261_v44 = vpack.c.bf16 %v1177_v46, %v1177_v46  ;;  %v1086_v49 = vrot.slane %v991_v23, 4  ;;  %v5240_v46 = vld [vmem:[#allocation2 + $0x20] sm:$0xff] }
 0x198   : > { %1180 = vst [vmem:[#allocation1 + $0x1] ss:$4 sm:$0xff] %v1068_v51  ;;  %v1460_v51 = vrot.slane %v4460_v42, 2  ;;  %v1464_v18 = vrot.slane %v5240_v46, 6 }
 0x199   : > { %1181 = vst [vmem:[#allocation1 + $0x2] ss:$4 sm:$0xff] %v1069_v55  ;;  %1325 = vrot.lane.b32.xlu0 %v1261_v44, %s4903_s4  ;;  %v1461_v55 = vrot.slane %v4460_v42, 4  ;;  %v1467_v44 = vrot.slane %v5245_v56, 2 }
 0x19a   : > { %1182 = vst [vmem:[#allocation1 + $0x3] ss:$4 sm:$0xff] %v5156_v5  ;;  %v1073_v5 = vrot.slane %v5160_v47, 4  ;;  %v5218_v47 = vld [vmem:[#allocation2 + $0xda] sm:$0x3f] }
 0x19b   : > { %940 = vst.msk [vmem:[#allocation3] sm:$0xf] %vm939_vm1, %v865_v31  ;;  %v1090_v57 = vrot.slane %v5218_v47, 2  ;;  %v1091_v62 = vrot.slane %v5218_v47, 4 }
 0x19c   : > { %514 = vst.msk [vmem:[#allocation3 + $0x38] sm:$0xf] %vm506_vm0, %v488_v54 }
 0x19d   : > { %v1208_v39 = vld.sshfl [vmem:[#allocation1 + $0x20] sm:$0xff pattern:$0x73625140]  ;;  %947 = vst.msk [vmem:[#allocation3 + $0x38] sm:$0xf] %vm939_vm1, %v879_v37 }
 0x19e   : > { %v1268_v61 = vpack.c.bf16 %v1208_v39, %v1208_v39  ;;  %1216 = vst [vmem:[#allocation1 + $0x23] ss:$4 sm:$0xff] %v5218_v47  ;;  %v1466_v39 = vrot.slane %v4462_v35, 4  ;;  %v881_v54 = vpop.permute.xlu2 %880 }
 0x19f   : > { %1213 = vst [vmem:[#allocation1 + $0x20] ss:$4 sm:$0xff] %v1087_v13 }
 0x1a0   : > { %1339 = vrot.lane.b32.xlu1 %v1268_v61, %s4903_s4  ;;  %1214 = vst [vmem:[#allocation1 + $0x21] ss:$4 sm:$0xff] %v1088_v15  ;;  %v5249_v61 = vld [vmem:[#allocation2 + $0x38] sm:$0x3f] }
 0x1a1   : > { %v5212_v32 = vld.sshfl [vmem:[#allocation1] sm:$0xff pattern:$0x73625140]  ;;  %1215 = vst [vmem:[#allocation1 + $0x22] ss:$4 sm:$0xff] %v1089_v4  ;;  %v1471_v47 = vrot.slane %v5249_v61, 4 }
 0x1a2   : > { %1189 = vst [vmem:[#allocation1] ss:$4 sm:$0xff] %v1073_v5  ;;  %v1457_v5 = vrot.slane %v4459_v10, 2  ;;  %v1263_v15 = vpack.c.bf16 %v5212_v32, %v5212_v32  ;;  %v1462_v32 = vrot.slane %v5240_v46, 2 }
 0x1a3   : > { %1190 = vst [vmem:[#allocation1 + $0x1] ss:$4 sm:$0xff] %v1074_v28 }
 0x1a4   : > { %1191 = vst [vmem:[#allocation1 + $0x2] ss:$4 sm:$0xff] %v5172_v17  ;;  %1329 = vrot.lane.b32.xlu2 %v1263_v15, %s4903_s4 }
 0x1a5   : > { %1192 = vst [vmem:[#allocation1 + $0x3] ss:$4 sm:$0xff] %v1075_v12 }
 0x1a6   : > { %511 = vst.msk [vmem:[#allocation3 + $0x20] sm:$0xf] %vm506_vm0, %v485_v33 }
 0x1a7   : > { %944 = vst.msk [vmem:[#allocation3 + $0x20] sm:$0xf] %vm939_vm1, %v873_v41  ;;  %v1470_v41 = vrot.slane %v5249_v61, 2 }
 0x1a8   : > { %v1218_v24 = vld.sshfl [vmem:[#allocation1 + $0x20] sm:$0xff pattern:$0x73625140]  ;;  %513 = vst.msk [vmem:[#allocation3 + $0x30] sm:$0xf] %vm506_vm0, %v487_v11 }
 0x1a9   : > { %v1270_v30 = vpack.c.bf16 %v1218_v24, %v1218_v24  ;;  %1535 = vst [vmem:[#allocation1 + $0x20] ss:$4 sm:$0xff] %v4460_v42  ;;  %v490_v24 = vpack.c.bf16 %v4970_v50, %v4970_v50  ;;  %v1469_v50 = vrot.slane %v5245_v56, 6 }
 0x1aa   : > { %1537 = vst [vmem:[#allocation1 + $0x21] ss:$4 sm:$0xff] %v1460_v51 }
 0x1ab   : > { %1343 = vrot.lane.b32.xlu0 %v1270_v30, %s4903_s4  ;;  %1539 = vst [vmem:[#allocation1 + $0x22] ss:$4 sm:$0xff] %v1461_v55  ;;  %v492_v30 = vpack.c.bf16 %v4974_v59, %v4974_v59 }
 0x1ac   : > { %v1197_v17 = vld.sshfl [vmem:[#allocation1] sm:$0xff pattern:$0x73625140]  ;;  %1541 = vst [vmem:[#allocation1 + $0x23] ss:$4 sm:$0xff] %v5240_v46 }
 0x1ad   : > { %1199 = vst [vmem:[#allocation1] ss:$4 sm:$0xff] %v1079_v25  ;;  %v1265_v26 = vpack.c.bf16 %v1197_v17, %v1197_v17  ;;  %v877_v17 = vpop.permute.xlu0 %876 }
 0x1ae   : > { %1200 = vst [vmem:[#allocation1 + $0x1] ss:$4 sm:$0xff] %v989_v22 }
 0x1af   : > { %1201 = vst [vmem:[#allocation1 + $0x2] ss:$4 sm:$0xff] %v1080_v60  ;;  %1333 = vrot.lane.b32.xlu1 %v1265_v26, %s4903_s4 }
 0x1b0   : > { %1202 = vst [vmem:[#allocation1 + $0x3] ss:$4 sm:$0xff] %v1081_v48  ;;  %v1463_v48 = vrot.slane %v5240_v46, 4 }
 0x1b1   : > { %946 = vst.msk [vmem:[#allocation3 + $0x30] sm:$0xf] %vm939_vm1, %v877_v17 }
 0x1b2   : > { %515 = vst.msk [vmem:[#allocation3 + $0x40] sm:$0xf] %vm506_vm0, %v489_v53 }
 0x1b3   : > { %v1543_v7 = vld.sshfl [vmem:[#allocation1 + $0x20] sm:$0xff pattern:$0x73625140]  ;;  %948 = vst.msk [vmem:[#allocation3 + $0x40] sm:$0xf] %vm939_vm1, %v881_v54 }
 0x1b4   : > { %1548 = vst [vmem:[#allocation1 + $0x20] ss:$4 sm:$0xff] %v1465_v19  ;;  %v1683_v60 = vpack.c.bf16 %v1543_v7, %v1543_v7 }
 0x1b5   : > { %1549 = vst [vmem:[#allocation1 + $0x21] ss:$4 sm:$0xff] %v1466_v39  ;;  %v883_v37 = vpop.permute.xlu0 %882 }
 0x1b6   : > { %1550 = vst [vmem:[#allocation1 + $0x22] ss:$4 sm:$0xff] %v5245_v56  ;;  %v4469_v56 = vld [vmem:[#allocation2 + $0x60] sm:$0xff] }
 0x1b7   : > { %v1207_v43 = vld.sshfl [vmem:[#allocation1] sm:$0xff pattern:$0x73625140]  ;;  %1551 = vst [vmem:[#allocation1 + $0x23] ss:$4 sm:$0xff] %v1467_v44  ;;  %v1482_v39 = vrot.slane %v4469_v56, 2 }
 0x1b8   : > { %1209 = vst [vmem:[#allocation1] ss:$4 sm:$0xff] %v991_v23  ;;  %v1267_v13 = vpack.c.bf16 %v1207_v43, %v1207_v43  ;;  %v885_v23 = vpop.permute.xlu1 %884  ;;  %v5297_v43 = vld [vmem:[#allocation2 + $0x50] sm:$0xff]  ;;  %v1483_v44 = vrot.slane %v4469_v56, 4  ;;  %v1484_v7 = vrot.slane %v4469_v56, 6 }
 0x1b9   : > { %1210 = vst [vmem:[#allocation1 + $0x1] ss:$4 sm:$0xff] %v1085_v38  ;;  %v887_v38 = vpop.permute.xlu2 %886  ;;  %v7029_v51 = vrot.slane %v5297_v43, 2  ;;  %v7028_v46 = vrot.slane %v5297_v43, 4 }
 0x1ba   : > { %1211 = vst [vmem:[#allocation1 + $0x2] ss:$4 sm:$0xff] %v1086_v49  ;;  %1337 = vrot.lane.b32.xlu0 %v1267_v13, %s4903_s4  ;;  %v494_v49 = vpack.c.bf16 %v4978_v3, %v4978_v3  ;;  %v4466_v3 = vld [vmem:[#allocation2 + $0x48] sm:$0x3f] }
 0x1bb   : > { %1212 = vst [vmem:[#allocation1 + $0x3] ss:$4 sm:$0xff] %v992_v14  ;;  %v5251_v14 = vld [vmem:[#allocation2 + $0x40] sm:$0xff]  ;;  %v1476_v19 = vrot.slane %v4466_v3, 4 }
 0x1bc   : > { %v1472_v4 = vrot.slane %v5251_v14, 2  ;;  %v1473_v22 = vrot.slane %v5251_v14, 4  ;;  %517 = vst.msk [vmem:[#allocation3 + $0x50] sm:$0xf] %vm506_vm0, %v491_v63 }
 0x1bd   : > { %950 = vst.msk [vmem:[#allocation3 + $0x50] sm:$0xf] %vm939_vm1, %v885_v23 }
 0x1be   : > { %v5262_v25 = vld.sshfl [vmem:[#allocation1 + $0x20] sm:$0xff pattern:$0x73625140]  ;;  %516 = vst.msk [vmem:[#allocation3 + $0x48] sm:$0xf] %vm506_vm0, %v490_v24  ;;  %v496_v24 = vpack.c.bf16 %v4982_v16, %v4982_v16 }
 0x1bf   : > { %1558 = vst [vmem:[#allocation1 + $0x20] ss:$4 sm:$0xff] %v1471_v47  ;;  %v1685_v17 = vpack.c.bf16 %v5262_v25, %v5262_v25 }
 0x1c0   : > { %1559 = vst [vmem:[#allocation1 + $0x21] ss:$4 sm:$0xff] %v5251_v14  ;;  %v891_v55 = vpop.permute.xlu1 %890 }
 0x1c1   : > { %1560 = vst [vmem:[#allocation1 + $0x22] ss:$4 sm:$0xff] %v1472_v4  ;;  %v893_v63 = vpop.permute.xlu2 %892 }
 0x1c2   : > { %v1217_v0 = vld.sshfl [vmem:[#allocation1] sm:$0xff pattern:$0x73625140]  ;;  %1561 = vst [vmem:[#allocation1 + $0x23] ss:$4 sm:$0xff] %v1473_v22  ;;  %1734 = vrot.lane.b32.xlu0 %v1683_v60, %s4904_s5 }
 0x1c3   : > { %1219 = vst [vmem:[#allocation1] ss:$4 sm:$0xff] %v1090_v57  ;;  %v1269_v26 = vpack.c.bf16 %v1217_v0, %v1217_v0  ;;  %v7063_v57 = vrot.slane %v5297_v43, 6 }
 0x1c4   : > { %1220 = vst [vmem:[#allocation1 + $0x1] ss:$4 sm:$0xff] %v1091_v62  ;;  %v1475_v62 = vrot.slane %v4466_v3, 2 }
 0x1c5   : > { %1341 = vrot.lane.b32.xlu2 %v1269_v26, %s4903_s4  ;;  %949 = vst.msk [vmem:[#allocation3 + $0x48] sm:$0xf] %vm939_vm1, %v883_v37  ;;  %v495_v26 = vpack.c.bf16 %v4988_v34, %v4988_v34  ;;  %v498_v37 = vpack.c.bf16 %v4986_v29, %v4986_v29 }
 0x1c6   : > { %518 = vst.msk [vmem:[#allocation3 + $0x58] sm:$0xf] %vm506_vm0, %v492_v30 }
 0x1c7   : > { %951 = vst.msk [vmem:[#allocation3 + $0x58] sm:$0xf] %vm939_vm1, %v887_v38  ;;  %v500_v38 = vpack.c.bf16 %v4990_v40, %v4990_v40  ;;  %v4474_v40 = vld [vmem:[#allocation2 + $0x88] sm:$0x3f] }
 0x1c8   : > { %520 = vst.msk [vmem:[#allocation3 + $0x68] sm:$0xf] %vm506_vm0, %v494_v49  ;;  %v897_v23 = vpop.permute.xlu1 %896 }
 0x1c9   : > { %v1563_v31 = vld.sshfl [vmem:[#allocation1 + $0x20] sm:$0xff pattern:$0x73625140]  ;;  %953 = vst.msk [vmem:[#allocation3 + $0x68] sm:$0xf] %vm939_vm1, %v891_v55 }
 0x1ca   : > { %v1687_v33 = vpack.c.bf16 %v1563_v31, %v1563_v31  ;;  %1568 = vst [vmem:[#allocation1 + $0x20] ss:$4 sm:$0xff] %v5297_v43 }
 0x1cb   : > { %v1221_v28 = vld.sshfl [vmem:[#allocation1] sm:$0xff pattern:$0x73625140]  ;;  %1569 = vst [vmem:[#allocation1 + $0x21] ss:$4 sm:$0xff] %v7029_v51 }
 0x1cc   : > { %v1271_v12 = vpack.c.bf16 %v1221_v28, %v1221_v28  ;;  %1527 = vst [vmem:[#allocation1] ss:$4 sm:$0xff] %v4459_v10  ;;  %v4468_v10 = vld [vmem:[#allocation2 + $0x58] sm:$0x3f] }
 0x1cd   : > { %1529 = vst [vmem:[#allocation1 + $0x1] ss:$4 sm:$0xff] %v1457_v5  ;;  %v1481_v28 = vrot.slane %v4468_v10, 4  ;;  %1738 = vrot.lane.b32.xlu2 %v1685_v17, %s4904_s5  ;;  %v5434_v17 = vld [vmem:[#allocation2 + $0xb0] sm:$0xff]  ;;  %v5602_v51 = vld [vmem:[#allocation2 + $0xb9] sm:$0x3f] }
 0x1ce   : > { %1345 = vrot.lane.b32.xlu1 %v1271_v12, %s4903_s4  ;;  %1531 = vst [vmem:[#allocation1 + $0x2] ss:$4 sm:$0xff] %v1458_v9  ;;  %v1480_v9 = vrot.slane %v4468_v10, 2 }
 0x1cf   : > { %1533 = vst [vmem:[#allocation1 + $0x3] ss:$4 sm:$0xff] %v1459_v2  ;;  %v5316_v2 = vld [vmem:[#allocation2 + $0x70] sm:$0xff] }
 0x1d0   : > { %1570 = vst [vmem:[#allocation1 + $0x22] ss:$4 sm:$0xff] %v7028_v46  ;;  %v7022_v47 = vrot.slane %v5316_v2, 4  ;;  %v7020_v13 = vrot.slane %v5316_v2, 6  ;;  %v7023_v53 = vrot.slane %v5316_v2, 2 }
 0x1d1   : > { %1571 = vst [vmem:[#allocation1 + $0x23] ss:$4 sm:$0xff] %v7063_v57  ;;  %v4522_v57 = vld [vmem:[#allocation2 + $0x4a] sm:$0x3f] }
 0x1d2   : > { %521 = vst.msk [vmem:[#allocation3 + $0x70] sm:$0xf] %vm506_vm0, %v495_v26 }
 0x1d3   : > { %954 = vst.msk [vmem:[#allocation3 + $0x70] sm:$0xf] %vm939_vm1, %v893_v63 }
 0x1d4   : > { %522 = vst.msk [vmem:[#allocation3 + $0x78] sm:$0xf] %vm506_vm0, %v496_v24 }
 0x1d5   : > { %524 = vst.msk [vmem:[#allocation3 + $0x88] sm:$0xf] %vm506_vm0, %v498_v37 }
 0x1d6   : > { %v5273_v27 = vld.sshfl [vmem:[#allocation1] sm:$0xff pattern:$0x73625140]  ;;  %1742 = vrot.lane.b32.xlu1 %v1687_v33, %s4904_s5  ;;  %526 = vst.msk [vmem:[#allocation3 + $0x98] sm:$0xf] %vm506_vm0, %v500_v38 }
 0x1d7   : > { %1544 = vst [vmem:[#allocation1] ss:$4 sm:$0xff] %v1462_v32  ;;  %v1682_v33 = vpack.c.bf16 %v5273_v27, %v5273_v27 }
 0x1d8   : > { %1545 = vst [vmem:[#allocation1 + $0x1] ss:$4 sm:$0xff] %v1463_v48  ;;  %v1573_v5 = vld.sshfl [vmem:[#allocation1 + $0x20] sm:$0xff pattern:$0x73625140]  ;;  %v493_v48 = vpack.c.bf16 %v4984_v21, %v4984_v21  ;;  %v497_v21 = vpack.c.bf16 %v4992_v45, %v4992_v45  ;;  %v5352_v45 = vld [vmem:[#allocation2 + $0x80] sm:$0xff] }
 0x1d9   : > { %1546 = vst [vmem:[#allocation1 + $0x2] ss:$4 sm:$0xff] %v1464_v18  ;;  %v1689_v60 = vpack.c.bf16 %v1573_v5, %v1573_v5  ;;  %v889_v18 = vpop.permute.xlu0 %888  ;;  %v7062_v30 = vrot.slane %v5352_v45, 2  ;;  %1732 = vrot.lane.b32.xlu2 %v1682_v33, %s4904_s5  ;;  %v7017_v29 = vrot.slane %v5352_v45, 6 }
 0x1da   : > { %1547 = vst [vmem:[#allocation1 + $0x3] ss:$4 sm:$0xff] %v4462_v35  ;;  %v1474_v35 = vrot.slane %v5251_v14, 6  ;;  %v4472_v14 = vld [vmem:[#allocation2 + $0x78] sm:$0x3f] }
 0x1db   : > { %1578 = vst [vmem:[#allocation1 + $0x20] ss:$4 sm:$0xff] %v1482_v39  ;;  %v1490_v11 = vrot.slane %v4472_v14, 2  ;;  %1746 = vrot.lane.b32.xlu0 %v1689_v60, %s4904_s5  ;;  %v1491_v31 = vrot.slane %v4472_v14, 4  ;;  %v502_v60 = vpack.c.bf16 %v4994_v52, %v4994_v52  ;;  %v7048_v52 = vrot.slane %v5434_v17, 2 }
 0x1dc   : > { %1579 = vst [vmem:[#allocation1 + $0x21] ss:$4 sm:$0xff] %v1483_v44  ;;  %v5402_v44 = vld [vmem:[#allocation2 + $0xa0] sm:$0xff] }
 0x1dd   : > { %1580 = vst [vmem:[#allocation1 + $0x22] ss:$4 sm:$0xff] %v1484_v7  ;;  %v4476_v7 = vld [vmem:[#allocation2 + $0x98] sm:$0x3f] }
 0x1de   : > { %519 = vst.msk [vmem:[#allocation3 + $0x60] sm:$0xf] %vm506_vm0, %v493_v48 }
 0x1df   : > { %952 = vst.msk [vmem:[#allocation3 + $0x60] sm:$0xf] %vm939_vm1, %v889_v18 }
 0x1e0   : > { %523 = vst.msk [vmem:[#allocation3 + $0x80] sm:$0xf] %vm506_vm0, %v497_v21 }
 0x1e1   : > { %v1552_v42 = vld.sshfl [vmem:[#allocation1] sm:$0xff pattern:$0x73625140]  ;;  %956 = vst.msk [vmem:[#allocation3 + $0x80] sm:$0xf] %vm939_vm1, %v897_v23  ;;  %v5456_v23 = vld [vmem:[#allocation2 + $0xc0] sm:$0xff] }
 0x1e2   : > { %1554 = vst [vmem:[#allocation1] ss:$4 sm:$0xff] %v1468_v8  ;;  %v1684_v59 = vpack.c.bf16 %v1552_v42, %v1552_v42  ;;  %v7019_v8 = vrot.slane %v5352_v45, 4  ;;  %v899_v42 = vpop.permute.xlu2 %898 }
 0x1e3   : > { %1555 = vst [vmem:[#allocation1 + $0x1] ss:$4 sm:$0xff] %v1469_v50  ;;  %v895_v50 = vpop.permute.xlu0 %894 }
 0x1e4   : > { %1556 = vst [vmem:[#allocation1 + $0x2] ss:$4 sm:$0xff] %v5249_v61  ;;  %1736 = vrot.lane.b32.xlu1 %v1684_v59, %s4904_s5  ;;  %v4470_v61 = vld [vmem:[#allocation2 + $0x68] sm:$0x3f]  ;;  %v903_v59 = vpop.permute.xlu1 %902 }
 0x1e5   : > { %1557 = vst [vmem:[#allocation1 + $0x3] ss:$4 sm:$0xff] %v1470_v41  ;;  %v1485_v4 = vrot.slane %v4470_v61, 2  ;;  %v1486_v22 = vrot.slane %v4470_v61, 4  ;;  %v5374_v41 = vld [vmem:[#allocation2 + $0x90] sm:$0xff] }
 0x1e6   : > { %1581 = vst [vmem:[#allocation1 + $0x23] ss:$4 sm:$0xff] %v4470_v61  ;;  %v7061_v49 = vrot.slane %v5374_v41, 2  ;;  %v7057_v55 = vrot.slane %v5374_v41, 4  ;;  %v7051_v61 = vrot.slane %v5402_v44, 4 }
 0x1e7   : > { %955 = vst.msk [vmem:[#allocation3 + $0x78] sm:$0xf] %vm939_vm1, %v895_v50  ;;  %v7043_v50 = vrot.slane %v5456_v23, 4 }
 0x1e8   : > { %957 = vst.msk [vmem:[#allocation3 + $0x88] sm:$0xf] %vm939_vm1, %v899_v42  ;;  %v4482_v42 = vld [vmem:[#allocation2 + $0xc8] sm:$0x3f] }
 0x1e9   : > { %959 = vst.msk [vmem:[#allocation3 + $0x98] sm:$0xf] %vm939_vm1, %v903_v59  ;;  %v7042_v59 = vrot.slane %v5456_v23, 6 }
 0x1ea   : > { %528 = vst.msk [vmem:[#allocation3 + $0xa8] sm:$0xf] %vm506_vm0, %v502_v60 }
 0x1eb   : > { %v901_v5 = vpop.permute.xlu0 %900 }
 0x1ec   : > { %v5314_v0 = vld.sshfl [vmem:[#allocation1] sm:$0xff pattern:$0x73625140] }
 0x1ed   : > { %1564 = vst [vmem:[#allocation1] ss:$4 sm:$0xff] %v1474_v35  ;;  %v5322_v15 = vld.sshfl [vmem:[#allocation1 + $0x20] sm:$0xff pattern:$0x73625140]  ;;  %v1686_v34 = vpack.c.bf16 %v5314_v0, %v5314_v0  ;;  %v1496_v0 = vrot.slane %v4474_v40, 4 }
 0x1ee   : > { %1565 = vst [vmem:[#allocation1 + $0x1] ss:$4 sm:$0xff] %v4466_v3  ;;  %v7016_v3 = vrot.slane %v5374_v41, 6  ;;  %v1691_v39 = vpack.c.bf16 %v5322_v15, %v5322_v15 }
 0x1ef   : > { %1566 = vst [vmem:[#allocation1 + $0x2] ss:$4 sm:$0xff] %v1475_v62  ;;  %1740 = vrot.lane.b32.xlu0 %v1686_v34, %s4904_s5  ;;  %v1495_v62 = vrot.slane %v4474_v40, 2  ;;  %v4480_v34 = vld [vmem:[#allocation2 + $0xb8] sm:$0x3f] }
 0x1f0   : > { %1567 = vst [vmem:[#allocation1 + $0x3] ss:$4 sm:$0xff] %v1476_v19  ;;  %v501_v19 = vpack.c.bf16 %v5000_v6, %v5000_v6  ;;  %1750 = vrot.lane.b32.xlu2 %v1691_v39, %s4904_s5 }
 0x1f1   : > { %1588 = vst [vmem:[#allocation1 + $0x20] ss:$4 sm:$0xff] %v7022_v47 }
 0x1f2   : > { %1589 = vst [vmem:[#allocation1 + $0x21] ss:$4 sm:$0xff] %v7020_v13 }
 0x1f3   : > { %1590 = vst [vmem:[#allocation1 + $0x22] ss:$4 sm:$0xff] %v4472_v14  ;;  %v907_v21 = vpop.permute.xlu0 %906 }
 0x1f4   : > { %1591 = vst [vmem:[#allocation1 + $0x23] ss:$4 sm:$0xff] %v1490_v11  ;;  %v7049_v11 = vrot.slane %v5402_v44, 6 }
 0x1f5   : > { %527 = vst.msk [vmem:[#allocation3 + $0xa0] sm:$0xf] %vm506_vm0, %v501_v19 }
 0x1f6   : > { %961 = vst.msk [vmem:[#allocation3 + $0xa8] sm:$0xf] %vm939_vm1, %v907_v21 }
 0x1f7   : > { %v5318_v12 = vld.sshfl [vmem:[#allocation1] sm:$0xff pattern:$0x73625140] }
 0x1f8   : > { %1574 = vst [vmem:[#allocation1] ss:$4 sm:$0xff] %v4468_v10  ;;  %v7056_v10 = vrot.slane %v5402_v44, 2 }
 0x1f9   : > { %1575 = vst [vmem:[#allocation1 + $0x1] ss:$4 sm:$0xff] %v1480_v9  ;;  %v1500_v9 = vrot.slane %v4476_v7, 2 }
 0x1fa   : > { %1576 = vst [vmem:[#allocation1 + $0x2] ss:$4 sm:$0xff] %v1481_v28  ;;  %v1501_v28 = vrot.slane %v4476_v7, 4 }
 0x1fb   : > { %1577 = vst [vmem:[#allocation1 + $0x3] ss:$4 sm:$0xff] %v4469_v56  ;;  %v1593_v54 = vld.sshfl [vmem:[#allocation1 + $0x20] sm:$0xff pattern:$0x73625140]  ;;  %v499_v56 = vpack.c.bf16 %v4996_v58, %v4996_v58  ;;  %v905_v58 = vpop.permute.xlu2 %904 }
 0x1fc   : > { %v1693_v25 = vpack.c.bf16 %v1593_v54, %v1593_v54  ;;  %1598 = vst [vmem:[#allocation1 + $0x20] ss:$4 sm:$0xff] %v7017_v29 }
 0x1fd   : > { %1599 = vst [vmem:[#allocation1 + $0x21] ss:$4 sm:$0xff] %v4474_v40  ;;  %v1515_v40 = vrot.slane %v4482_v42, 2 }
 0x1fe   : > { %1754 = vrot.lane.b32.xlu1 %v1693_v25, %s4904_s5  ;;  %1600 = vst [vmem:[#allocation1 + $0x22] ss:$4 sm:$0xff] %v1495_v62  ;;  %v7044_v25 = vrot.slane %v5434_v17, 6  ;;  %v5468_v62 = vld [vmem:[#allocation2 + $0xd0] sm:$0xff] }
 0x1ff   : > { %1601 = vst [vmem:[#allocation1 + $0x23] ss:$4 sm:$0xff] %v1496_v0  ;;  %v1516_v0 = vrot.slane %v4482_v42, 4  ;;  %v7014_v39 = vrot.slane %v5468_v62, 2 }
 0x200   : > { %525 = vst.msk [vmem:[#allocation3 + $0x90] sm:$0xf] %vm506_vm0, %v499_v56 }
 0x201   : > { %958 = vst.msk [vmem:[#allocation3 + $0x90] sm:$0xf] %vm939_vm1, %v901_v5 }
 0x202   : > { %v1582_v32 = vld.sshfl [vmem:[#allocation1] sm:$0xff pattern:$0x73625140]  ;;  %960 = vst.msk [vmem:[#allocation3 + $0xa0] sm:$0xf] %vm939_vm1, %v905_v58  ;;  %v7039_v58 = vrot.slane %v5468_v62, 6 }
 0x203   : > { %1584 = vst [vmem:[#allocation1] ss:$4 sm:$0xff] %v1485_v4  ;;  %v1690_v27 = vpack.c.bf16 %v1582_v32, %v1582_v32  ;;  %v1688_v4 = vpack.c.bf16 %v5318_v12, %v5318_v12  ;;  %v4478_v32 = vld [vmem:[#allocation2 + $0xa8] sm:$0x3f]  ;;  %v909_v12 = vpop.permute.xlu1 %908  ;;  %v911_v24 = vpop.permute.xlu2 %910 }
 0x204   : > { %1585 = vst [vmem:[#allocation1 + $0x1] ss:$4 sm:$0xff] %v1486_v22  ;;  %v503_v22 = vpack.c.bf16 %v5006_v20, %v5006_v20  ;;  %v504_v20 = vpack.c.bf16 %v4998_v1, %v4998_v1  ;;  %v1505_v26 = vrot.slane %v4478_v32, 2  ;;  %v1506_v18 = vrot.slane %v4478_v32, 4 }
 0x205   : > { %1586 = vst [vmem:[#allocation1 + $0x2] ss:$4 sm:$0xff] %v5316_v2  ;;  %1744 = vrot.lane.b32.xlu2 %v1688_v4, %s4904_s5  ;;  %v7046_v1 = vrot.slane %v5434_v17, 4  ;;  %v4485_v4 = vld [vmem:[#allocation2 + $0xe0] sm:$0xff] }
 0x206   : > { %1587 = vst [vmem:[#allocation1 + $0x3] ss:$4 sm:$0xff] %v7023_v53  ;;  %1748 = vrot.lane.b32.xlu1 %v1690_v27, %s4904_s5  ;;  %v1603_v14 = vld.sshfl [vmem:[#allocation1 + $0x20] sm:$0xff pattern:$0x73625140]  ;;  %v7015_v27 = vrot.slane %v5456_v23, 2 }
 0x207   : > { %1608 = vst [vmem:[#allocation1 + $0x20] ss:$4 sm:$0xff] %v4476_v7  ;;  %v1695_v15 = vpack.c.bf16 %v1603_v14, %v1603_v14  ;;  %v7013_v7 = vrot.slane %v5468_v62, 4  ;;  %v1522_v60 = vrot.slane %v4485_v4, 2 }
 0x208   : > { %1609 = vst [vmem:[#allocation1 + $0x21] ss:$4 sm:$0xff] %v1500_v9 }
 0x209   : > { %1610 = vst [vmem:[#allocation1 + $0x22] ss:$4 sm:$0xff] %v1501_v28  ;;  %1758 = vrot.lane.b32.xlu0 %v1695_v15, %s4904_s5  ;;  %v4484_v28 = vld [vmem:[#allocation2 + $0xd8] sm:$0x3f] }
 0x20a   : > { %1611 = vst [vmem:[#allocation1 + $0x23] ss:$4 sm:$0xff] %v5402_v44  ;;  %v1520_v14 = vrot.slane %v4484_v28, 2 }
 0x20b   : > { %529 = vst.msk [vmem:[#allocation3 + $0xb0] sm:$0xf] %vm506_vm0, %v503_v22  ;;  %v1304_v33 = vpop.permute.xlu1 %1303  ;;  %v1300_v5 = vpop.permute.xlu2 %1299  ;;  %v1521_v22 = vrot.slane %v4484_v28, 4 }
 0x20c   : > { %962 = vst.msk [vmem:[#allocation3 + $0xb0] sm:$0xf] %vm939_vm1, %v909_v12  ;;  %v1523_v12 = vrot.slane %v4485_v4, 4 }
 0x20d   : > { %v5359_v16 = vld.sshfl [vmem:[#allocation1] sm:$0xff pattern:$0x73625140]  ;;  %530 = vst.msk [vmem:[#allocation3 + $0xb8] sm:$0xf] %vm506_vm0, %v504_v20 }
 0x20e   : > { %1594 = vst [vmem:[#allocation1] ss:$4 sm:$0xff] %v1491_v31  ;;  %v1692_v48 = vpack.c.bf16 %v5359_v16, %v5359_v16  ;;  %v1510_v31 = vrot.slane %v4480_v34, 2  ;;  %v1511_v16 = vrot.slane %v4480_v34, 4 }
 0x20f   : > { %1595 = vst [vmem:[#allocation1 + $0x1] ss:$4 sm:$0xff] %v5352_v45 }
 0x210   : > { %1596 = vst [vmem:[#allocation1 + $0x2] ss:$4 sm:$0xff] %v7062_v30 }
 0x211   : > { %1597 = vst [vmem:[#allocation1 + $0x3] ss:$4 sm:$0xff] %v7019_v8  ;;  %v5440_v54 = vld.sshfl [vmem:[#allocation1 + $0x20] sm:$0xff pattern:$0x73625140]  ;;  %1752 = vrot.lane.b32.xlu0 %v1692_v48, %s4904_s5  ;;  %v1524_v48 = vrot.slane %v4485_v4, 6 }
 0x212   : > { %1618 = vst [vmem:[#allocation1 + $0x20] ss:$4 sm:$0xff] %v1505_v26  ;;  %v4486_v26 = vld [vmem:[#allocation2 + $0xe8] sm:$0x3f] }
 0x213   : > { %1619 = vst [vmem:[#allocation1 + $0x21] ss:$4 sm:$0xff] %v1506_v18  ;;  %v1298_v15 = vpop.permute.xlu1 %1297  ;;  %v1525_v18 = vrot.slane %v4486_v26, 2  ;;  %v1526_v21 = vrot.slane %v4486_v26, 4 }
 0x214   : > { %1620 = vst [vmem:[#allocation1 + $0x22] ss:$4 sm:$0xff] %v5434_v17 }
 0x215   : > { %1621 = vst [vmem:[#allocation1 + $0x23] ss:$4 sm:$0xff] %v7048_v52 }
 0x216   : > { %963 = vst.msk [vmem:[#allocation3 + $0xb8] sm:$0xf] %vm939_vm1, %v911_v24  ;;  %v5496_v24 = vld [vmem:[#allocation2 + $0x21] sm:$0xff]  ;;  %vm3566_vm1 = vcmask 1042304  }
 0x217   : > { %1376 = vst.msk [vmem:[#allocation3 + $0x18] sm:$0xf] %vm1372_vm2, %v1304_v33 }
 0x218   : > { %v5387_v35 = vld.sshfl [vmem:[#allocation1] sm:$0xff pattern:$0x73625140]  ;;  %1374 = vst.msk [vmem:[#allocation3 + $0x8] sm:$0xf] %vm1372_vm2, %v1300_v5  ;;  %v7036_v5 = vrot.slane %v5496_v24, 6 }
 0x219   : > { %1604 = vst [vmem:[#allocation1] ss:$4 sm:$0xff] %v5374_v41 }
 0x21a   : > { %1605 = vst [vmem:[#allocation1 + $0x1] ss:$4 sm:$0xff] %v7061_v49 }
 0x21b   : > { %1606 = vst [vmem:[#allocation1 + $0x2] ss:$4 sm:$0xff] %v7057_v55  ;;  %v5685_v55 = vld [vmem:[#allocation2 + $0x32] sm:$0xff] }
 0x21c   : > { %1607 = vst [vmem:[#allocation1 + $0x3] ss:$4 sm:$0xff] %v7016_v3  ;;  %v1623_v37 = vld.sshfl [vmem:[#allocation1 + $0x20] sm:$0xff pattern:$0x73625140] }
 0x21d   : > { %v1699_v38 = vpack.c.bf16 %v1623_v37, %v1623_v37  ;;  %1628 = vst [vmem:[#allocation1 + $0x20] ss:$4 sm:$0xff] %v1511_v16 }
 0x21e   : > { %1629 = vst [vmem:[#allocation1 + $0x21] ss:$4 sm:$0xff] %v5456_v23 }
 0x21f   : > { %1766 = vrot.lane.b32.xlu1 %v1699_v38, %s4904_s5  ;;  %1630 = vst [vmem:[#allocation1 + $0x22] ss:$4 sm:$0xff] %v7015_v27 }
 0x220   : > { %1631 = vst [vmem:[#allocation1 + $0x23] ss:$4 sm:$0xff] %v7043_v50 }
 0x221   : > { %1373 = vst.msk [vmem:[#allocation3] sm:$0xf] %vm1372_vm2, %v1298_v15 }
 0x222   : > { %7143 = vst [vmem:[#allocation28_spill] sm:$0xff] %v5685_v55 }
 0x223   : > { %v5410_v6 = vld.sshfl [vmem:[#allocation1] sm:$0xff pattern:$0x73625140] }
 0x224   : > { %1614 = vst [vmem:[#allocation1] ss:$4 sm:$0xff] %v7056_v10  ;;  %v1696_v19 = vpack.c.bf16 %v5410_v6, %v5410_v6 }
 0x225   : > { %1615 = vst [vmem:[#allocation1 + $0x1] ss:$4 sm:$0xff] %v7051_v61  ;;  %v5657_v61 = vld [vmem:[#allocation2 + $0x22] sm:$0xff] }
 0x226   : > { %1616 = vst [vmem:[#allocation1 + $0x2] ss:$4 sm:$0xff] %v7049_v11 }
 0x227   : > { %1617 = vst [vmem:[#allocation1 + $0x3] ss:$4 sm:$0xff] %v4478_v32  ;;  %1760 = vrot.lane.b32.xlu1 %v1696_v19, %s4904_s5  ;;  %v1633_v9 = vld.sshfl [vmem:[#allocation1 + $0x20] sm:$0xff pattern:$0x73625140]  ;;  %v7037_v19 = vrot.slane %v5496_v24, 4 }
 0x228   : > { %1638 = vst [vmem:[#allocation1 + $0x20] ss:$4 sm:$0xff] %v5468_v62  ;;  %v1701_v6 = vpack.c.bf16 %v1633_v9, %v1633_v9 }
 0x229   : > { %1639 = vst [vmem:[#allocation1 + $0x21] ss:$4 sm:$0xff] %v7014_v39 }
 0x22a   : > { %1640 = vst [vmem:[#allocation1 + $0x22] ss:$4 sm:$0xff] %v7013_v7  ;;  %1770 = vrot.lane.b32.xlu0 %v1701_v6, %s4904_s5  ;;  %v5516_v6 = vld [vmem:[#allocation2 + $0x31] sm:$0xff] }
 0x22b   : > { %1641 = vst [vmem:[#allocation1 + $0x23] ss:$4 sm:$0xff] %v7039_v58  ;;  %v7034_v15 = vrot.slane %v5516_v6, 6 }
 0x22c   : > { %7140 = vst [vmem:[#allocation25_spill] sm:$0xff] %v5657_v61 }
 0x22e   : > { %v5446_v63 = vld.sshfl [vmem:[#allocation1] sm:$0xff pattern:$0x73625140] }
 0x22f   : > { %1624 = vst [vmem:[#allocation1] ss:$4 sm:$0xff] %v7046_v1 }
 0x230   : > { %1625 = vst [vmem:[#allocation1 + $0x1] ss:$4 sm:$0xff] %v7044_v25 }
 0x231   : > { %1626 = vst [vmem:[#allocation1 + $0x2] ss:$4 sm:$0xff] %v4480_v34 }
 0x232   : > { %1627 = vst [vmem:[#allocation1 + $0x3] ss:$4 sm:$0xff] %v1510_v31  ;;  %v5492_v20 = vld.sshfl [vmem:[#allocation1 + $0x20] sm:$0xff pattern:$0x73625140] }
 0x233   : > { %1648 = vst [vmem:[#allocation1 + $0x20] ss:$4 sm:$0xff] %v1522_v60  ;;  %v4487_v31 = vld [vmem:[#allocation2 + $0x11] sm:$0xff] }
 0x234   : > { %1649 = vst [vmem:[#allocation1 + $0x21] ss:$4 sm:$0xff] %v1523_v12  ;;  %v1890_v37 = vrot.slane %v4487_v31, 2  ;;  %v1892_v38 = vrot.slane %v4487_v31, 6  ;;  %v5530_v12 = vld [vmem:[#allocation2 + $0x41] sm:$0xff] }
 0x235   : > { %1650 = vst [vmem:[#allocation1 + $0x22] ss:$4 sm:$0xff] %v1524_v48  ;;  %v4494_v48 = vld [vmem:[#allocation2 + $0x49] sm:$0x3f] }
 0x236   : > { %1651 = vst [vmem:[#allocation1 + $0x23] ss:$4 sm:$0xff] %v4486_v26  ;;  %v7031_v26 = vrot.slane %v5530_v12, 6 }
 0x239   : > { %v5470_v56 = vld.sshfl [vmem:[#allocation1] sm:$0xff pattern:$0x73625140] }
 0x23a   : > { %1634 = vst [vmem:[#allocation1] ss:$4 sm:$0xff] %v7042_v59  ;;  %v5623_v59 = vld [vmem:[#allocation2 + $0xe1] sm:$0xff] }
 0x23b   : > { %1635 = vst [vmem:[#allocation1 + $0x1] ss:$4 sm:$0xff] %v4482_v42 }
 0x23c   : > { %1636 = vst [vmem:[#allocation1 + $0x2] ss:$4 sm:$0xff] %v1515_v40  ;;  %v1891_v40 = vrot.slane %v4487_v31, 4 }
 0x23d   : > { %1637 = vst [vmem:[#allocation1 + $0x3] ss:$4 sm:$0xff] %v1516_v0  ;;  %v1653_v33 = vld.sshfl [vmem:[#allocation1 + $0x20] sm:$0xff pattern:$0x73625140]  ;;  %v7038_v0 = vrot.slane %v5496_v24, 2 }
 0x23e   : > { %v1705_v16 = vpack.c.bf16 %v1653_v33, %v1653_v33  ;;  %1974 = vst [vmem:[#allocation1 + $0x23] ss:$4 sm:$0xff] %v5496_v24  ;;  %v4496_v33 = vld [vmem:[#allocation2 + $0x59] sm:$0x3f] }
 0x240   : > { %1778 = vrot.lane.b32.xlu1 %v1705_v16, %s4904_s5  ;;  %v1913_v16 = vrot.slane %v4496_v33, 2 }
 0x244   : > { %v5490_v32 = vld.sshfl [vmem:[#allocation1] sm:$0xff pattern:$0x73625140] }
 0x245   : > { %1644 = vst [vmem:[#allocation1] ss:$4 sm:$0xff] %v4484_v28  ;;  %v5511_v28 = vld [vmem:[#allocation2 + $0x29] sm:$0x3f] }
 0x246   : > { %1645 = vst [vmem:[#allocation1 + $0x1] ss:$4 sm:$0xff] %v1520_v14  ;;  %v7035_v14 = vrot.slane %v5516_v6, 4  ;;  %v1898_v50 = vrot.slane %v5511_v28, 2  ;;  %v1899_v25 = vrot.slane %v5511_v28, 4 }
 0x247   : > { %1646 = vst [vmem:[#allocation1 + $0x2] ss:$4 sm:$0xff] %v1521_v22 }
 0x248   : > { %1647 = vst [vmem:[#allocation1 + $0x3] ss:$4 sm:$0xff] %v4485_v4  ;;  %v5520_v4 = vld [vmem:[#allocation2 + $0x39] sm:$0x3f] }
 0x249   : > { %v1903_v22 = vrot.slane %v5520_v4, 2 }
 0x24f   : > { %v5494_v34 = vld.sshfl [vmem:[#allocation1] sm:$0xff pattern:$0x73625140] }
 0x250   : > { %1654 = vst [vmem:[#allocation1] ss:$4 sm:$0xff] %v1525_v18  ;;  %v1908_v18 = vrot.slane %v4494_v48, 2 }
 0x251   : > { %1655 = vst [vmem:[#allocation1 + $0x1] ss:$4 sm:$0xff] %v1526_v21  ;;  %v1909_v21 = vrot.slane %v4494_v48, 4 }
 0x258   : > { %v5500_v42 = vld.sshfl [vmem:[#allocation1] sm:$0xff pattern:$0x73625140] }
 0x259   : > { %1960 = vst [vmem:[#allocation1] ss:$4 sm:$0xff] %v4487_v31 }
 0x25a   : > { %1962 = vst [vmem:[#allocation1 + $0x1] ss:$4 sm:$0xff] %v1890_v37  ;;  %v1914_v37 = vrot.slane %v4496_v33, 4 }
 0x25b   : > { %1966 = vst [vmem:[#allocation1 + $0x3] ss:$4 sm:$0xff] %v1892_v38 }
 0x25c   : > { %1964 = vst [vmem:[#allocation1 + $0x2] ss:$4 sm:$0xff] %v1891_v40  ;;  %v5539_v40 = vld [vmem:[#allocation2 + $0x61] sm:$0xff] }
 0x263   : > { %v5505_v9 = vld.sshfl [vmem:[#allocation1] sm:$0xff pattern:$0x73625140] }
 0x264   : > { %1977 = vst [vmem:[#allocation1] ss:$4 sm:$0xff] %v7038_v0 }
 0x265   : > { %1978 = vst [vmem:[#allocation1 + $0x1] ss:$4 sm:$0xff] %v7037_v19 }
 0x266   : > { %1979 = vst [vmem:[#allocation1 + $0x2] ss:$4 sm:$0xff] %v7036_v5  ;;  %v4510_v5 = vld [vmem:[#allocation2 + $0xc9] sm:$0x3f] }
 0x267   : > { %1980 = vst [vmem:[#allocation1 + $0x3] ss:$4 sm:$0xff] %v5511_v28  ;;  %v1948_v0 = vrot.slane %v4510_v5, 2  ;;  %v1949_v58 = vrot.slane %v4510_v5, 4  ;;  %v1904_v28 = vrot.slane %v5520_v4, 4 }
 0x26e   : > { %v5523_v60 = vld.sshfl [vmem:[#allocation1] sm:$0xff pattern:$0x73625140] }
 0x26f   : > { %1987 = vst [vmem:[#allocation1] ss:$4 sm:$0xff] %v7035_v14  ;;  %v5612_v14 = vld [vmem:[#allocation2 + $0xc1] sm:$0xff] }
 0x270   : > { %1988 = vst [vmem:[#allocation1 + $0x1] ss:$4 sm:$0xff] %v7034_v15  ;;  %v7045_v19 = vrot.slane %v5612_v14, 6 }
 0x271   : > { %1989 = vst [vmem:[#allocation1 + $0x2] ss:$4 sm:$0xff] %v5520_v4 }
 0x272   : > { %1990 = vst [vmem:[#allocation1 + $0x3] ss:$4 sm:$0xff] %v1903_v22  ;;  %v5542_v22 = vld [vmem:[#allocation2 + $0x69] sm:$0x3f] }
 0x273   : > { %v1918_v7 = vrot.slane %v5542_v22, 2  ;;  %7135 = vst [vmem:[#allocation20_spill] sm:$0xff] %v5612_v14 }
 0x279   : > { %v5533_v31 = vld.sshfl [vmem:[#allocation1] sm:$0xff pattern:$0x73625140] }
 0x27a   : > { %1997 = vst [vmem:[#allocation1] ss:$4 sm:$0xff] %v7031_v26 }
 0x27b   : > { %1998 = vst [vmem:[#allocation1 + $0x1] ss:$4 sm:$0xff] %v4494_v48  ;;  %v1919_v48 = vrot.slane %v5542_v22, 4 }
 0x27c   : > { %1999 = vst [vmem:[#allocation1 + $0x2] ss:$4 sm:$0xff] %v1908_v18  ;;  %v5546_v18 = vld [vmem:[#allocation2 + $0x71] sm:$0xff] }
 0x27d   : > { %2000 = vst [vmem:[#allocation1 + $0x3] ss:$4 sm:$0xff] %v1909_v21  ;;  %v7018_v21 = vrot.slane %v5546_v18, 2 }
 0x27e   : > { %7128 = vst [vmem:[#allocation13_spill] sm:$0xff] %v5546_v18 }
 0x284   : > { %v5537_v38 = vld.sshfl [vmem:[#allocation1] sm:$0xff pattern:$0x73625140] }
 0x285   : > { %7127 = vst [vmem:[#allocation12_spill] sm:$0xff] %v5537_v38 }
 0x286   : > { %2007 = vst [vmem:[#allocation1] ss:$4 sm:$0xff] %v4496_v33  ;;  %v5554_v33 = vld [vmem:[#allocation2 + $0x79] sm:$0x3f] }
 0x287   : > { %2008 = vst [vmem:[#allocation1 + $0x1] ss:$4 sm:$0xff] %v1913_v16  ;;  %v1924_v16 = vrot.slane %v5554_v33, 4 }
 0x288   : > { %2009 = vst [vmem:[#allocation1 + $0x2] ss:$4 sm:$0xff] %v1914_v37  ;;  %v5557_v37 = vld [vmem:[#allocation2 + $0x81] sm:$0xff] }
 0x289   : > { %2010 = vst [vmem:[#allocation1 + $0x3] ss:$4 sm:$0xff] %v5539_v40  ;;  %v7024_v27 = vrot.slane %v5557_v37, 2  ;;  %v7021_v3 = vrot.slane %v5557_v37, 4 }
 0x28a   : > { %7130 = vst [vmem:[#allocation15_spill] sm:$0xff] %v5557_v37 }
 0x290   : > { %v5549_v39 = vld.sshfl [vmem:[#allocation1] sm:$0xff pattern:$0x73625140] }
 0x291   : > { %7129 = vst [vmem:[#allocation14_spill] sm:$0xff] %v5549_v39  ;;  %v4524_v39 = vld [vmem:[#allocation2 + $0x5a] sm:$0x3f] }
 0x292   : > { %2017 = vst [vmem:[#allocation1] ss:$4 sm:$0xff] %v1918_v7  ;;  %v5568_v7 = vld [vmem:[#allocation2 + $0x91] sm:$0xff] }
 0x293   : > { %2018 = vst [vmem:[#allocation1 + $0x1] ss:$4 sm:$0xff] %v1919_v48  ;;  %v7027_v48 = vrot.slane %v5568_v7, 2  ;;  %v7026_v8 = vrot.slane %v5568_v7, 6 }
 0x294   : > { %2019 = vst [vmem:[#allocation1 + $0x2] ss:$4 sm:$0xff] %v5546_v18 }
 0x295   : > { %2020 = vst [vmem:[#allocation1 + $0x3] ss:$4 sm:$0xff] %v7018_v21  ;;  %v7025_v21 = vrot.slane %v5568_v7, 4 }
 0x296   : > { %7132 = vst [vmem:[#allocation17_spill] sm:$0xff] %v5568_v7 }
 0x29c   : > { %v5561_v29 = vld.sshfl [vmem:[#allocation1] sm:$0xff pattern:$0x73625140] }
 0x29d   : > { %7131 = vst [vmem:[#allocation16_spill] sm:$0xff] %v5561_v29 }
 0x29e   : > { %2027 = vst [vmem:[#allocation1] ss:$4 sm:$0xff] %v1924_v16  ;;  %v5582_v16 = vld [vmem:[#allocation2 + $0xa1] sm:$0xff] }
 0x29f   : > { %2028 = vst [vmem:[#allocation1 + $0x1] ss:$4 sm:$0xff] %v5557_v37  ;;  %v7032_v47 = vrot.slane %v5582_v16, 4  ;;  %v7033_v53 = vrot.slane %v5582_v16, 6 }
 0x2a0   : > { %2029 = vst [vmem:[#allocation1 + $0x2] ss:$4 sm:$0xff] %v7024_v27 }
 0x2a1   : > { %2030 = vst [vmem:[#allocation1 + $0x3] ss:$4 sm:$0xff] %v7021_v3  ;;  %v7030_v3 = vrot.slane %v5582_v16, 2 }
 0x2a2   : > { %7133 = vst [vmem:[#allocation18_spill] sm:$0xff] %v5582_v16 }
 0x2a8   : > { %v5573_v13 = vld.sshfl [vmem:[#allocation1] sm:$0xff pattern:$0x73625140] }
 0x2a9   : > { %2037 = vst [vmem:[#allocation1] ss:$4 sm:$0xff] %v5568_v7  ;;  %v5840_v7 = vld [vmem:[#allocation2 + $0xc2] sm:$0xff] }
 0x2aa   : > { %2038 = vst [vmem:[#allocation1 + $0x1] ss:$4 sm:$0xff] %v7027_v48 }
 0x2ab   : > { %2039 = vst [vmem:[#allocation1 + $0x2] ss:$4 sm:$0xff] %v7025_v21  ;;  %v5593_v21 = vld [vmem:[#allocation2 + $0xa9] sm:$0x3f] }
 0x2ac   : > { %2040 = vst [vmem:[#allocation1 + $0x3] ss:$4 sm:$0xff] %v7026_v8  ;;  %v5598_v8 = vld [vmem:[#allocation2 + $0xb1] sm:$0xff] }
 0x2ad   : > { %7134 = vst [vmem:[#allocation19_spill] sm:$0xff] %v5598_v8  ;;  %v7040_v48 = vrot.slane %v5598_v8, 4  ;;  %v7041_v46 = vrot.slane %v5598_v8, 6 }
 0x2b3   : > { %v5587_v27 = vld.sshfl [vmem:[#allocation1] sm:$0xff pattern:$0x73625140] }
 0x2b4   : > { %2047 = vst [vmem:[#allocation1] ss:$4 sm:$0xff] %v7030_v3  ;;  %v1943_v3 = vrot.slane %v5602_v51, 2 }
 0x2b5   : > { %2048 = vst [vmem:[#allocation1 + $0x1] ss:$4 sm:$0xff] %v7032_v47  ;;  %v4488_v47 = vld [vmem:[#allocation2 + $0x19] sm:$0x3f] }
 0x2b6   : > { %2049 = vst [vmem:[#allocation1 + $0x2] ss:$4 sm:$0xff] %v7033_v53  ;;  %v1893_v53 = vrot.slane %v4488_v47, 2  ;;  %v1894_v15 = vrot.slane %v4488_v47, 4 }
 0x2b7   : > { %2050 = vst [vmem:[#allocation1 + $0x3] ss:$4 sm:$0xff] %v5593_v21 }
 0x2b8   : > { %1968 = vst [vmem:[#allocation1 + $0x20] ss:$4 sm:$0xff] %v4488_v47 }
 0x2b9   : > { %1970 = vst [vmem:[#allocation1 + $0x21] ss:$4 sm:$0xff] %v1893_v53 }
 0x2ba   : > { %1972 = vst [vmem:[#allocation1 + $0x22] ss:$4 sm:$0xff] %v1894_v15 }
 0x2be   : > { %v5605_v26 = vld.sshfl [vmem:[#allocation1] sm:$0xff pattern:$0x73625140] }
 0x2bf   : > { %2057 = vst [vmem:[#allocation1] ss:$4 sm:$0xff] %v7040_v48 }
 0x2c0   : > { %2058 = vst [vmem:[#allocation1 + $0x1] ss:$4 sm:$0xff] %v7041_v46  ;;  %v4512_v46 = vld [vmem:[#allocation2 + $0xd9] sm:$0x3f] }
 0x2c1   : > { %2059 = vst [vmem:[#allocation1 + $0x2] ss:$4 sm:$0xff] %v5602_v51  ;;  %v1954_v47 = vrot.slane %v4512_v46, 4  ;;  %v5621_v15 = vld.sshfl [vmem:[#allocation1 + $0x20] sm:$0xff pattern:$0x73625140] }
 0x2c2   : > { %2060 = vst [vmem:[#allocation1 + $0x3] ss:$4 sm:$0xff] %v1943_v3  ;;  %v1953_v3 = vrot.slane %v4512_v46, 2 }
 0x2c3   : > { %1983 = vst [vmem:[#allocation1 + $0x22] ss:$4 sm:$0xff] %v5516_v6 }
 0x2c4   : > { %1981 = vst [vmem:[#allocation1 + $0x20] ss:$4 sm:$0xff] %v1898_v50  ;;  %v7052_v50 = vrot.slane %v5530_v12, 4 }
 0x2c5   : > { %1982 = vst [vmem:[#allocation1 + $0x21] ss:$4 sm:$0xff] %v1899_v25 }
 0x2c9   : > { %v5615_v48 = vld.sshfl [vmem:[#allocation1] sm:$0xff pattern:$0x73625140] }
 0x2ca   : > { %7136 = vst [vmem:[#allocation21_spill] sm:$0xff] %v5615_v48  ;;  %v5854_v48 = vld [vmem:[#allocation2 + $0xe2] sm:$0xff] }
 0x2cb   : > { %2067 = vst [vmem:[#allocation1] ss:$4 sm:$0xff] %v7045_v19  ;;  %v4515_v19 = vld [vmem:[#allocation2 + $0x12] sm:$0xff] }
 0x2cc   : > { %2068 = vst [vmem:[#allocation1 + $0x1] ss:$4 sm:$0xff] %v4510_v5  ;;  %v2323_v25 = vrot.slane %v4515_v19, 2 }
 0x2cd   : > { %2069 = vst [vmem:[#allocation1 + $0x2] ss:$4 sm:$0xff] %v1948_v0  ;;  %v5630_v0 = vld [vmem:[#allocation2 + $0xe9] sm:$0x3f] }
 0x2ce   : > { %2070 = vst [vmem:[#allocation1 + $0x3] ss:$4 sm:$0xff] %v1949_v58  ;;  %v7047_v58 = vrot.slane %v5516_v6, 2  ;;  %v1959_v5 = vrot.slane %v5630_v0, 4 }
 0x2d0   : > { %1984 = vst [vmem:[#allocation1 + $0x23] ss:$4 sm:$0xff] %v7047_v58  ;;  %v2324_v58 = vrot.slane %v4515_v19, 4 }
 0x2d5   : > { %v5619_v53 = vld.sshfl [vmem:[#allocation1] sm:$0xff pattern:$0x73625140] }
 0x2d6   : > { %7137 = vst [vmem:[#allocation22_spill] sm:$0xff] %v5619_v53 }
 0x2d7   : > { %2077 = vst [vmem:[#allocation1] ss:$4 sm:$0xff] %v4512_v46  ;;  %v1958_v46 = vrot.slane %v5630_v0, 2  ;;  %v5641_v1 = vld.sshfl [vmem:[#allocation1 + $0x20] sm:$0xff pattern:$0x73625140] }
 0x2d8   : > { %2078 = vst [vmem:[#allocation1 + $0x1] ss:$4 sm:$0xff] %v1953_v3 }
 0x2d9   : > { %2079 = vst [vmem:[#allocation1 + $0x2] ss:$4 sm:$0xff] %v1954_v47  ;;  %v7050_v47 = vrot.slane %v5530_v12, 2 }
 0x2da   : > { %2080 = vst [vmem:[#allocation1 + $0x3] ss:$4 sm:$0xff] %v5623_v59 }
 0x2db   : > { %1991 = vst [vmem:[#allocation1 + $0x20] ss:$4 sm:$0xff] %v1904_v28 }
 0x2dc   : > { %1992 = vst [vmem:[#allocation1 + $0x21] ss:$4 sm:$0xff] %v5530_v12 }
 0x2dd   : > { %1993 = vst [vmem:[#allocation1 + $0x22] ss:$4 sm:$0xff] %v7050_v47 }
 0x2de   : > { %1994 = vst [vmem:[#allocation1 + $0x23] ss:$4 sm:$0xff] %v7052_v50  ;;  %v7059_v50 = vrot.slane %v5657_v61, 2 }
 0x2e1   : > { %v5636_v3 = vld.sshfl [vmem:[#allocation1] sm:$0xff pattern:$0x73625140] }
 0x2e2   : > { %7138 = vst [vmem:[#allocation23_spill] sm:$0xff] %v5636_v3 }
 0x2e3   : > { %2087 = vst [vmem:[#allocation1] ss:$4 sm:$0xff] %v1958_v46  ;;  %v2325_v46 = vrot.slane %v4515_v19, 6 }
 0x2e4   : > { %2088 = vst [vmem:[#allocation1 + $0x1] ss:$4 sm:$0xff] %v1959_v5  ;;  %v5650_v5 = vld [vmem:[#allocation2 + $0x51] sm:$0xff] }
 0x2e5   : > { %v7054_v28 = vrot.slane %v5650_v5, 2  ;;  %v7053_v52 = vrot.slane %v5650_v5, 4  ;;  %v7055_v11 = vrot.slane %v5650_v5, 6  ;;  %v5655_v47 = vld.sshfl [vmem:[#allocation1 + $0x20] sm:$0xff pattern:$0x73625140] }
 0x2e6   : > { %2001 = vst [vmem:[#allocation1 + $0x20] ss:$4 sm:$0xff] %v5650_v5 }
 0x2e7   : > { %2002 = vst [vmem:[#allocation1 + $0x21] ss:$4 sm:$0xff] %v7054_v28  ;;  %v1916_v28 = vrot.slane %v5539_v40, 4 }
 0x2e8   : > { %2003 = vst [vmem:[#allocation1 + $0x22] ss:$4 sm:$0xff] %v7053_v52  ;;  %v1915_v52 = vrot.slane %v5539_v40, 2 }
 0x2e9   : > { %2004 = vst [vmem:[#allocation1 + $0x23] ss:$4 sm:$0xff] %v7055_v11  ;;  %v1917_v11 = vrot.slane %v5539_v40, 6  ;;  %v1923_v40 = vrot.slane %v5554_v33, 2 }
 0x2eb   : > { %v5648_v4 = vld.sshfl [vmem:[#allocation1] sm:$0xff pattern:$0x73625140] }
 0x2ec   : > { %7139 = vst [vmem:[#allocation24_spill] sm:$0xff] %v5648_v4  ;;  %v4502_v4 = vld [vmem:[#allocation2 + $0x89] sm:$0x3f] }
 0x2ed   : > { %2393 = vst [vmem:[#allocation1] ss:$4 sm:$0xff] %v4515_v19  ;;  %v7058_v19 = vrot.slane %v5657_v61, 4  ;;  %v1929_v3 = vrot.slane %v4502_v4, 4 }
 0x2ee   : > { %2395 = vst [vmem:[#allocation1 + $0x1] ss:$4 sm:$0xff] %v2323_v25 }
 0x2ef   : > { %2397 = vst [vmem:[#allocation1 + $0x2] ss:$4 sm:$0xff] %v2324_v58  ;;  %v7060_v58 = vrot.slane %v5657_v61, 6 }
 0x2f0   : > { %2399 = vst [vmem:[#allocation1 + $0x3] ss:$4 sm:$0xff] %v2325_v46  ;;  %v5675_v46 = vld [vmem:[#allocation2 + $0x2a] sm:$0x3f] }
 0x2f1   : > { %v5683_v10 = vld.sshfl [vmem:[#allocation1 + $0x20] sm:$0xff pattern:$0x73625140] }
 0x2f2   : > { %7142 = vst [vmem:[#allocation27_spill] sm:$0xff] %v5683_v10  ;;  %v5766_v10 = vld [vmem:[#allocation2 + $0x92] sm:$0xff] }
 0x2f3   : > { %2011 = vst [vmem:[#allocation1 + $0x20] ss:$4 sm:$0xff] %v1915_v52  ;;  %v7066_v52 = vrot.slane %v5546_v18, 4 }
 0x2f4   : > { %2012 = vst [vmem:[#allocation1 + $0x21] ss:$4 sm:$0xff] %v1916_v28  ;;  %v5705_v28 = vld [vmem:[#allocation2 + $0x42] sm:$0xff] }
 0x2f5   : > { %2013 = vst [vmem:[#allocation1 + $0x22] ss:$4 sm:$0xff] %v1917_v11  ;;  %v7067_v11 = vrot.slane %v5546_v18, 6 }
 0x2f6   : > { %2014 = vst [vmem:[#allocation1 + $0x23] ss:$4 sm:$0xff] %v5542_v22 }
 0x2f7   : > { %v5669_v25 = vld.sshfl [vmem:[#allocation1] sm:$0xff pattern:$0x73625140]  ;;  %7146 = vst [vmem:[#allocation31_spill] sm:$0xff] %v5705_v28 }
 0x2f8   : > { %7141 = vst [vmem:[#allocation26_spill] sm:$0xff] %v5669_v25  ;;  %v5813_v25 = vld [vmem:[#allocation2 + $0xaa] sm:$0x3f] }
 0x2f9   : > { %2410 = vst [vmem:[#allocation1] ss:$4 sm:$0xff] %v7059_v50  ;;  %v7065_v50 = vrot.slane %v5685_v55, 6 }
 0x2fa   : > { %2411 = vst [vmem:[#allocation1 + $0x1] ss:$4 sm:$0xff] %v7058_v19  ;;  %v7064_v19 = vrot.slane %v5685_v55, 4 }
 0x2fb   : > { %2412 = vst [vmem:[#allocation1 + $0x2] ss:$4 sm:$0xff] %v7060_v58  ;;  %v5689_v58 = vld [vmem:[#allocation2 + $0x3a] sm:$0x3f] }
 0x2fc   : > { %2413 = vst [vmem:[#allocation1 + $0x3] ss:$4 sm:$0xff] %v5675_v46  ;;  %v2336_v49 = vrot.slane %v5689_v58, 2 }
 0x2fd   : > { %v5703_v22 = vld.sshfl [vmem:[#allocation1 + $0x20] sm:$0xff pattern:$0x73625140]  ;;  %7152 = vst [vmem:[#allocation37_spill] sm:$0xff] %v5766_v10 }
 0x2fe   : > { %7145 = vst [vmem:[#allocation30_spill] sm:$0xff] %v5703_v22  ;;  %v1928_v22 = vrot.slane %v4502_v4, 2 }
 0x2ff   : > { %2021 = vst [vmem:[#allocation1 + $0x20] ss:$4 sm:$0xff] %v7066_v52  ;;  %v7069_v52 = vrot.slane %v5557_v37, 6 }
 0x300   : > { %2022 = vst [vmem:[#allocation1 + $0x21] ss:$4 sm:$0xff] %v7067_v11 }
 0x301   : > { %2023 = vst [vmem:[#allocation1 + $0x22] ss:$4 sm:$0xff] %v5554_v33  ;;  %v2346_v33 = vrot.slane %v4524_v39, 2 }
 0x302   : > { %2024 = vst [vmem:[#allocation1 + $0x23] ss:$4 sm:$0xff] %v1923_v40  ;;  %v2347_v40 = vrot.slane %v4524_v39, 4 }
 0x303   : > { %v5693_v30 = vld.sshfl [vmem:[#allocation1] sm:$0xff pattern:$0x73625140] }
 0x304   : > { %7144 = vst [vmem:[#allocation29_spill] sm:$0xff] %v5693_v30 }
 0x305   : > { %2420 = vst [vmem:[#allocation1] ss:$4 sm:$0xff] %v7064_v19  ;;  %v7068_v19 = vrot.slane %v5705_v28, 6 }
 0x306   : > { %2421 = vst [vmem:[#allocation1 + $0x1] ss:$4 sm:$0xff] %v7065_v50  ;;  %v2342_v50 = vrot.slane %v4522_v57, 4 }
 0x307   : > { %2422 = vst [vmem:[#allocation1 + $0x2] ss:$4 sm:$0xff] %v5689_v58 }
 0x308   : > { %2423 = vst [vmem:[#allocation1 + $0x3] ss:$4 sm:$0xff] %v2336_v49  ;;  %v2341_v49 = vrot.slane %v4522_v57, 2 }
 0x309   : > { %v5718_v11 = vld.sshfl [vmem:[#allocation1 + $0x20] sm:$0xff pattern:$0x73625140] }
 0x30a   : > { %7148 = vst [vmem:[#allocation33_spill] sm:$0xff] %v5718_v11 }
 0x30b   : > { %2031 = vst [vmem:[#allocation1 + $0x20] ss:$4 sm:$0xff] %v7069_v52  ;;  %v5729_v52 = vld [vmem:[#allocation2 + $0x6a] sm:$0x3f] }
 0x30c   : > { %2032 = vst [vmem:[#allocation1 + $0x21] ss:$4 sm:$0xff] %v4502_v4  ;;  %v2351_v4 = vrot.slane %v5729_v52, 2 }
 0x30d   : > { %2033 = vst [vmem:[#allocation1 + $0x22] ss:$4 sm:$0xff] %v1928_v22 }
 0x30e   : > { %2034 = vst [vmem:[#allocation1 + $0x23] ss:$4 sm:$0xff] %v1929_v3  ;;  %v2352_v3 = vrot.slane %v5729_v52, 4 }
 0x30f   : > { %v5713_v29 = vld.sshfl [vmem:[#allocation1] sm:$0xff pattern:$0x73625140] }
 0x310   : > { %7147 = vst [vmem:[#allocation32_spill] sm:$0xff] %v5713_v29 }
 0x311   : > { %2430 = vst [vmem:[#allocation1] ss:$4 sm:$0xff] %v7068_v19 }
 0x312   : > { %2431 = vst [vmem:[#allocation1 + $0x1] ss:$4 sm:$0xff] %v4522_v57  ;;  %v4504_v57 = vld [vmem:[#allocation2 + $0x99] sm:$0x3f] }
 0x313   : > { %2432 = vst [vmem:[#allocation1 + $0x2] ss:$4 sm:$0xff] %v2341_v49  ;;  %v5724_v49 = vld [vmem:[#allocation2 + $0x62] sm:$0xff]  ;;  %v1934_v11 = vrot.slane %v4504_v57, 4 }
 0x314   : > { %2433 = vst [vmem:[#allocation1 + $0x3] ss:$4 sm:$0xff] %v2342_v50  ;;  %v1933_v50 = vrot.slane %v4504_v57, 2 }
 0x315   : > { %v5727_v38 = vld.sshfl [vmem:[#allocation1 + $0x20] sm:$0xff pattern:$0x73625140] }
 0x316   : > { %2041 = vst [vmem:[#allocation1 + $0x20] ss:$4 sm:$0xff] %v4504_v57  ;;  %v1939_v57 = vrot.slane %v5593_v21, 4 }
 0x317   : > { %2042 = vst [vmem:[#allocation1 + $0x21] ss:$4 sm:$0xff] %v1933_v50 }
 0x318   : > { %2043 = vst [vmem:[#allocation1 + $0x22] ss:$4 sm:$0xff] %v1934_v11  ;;  %v7071_v11 = vrot.slane %v5598_v8, 2 }
 0x319   : > { %2044 = vst [vmem:[#allocation1 + $0x23] ss:$4 sm:$0xff] %v5582_v16 }
 0x31b   : > { %v5722_v19 = vld.sshfl [vmem:[#allocation1] sm:$0xff pattern:$0x73625140] }
 0x31c   : > { %7149 = vst [vmem:[#allocation34_spill] sm:$0xff] %v5722_v19  ;;  %v5747_v19 = vld [vmem:[#allocation2 + $0x7a] sm:$0x3f] }
 0x31d   : > { %2440 = vst [vmem:[#allocation1] ss:$4 sm:$0xff] %v4524_v39  ;;  %v5733_v39 = vld [vmem:[#allocation2 + $0x72] sm:$0xff] }
 0x31e   : > { %2441 = vst [vmem:[#allocation1 + $0x1] ss:$4 sm:$0xff] %v2346_v33  ;;  %v7070_v22 = vrot.slane %v5733_v39, 2 }
 0x31f   : > { %2442 = vst [vmem:[#allocation1 + $0x2] ss:$4 sm:$0xff] %v2347_v40  ;;  %v1938_v40 = vrot.slane %v5593_v21, 2 }
 0x320   : > { %2443 = vst [vmem:[#allocation1 + $0x3] ss:$4 sm:$0xff] %v5724_v49  ;;  %v5745_v50 = vld.sshfl [vmem:[#allocation1 + $0x20] sm:$0xff pattern:$0x73625140] }
 0x321   : > { %2051 = vst [vmem:[#allocation1 + $0x20] ss:$4 sm:$0xff] %v1938_v40  ;;  %v1944_v40 = vrot.slane %v5602_v51, 4  ;;  %v7079_v51 = vrot.slane %v5766_v10, 4 }
 0x322   : > { %2052 = vst [vmem:[#allocation1 + $0x21] ss:$4 sm:$0xff] %v1939_v57  ;;  %v7074_v57 = vrot.slane %v5612_v14, 2 }
 0x323   : > { %2053 = vst [vmem:[#allocation1 + $0x22] ss:$4 sm:$0xff] %v5598_v8 }
 0x324   : > { %2054 = vst [vmem:[#allocation1 + $0x23] ss:$4 sm:$0xff] %v7071_v11  ;;  %v7075_v11 = vrot.slane %v5612_v14, 4 }
 0x327   : > { %v5737_v33 = vld.sshfl [vmem:[#allocation1] sm:$0xff pattern:$0x73625140] }
 0x328   : > { %7150 = vst [vmem:[#allocation35_spill] sm:$0xff] %v5737_v33  ;;  %v2357_v33 = vrot.slane %v5747_v19, 4 }
 0x329   : > { %2450 = vst [vmem:[#allocation1] ss:$4 sm:$0xff] %v2351_v4  ;;  %v5750_v4 = vld [vmem:[#allocation2 + $0x82] sm:$0xff] }
 0x32a   : > { %2451 = vst [vmem:[#allocation1 + $0x1] ss:$4 sm:$0xff] %v2352_v3  ;;  %v7073_v3 = vrot.slane %v5750_v4, 2  ;;  %v7072_v21 = vrot.slane %v5750_v4, 4 }
 0x32b   : > { %2452 = vst [vmem:[#allocation1 + $0x2] ss:$4 sm:$0xff] %v5733_v39  ;;  %v5769_v29 = vld.sshfl [vmem:[#allocation1 + $0x20] sm:$0xff pattern:$0x73625140] }
 0x32c   : > { %2453 = vst [vmem:[#allocation1 + $0x3] ss:$4 sm:$0xff] %v7070_v22 }
 0x32d   : > { %2061 = vst [vmem:[#allocation1 + $0x20] ss:$4 sm:$0xff] %v1944_v40 }
 0x32e   : > { %2062 = vst [vmem:[#allocation1 + $0x21] ss:$4 sm:$0xff] %v5612_v14  ;;  %v5795_v14 = vld [vmem:[#allocation2 + $0xa2] sm:$0xff] }
 0x32f   : > { %2063 = vst [vmem:[#allocation1 + $0x22] ss:$4 sm:$0xff] %v7074_v57 }
 0x330   : > { %2064 = vst [vmem:[#allocation1 + $0x23] ss:$4 sm:$0xff] %v7075_v11 }
 0x333   : > { %v5757_v22 = vld.sshfl [vmem:[#allocation1] sm:$0xff pattern:$0x73625140] }
 0x334   : > { %7151 = vst [vmem:[#allocation36_spill] sm:$0xff] %v5757_v22  ;;  %v5782_v22 = vld [vmem:[#allocation2 + $0xd1] sm:$0xff] }
 0x335   : > { %2460 = vst [vmem:[#allocation1] ss:$4 sm:$0xff] %v2357_v33  ;;  %v7078_v33 = vrot.slane %v5766_v10, 2  ;;  %v7084_v40 = vrot.slane %v5782_v22, 2  ;;  %v7083_v57 = vrot.slane %v5782_v22, 4  ;;  %v7085_v11 = vrot.slane %v5782_v22, 6 }
 0x336   : > { %2461 = vst [vmem:[#allocation1 + $0x1] ss:$4 sm:$0xff] %v5750_v4 }
 0x337   : > { %2462 = vst [vmem:[#allocation1 + $0x2] ss:$4 sm:$0xff] %v7073_v3  ;;  %v5793_v30 = vld.sshfl [vmem:[#allocation1 + $0x20] sm:$0xff pattern:$0x73625140] }
 0x338   : > { %2463 = vst [vmem:[#allocation1 + $0x3] ss:$4 sm:$0xff] %v7072_v21  ;;  %v7080_v21 = vrot.slane %v5766_v10, 6 }
 0x339   : > { %7153 = vst [vmem:[#allocation38_spill] sm:$0xff] %v5782_v22 }
 0x33a   : > { %2071 = vst [vmem:[#allocation1 + $0x20] ss:$4 sm:$0xff] %v5782_v22  ;;  %v5823_v22 = vld [vmem:[#allocation2 + $0xb2] sm:$0xff] }
 0x33b   : > { %2072 = vst [vmem:[#allocation1 + $0x21] ss:$4 sm:$0xff] %v7084_v40  ;;  %v1956_v40 = vrot.slane %v5623_v59, 4 }
 0x33c   : > { %2073 = vst [vmem:[#allocation1 + $0x22] ss:$4 sm:$0xff] %v7083_v57  ;;  %v1955_v57 = vrot.slane %v5623_v59, 2 }
 0x33d   : > { %2074 = vst [vmem:[#allocation1 + $0x23] ss:$4 sm:$0xff] %v7085_v11  ;;  %v1957_v11 = vrot.slane %v5623_v59, 6  ;;  %v4516_v59 = vld [vmem:[#allocation2 + $0x1a] sm:$0x3f] }
 0x33f   : > { %v5779_v3 = vld.sshfl [vmem:[#allocation1] sm:$0xff pattern:$0x73625140] }
 0x340   : > { %2470 = vst [vmem:[#allocation1] ss:$4 sm:$0xff] %v5766_v10 }
 0x341   : > { %2471 = vst [vmem:[#allocation1 + $0x1] ss:$4 sm:$0xff] %v7078_v33  ;;  %v7089_v33 = vrot.slane %v5795_v14, 2 }
 0x342   : > { %2472 = vst [vmem:[#allocation1 + $0x2] ss:$4 sm:$0xff] %v7079_v51  ;;  %v7088_v51 = vrot.slane %v5795_v14, 4 }
 0x343   : > { %2473 = vst [vmem:[#allocation1 + $0x3] ss:$4 sm:$0xff] %v7080_v21  ;;  %v7090_v21 = vrot.slane %v5795_v14, 6 }
 0x34a   : > { %v5807_v10 = vld.sshfl [vmem:[#allocation1] sm:$0xff pattern:$0x73625140] }
 0x34b   : > { %7154 = vst [vmem:[#allocation39_spill] sm:$0xff] %v5807_v10  ;;  %v5821_v10 = vld.sshfl [vmem:[#allocation1 + $0x20] sm:$0xff pattern:$0x73625140] }
 0x34c   : > { %2480 = vst [vmem:[#allocation1] ss:$4 sm:$0xff] %v7089_v33  ;;  %v7100_v33 = vrot.slane %v5823_v22, 6 }
 0x34d   : > { %2481 = vst [vmem:[#allocation1 + $0x1] ss:$4 sm:$0xff] %v7088_v51  ;;  %v7097_v51 = vrot.slane %v5823_v22, 4 }
 0x34e   : > { %2482 = vst [vmem:[#allocation1 + $0x2] ss:$4 sm:$0xff] %v7090_v21  ;;  %v5827_v21 = vld [vmem:[#allocation2 + $0xba] sm:$0x3f] }
 0x34f   : > { %2483 = vst [vmem:[#allocation1 + $0x3] ss:$4 sm:$0xff] %v5813_v25  ;;  %v2376_v8 = vrot.slane %v5827_v21, 2 }
 0x350   : > { %2081 = vst [vmem:[#allocation1 + $0x20] ss:$4 sm:$0xff] %v1955_v57  ;;  %v2326_v57 = vrot.slane %v4516_v59, 2 }
 0x351   : > { %2082 = vst [vmem:[#allocation1 + $0x21] ss:$4 sm:$0xff] %v1956_v40 }
 0x352   : > { %2083 = vst [vmem:[#allocation1 + $0x22] ss:$4 sm:$0xff] %v1957_v11  ;;  %v2327_v11 = vrot.slane %v4516_v59, 4 }
 0x353   : > { %2084 = vst [vmem:[#allocation1 + $0x23] ss:$4 sm:$0xff] %v5630_v0  ;;  %v4538_v0 = vld [vmem:[#allocation2 + $0xca] sm:$0x3f] }
 0x354   : > { %v2382_v37 = vrot.slane %v4538_v0, 4 }
 0x356   : > { %v5831_v16 = vld.sshfl [vmem:[#allocation1] sm:$0xff pattern:$0x73625140] }
 0x357   : > { %7155 = vst [vmem:[#allocation40_spill] sm:$0xff] %v5831_v16  ;;  %v7103_v16 = vrot.slane %v5840_v7, 6 }
 0x358   : > { %2490 = vst [vmem:[#allocation1] ss:$4 sm:$0xff] %v7097_v51  ;;  %v2381_v51 = vrot.slane %v4538_v0, 2 }
 0x359   : > { %2491 = vst [vmem:[#allocation1 + $0x1] ss:$4 sm:$0xff] %v7100_v33 }
 0x35a   : > { %2492 = vst [vmem:[#allocation1 + $0x2] ss:$4 sm:$0xff] %v5827_v21  ;;  %v5838_v40 = vld.sshfl [vmem:[#allocation1 + $0x20] sm:$0xff pattern:$0x73625140] }
 0x35b   : > { %2493 = vst [vmem:[#allocation1 + $0x3] ss:$4 sm:$0xff] %v2376_v8  ;;  %v4540_v8 = vld [vmem:[#allocation2 + $0xda] sm:$0x3f] }
 0x35c   : > { %7156 = vst [vmem:[#allocation41_spill] sm:$0xff] %v5838_v40  ;;  %v2386_v33 = vrot.slane %v4540_v8, 2  ;;  %v2387_v40 = vrot.slane %v4540_v8, 4 }
 0x35d   : > { %2401 = vst [vmem:[#allocation1 + $0x20] ss:$4 sm:$0xff] %v4516_v59 }
 0x35e   : > { %2403 = vst [vmem:[#allocation1 + $0x21] ss:$4 sm:$0xff] %v2326_v57  ;;  %v2331_v57 = vrot.slane %v5675_v46, 2 }
 0x35f   : > { %2405 = vst [vmem:[#allocation1 + $0x22] ss:$4 sm:$0xff] %v2327_v11  ;;  %v2332_v11 = vrot.slane %v5675_v46, 4 }
 0x360   : > { %2407 = vst [vmem:[#allocation1 + $0x23] ss:$4 sm:$0xff] %v5657_v61 }
 0x362   : > { %v5843_v53 = vld.sshfl [vmem:[#allocation1] sm:$0xff pattern:$0x73625140] }
 0x363   : > { %2500 = vst [vmem:[#allocation1] ss:$4 sm:$0xff] %v7103_v16 }
 0x364   : > { %2501 = vst [vmem:[#allocation1 + $0x1] ss:$4 sm:$0xff] %v4538_v0 }
 0x365   : > { %2502 = vst [vmem:[#allocation1 + $0x2] ss:$4 sm:$0xff] %v2381_v51  ;;  %v5858_v51 = vld [vmem:[#allocation2 + $0xea] sm:$0x3f] }
 0x366   : > { %2503 = vst [vmem:[#allocation1 + $0x3] ss:$4 sm:$0xff] %v2382_v37  ;;  %v7106_v37 = vrot.slane %v5685_v55, 2  ;;  %v2391_v0 = vrot.slane %v5858_v51, 2  ;;  %v2392_v46 = vrot.slane %v5858_v51, 4 }
 0x367   : > { %v5852_v18 = vld.sshfl [vmem:[#allocation1 + $0x20] sm:$0xff pattern:$0x73625140] }
 0x368   : > { %2414 = vst [vmem:[#allocation1 + $0x20] ss:$4 sm:$0xff] %v2331_v57  ;;  %v4543_v57 = vld [vmem:[#allocation2 + $0x20] sm:$0xff] }
 0x369   : > { %2415 = vst [vmem:[#allocation1 + $0x21] ss:$4 sm:$0xff] %v2332_v11  ;;  %v7110_v11 = vrot.slane %v5705_v28, 4 }
 0x36a   : > { %2416 = vst [vmem:[#allocation1 + $0x22] ss:$4 sm:$0xff] %v5685_v55  ;;  %v2758_v55 = vrot.slane %v4543_v57, 2 }
 0x36b   : > { %2417 = vst [vmem:[#allocation1 + $0x23] ss:$4 sm:$0xff] %v7106_v37  ;;  %v2759_v37 = vrot.slane %v4543_v57, 4 }
 0x36d   : > { %v5848_v59 = vld.sshfl [vmem:[#allocation1] sm:$0xff pattern:$0x73625140] }
 0x36e   : > { %7157 = vst [vmem:[#allocation42_spill] sm:$0xff] %v5848_v59  ;;  %v5886_v59 = vld [vmem:[#allocation2 + $0x30] sm:$0xff] }
 0x36f   : > { %2510 = vst [vmem:[#allocation1] ss:$4 sm:$0xff] %v4540_v8  ;;  %v7109_v8 = vrot.slane %v5705_v28, 2 }
 0x370   : > { %2511 = vst [vmem:[#allocation1 + $0x1] ss:$4 sm:$0xff] %v2386_v33 }
 0x371   : > { %2512 = vst [vmem:[#allocation1 + $0x2] ss:$4 sm:$0xff] %v2387_v40  ;;  %v2337_v40 = vrot.slane %v5689_v58, 4 }
 0x372   : > { %2513 = vst [vmem:[#allocation1 + $0x3] ss:$4 sm:$0xff] %v5854_v48  ;;  %v5870_v16 = vld.sshfl [vmem:[#allocation1 + $0x20] sm:$0xff pattern:$0x73625140] }
 0x373   : > { %2424 = vst [vmem:[#allocation1 + $0x20] ss:$4 sm:$0xff] %v2337_v40 }
 0x374   : > { %2425 = vst [vmem:[#allocation1 + $0x21] ss:$4 sm:$0xff] %v5705_v28  ;;  %v913_v28 = vpop.permute.xlu0 %912 }
 0x375   : > { %2426 = vst [vmem:[#allocation1 + $0x22] ss:$4 sm:$0xff] %v7109_v8 }
 0x376   : > { %2427 = vst [vmem:[#allocation1 + $0x23] ss:$4 sm:$0xff] %v7110_v11  ;;  %v2763_v11 = vrot.slane %v5886_v59, 2 }
 0x379   : > { %v5865_v33 = vld.sshfl [vmem:[#allocation1] sm:$0xff pattern:$0x73625140] }
 0x37a   : > { %7158 = vst [vmem:[#allocation43_spill] sm:$0xff] %v5865_v33 }
 0x37b   : > { %2520 = vst [vmem:[#allocation1] ss:$4 sm:$0xff] %v2391_v0  ;;  %v2760_v0 = vrot.slane %v4543_v57, 6 }
 0x37c   : > { %2521 = vst [vmem:[#allocation1 + $0x1] ss:$4 sm:$0xff] %v2392_v46  ;;  %v5879_v46 = vld [vmem:[#allocation2 + $0x52] sm:$0xff] }
 0x37d   : > { %7160 = vst [vmem:[#allocation45_spill] sm:$0xff] %v5879_v46  ;;  %v7111_v40 = vrot.slane %v5879_v46, 2  ;;  %v7112_v33 = vrot.slane %v5879_v46, 4  ;;  %v7117_v61 = vrot.slane %v5879_v46, 6 }
 0x37e   : > { %v5884_v8 = vld.sshfl [vmem:[#allocation1 + $0x20] sm:$0xff pattern:$0x73625140] }
 0x37f   : > { %7161 = vst [vmem:[#allocation46_spill] sm:$0xff] %v5884_v8 }
 0x380   : > { %2434 = vst [vmem:[#allocation1 + $0x20] ss:$4 sm:$0xff] %v5879_v46  ;;  %v5908_v46 = vld [vmem:[#allocation2 + $0x40] sm:$0xff] }
 0x381   : > { %2435 = vst [vmem:[#allocation1 + $0x21] ss:$4 sm:$0xff] %v7111_v40  ;;  %v2349_v40 = vrot.slane %v5724_v49, 4 }
 0x382   : > { %2436 = vst [vmem:[#allocation1 + $0x22] ss:$4 sm:$0xff] %v7112_v33  ;;  %v2350_v33 = vrot.slane %v5724_v49, 6 }
 0x383   : > { %v5877_v58 = vld.sshfl [vmem:[#allocation1] sm:$0xff pattern:$0x73625140]  ;;  %2437 = vst [vmem:[#allocation1 + $0x23] ss:$4 sm:$0xff] %v7117_v61  ;;  %v1697_v61 = vpack.c.bf16 %v5440_v54, %v5440_v54  ;;  %v505_v54 = vpack.c.bf16 %v5011_v36, %v5011_v36  ;;  %v1694_v36 = vpack.c.bf16 %v5387_v35, %v5387_v35 }
 0x384   : > { %7159 = vst [vmem:[#allocation44_spill] sm:$0xff] %v5877_v58  ;;  %v2348_v58 = vrot.slane %v5724_v49, 2  ;;  %v2116_v49 = vpack.c.bf16 %v5621_v15, %v5621_v15  ;;  %v1316_v15 = vpop.permute.xlu1 %1315 }
 0x385   : > { %2828 = vst [vmem:[#allocation1] ss:$4 sm:$0xff] %v4543_v57  ;;  %1762 = vrot.lane.b32.xlu2 %v1697_v61, %s4904_s5  ;;  %v4550_v61 = vld [vmem:[#allocation2 + $0x58] sm:$0x3f] }
 0x386   : > { %2830 = vst [vmem:[#allocation1 + $0x1] ss:$4 sm:$0xff] %v2758_v55  ;;  %v2764_v55 = vrot.slane %v5886_v59, 4  ;;  %2167 = vrot.lane.b32.xlu1 %v2116_v49, %s4905_s6  ;;  %v2777_v35 = vrot.slane %v4550_v61, 4 }
 0x387   : > { %2832 = vst [vmem:[#allocation1 + $0x2] ss:$4 sm:$0xff] %v2759_v37  ;;  %v2765_v37 = vrot.slane %v5886_v59, 6 }
 0x388   : > { %2834 = vst [vmem:[#allocation1 + $0x3] ss:$4 sm:$0xff] %v2760_v0  ;;  %v5900_v0 = vld [vmem:[#allocation2 + $0x38] sm:$0x3f] }
 0x389   : > { %532 = vst.msk [vmem:[#allocation3 + $0xc0] sm:$0x3] %vm531_vm3, %v505_v54 }
 0x38a   : > { %v5906_v8 = vld.sshfl [vmem:[#allocation1 + $0x20] sm:$0xff pattern:$0x73625140]  ;;  %965 = vst.msk [vmem:[#allocation3 + $0xc0] sm:$0x3] %vm964_vm4, %v913_v28  ;;  %v2776_v28 = vrot.slane %v4550_v61, 2 }
 0x38b   : > { %7163 = vst [vmem:[#allocation48_spill] sm:$0xff] %v5906_v8  ;;  %v1698_v8 = vpack.c.bf16 %v5446_v63, %v5446_v63  ;;  %v1312_v63 = vpop.permute.xlu2 %1311 }
 0x38c   : > { %2444 = vst [vmem:[#allocation1 + $0x20] ss:$4 sm:$0xff] %v2348_v58  ;;  %v1310_v49 = vpop.permute.xlu1 %1309 }
 0x38d   : > { %2445 = vst [vmem:[#allocation1 + $0x21] ss:$4 sm:$0xff] %v2349_v40  ;;  %1764 = vrot.lane.b32.xlu0 %v1698_v8, %s4904_s5  ;;  %v1702_v8 = vpack.c.bf16 %v5490_v32, %v5490_v32  ;;  %v2118_v40 = vpack.c.bf16 %v5641_v1, %v5641_v1  ;;  %1756 = vrot.lane.b32.xlu2 %v1694_v36, %s4904_s5  ;;  %v4552_v36 = vld [vmem:[#allocation2 + $0x68] sm:$0x3f] }
 0x38e   : > { %2446 = vst [vmem:[#allocation1 + $0x22] ss:$4 sm:$0xff] %v2350_v33  ;;  %v7123_v33 = vrot.slane %v5733_v39, 4 }
 0x38f   : > { %v5898_v57 = vld.sshfl [vmem:[#allocation1] sm:$0xff pattern:$0x73625140]  ;;  %2447 = vst [vmem:[#allocation1 + $0x23] ss:$4 sm:$0xff] %v5729_v52  ;;  %v1308_v52 = vpop.permute.xlu0 %1307  ;;  %1772 = vrot.lane.b32.xlu1 %v1702_v8, %s4904_s5 }
 0x390   : > { %7162 = vst [vmem:[#allocation47_spill] sm:$0xff] %v5898_v57 }
 0x391   : > { %2845 = vst [vmem:[#allocation1] ss:$4 sm:$0xff] %v2763_v11  ;;  %v2769_v11 = vrot.slane %v5908_v46, 4 }
 0x392   : > { %2846 = vst [vmem:[#allocation1 + $0x1] ss:$4 sm:$0xff] %v2764_v55  ;;  %v2770_v55 = vrot.slane %v5908_v46, 6 }
 0x393   : > { %2847 = vst [vmem:[#allocation1 + $0x2] ss:$4 sm:$0xff] %v2765_v37  ;;  %v5912_v37 = vld [vmem:[#allocation2 + $0x48] sm:$0x3f]  ;;  %v1306_v32 = vpop.permute.xlu2 %1305 }
 0x394   : > { %2848 = vst [vmem:[#allocation1 + $0x3] ss:$4 sm:$0xff] %v5900_v0  ;;  %v2771_v58 = vrot.slane %v5912_v37, 2 }
 0x395   : > { %1380 = vst.msk [vmem:[#allocation3 + $0x38] sm:$0xf] %vm1372_vm2, %v1312_v63  ;;  %2171 = vrot.lane.b32.xlu0 %v2118_v40, %s4905_s6  ;;  %v1703_v63 = vpack.c.bf16 %v5492_v20, %v5492_v20 }
 0x396   : > { %1382 = vst.msk [vmem:[#allocation3 + $0x48] sm:$0xf] %vm1372_vm2, %v1316_v15  ;;  %v2119_v15 = vpack.c.bf16 %v5533_v31, %v5533_v31  ;;  %v2781_v31 = vrot.slane %v4552_v36, 2 }
 0x397   : > { %1378 = vst.msk [vmem:[#allocation3 + $0x28] sm:$0xf] %vm1372_vm2, %v1308_v52  ;;  %v1302_v54 = vpop.permute.xlu0 %1301  ;;  %v1704_v52 = vpack.c.bf16 %v5494_v34, %v5494_v34  ;;  %1774 = vrot.lane.b32.xlu2 %v1703_v63, %s4904_s5  ;;  %v1328_v34 = vpop.permute.xlu1 %1327  ;;  %v4530_v63 = vld [vmem:[#allocation2 + $0x8a] sm:$0x3f] }
 0x398   : > { %1377 = vst.msk [vmem:[#allocation3 + $0x20] sm:$0xf] %vm1372_vm2, %v1306_v32  ;;  %2173 = vrot.lane.b32.xlu1 %v2119_v15, %s4905_s6  ;;  %v5978_v32 = vld [vmem:[#allocation2 + $0x78] sm:$0x3f]  ;;  %v7167_v15 = vrot.slane %v5352_v45, 2 }
 0x399   : > { %1379 = vst.msk [vmem:[#allocation3 + $0x30] sm:$0xf] %vm1372_vm2, %v1310_v49  ;;  %v2786_v49 = vrot.slane %v5978_v32, 2 }
 0x39a   : > { %1375 = vst.msk [vmem:[#allocation3 + $0x10] sm:$0xf] %vm1372_vm2, %v1302_v54 }
 0x39b   : > { %v5922_v57 = vld.sshfl [vmem:[#allocation1] sm:$0xff pattern:$0x73625140]  ;;  %v1324_v20 = vpop.permute.xlu2 %1323  ;;  %1388 = vst.msk [vmem:[#allocation3 + $0x78] sm:$0xf] %vm1372_vm2, %v1328_v34 }
 0x39c   : > { %2855 = vst [vmem:[#allocation1] ss:$4 sm:$0xff] %v2769_v11  ;;  %v7122_v11 = vrot.slane %v5733_v39, 6  ;;  %v5998_v34 = vld [vmem:[#allocation2 + $0x88] sm:$0x3f] }
 0x39d   : > { %2856 = vst [vmem:[#allocation1 + $0x1] ss:$4 sm:$0xff] %v2770_v55  ;;  %v5940_v55 = vld.sshfl [vmem:[#allocation1 + $0x20] sm:$0xff pattern:$0x73625140]  ;;  %1776 = vrot.lane.b32.xlu0 %v1704_v52, %s4904_s5 }
 0x39e   : > { %2857 = vst [vmem:[#allocation1 + $0x2] ss:$4 sm:$0xff] %v5912_v37 }
 0x39f   : > { %2858 = vst [vmem:[#allocation1 + $0x3] ss:$4 sm:$0xff] %v2771_v58  ;;  %v7165_v58 = vrot.slane %v5297_v43, 6  ;;  %v1320_v8 = vpop.permute.xlu0 %1319 }
 0x3a0   : > { %7164 = vst [vmem:[#allocation49_spill] sm:$0xff] %v5940_v55 }
 0x3a1   : > { %2454 = vst [vmem:[#allocation1 + $0x20] ss:$4 sm:$0xff] %v7123_v33 }
 0x3a2   : > { %2455 = vst [vmem:[#allocation1 + $0x21] ss:$4 sm:$0xff] %v7122_v11 }
 0x3a3   : > { %2456 = vst [vmem:[#allocation1 + $0x22] ss:$4 sm:$0xff] %v5747_v19  ;;  %v1318_v52 = vpop.permute.xlu2 %1317 }
 0x3a4   : > { %1386 = vst.msk [vmem:[#allocation3 + $0x68] sm:$0xf] %vm1372_vm2, %v1324_v20 }
 0x3a5   : > { %1384 = vst.msk [vmem:[#allocation3 + $0x58] sm:$0xf] %vm1372_vm2, %v1320_v8  ;;  %v2792_v8 = vrot.slane %v5998_v34, 4 }
 0x3a6   : > { %v5949_v1 = vld.sshfl [vmem:[#allocation1] sm:$0xff pattern:$0x73625140]  ;;  %1383 = vst.msk [vmem:[#allocation3 + $0x50] sm:$0xf] %vm1372_vm2, %v1318_v52 }
 0x3a7   : > { %2865 = vst [vmem:[#allocation1] ss:$4 sm:$0xff] %v7165_v58  ;;  %v2787_v58 = vrot.slane %v5978_v32, 4 }
 0x3a8   : > { %2866 = vst [vmem:[#allocation1 + $0x1] ss:$4 sm:$0xff] %v4550_v61  ;;  %v2782_v61 = vrot.slane %v4552_v36, 4 }
 0x3a9   : > { %2867 = vst [vmem:[#allocation1 + $0x2] ss:$4 sm:$0xff] %v2776_v28  ;;  %v1700_v28 = vpack.c.bf16 %v5470_v56, %v5470_v56  ;;  %v2132_v56 = vpack.c.bf16 %v5769_v29, %v5769_v29  ;;  %v1322_v29 = vpop.permute.xlu1 %1321 }
 0x3aa   : > { %2868 = vst [vmem:[#allocation1 + $0x3] ss:$4 sm:$0xff] %v2777_v35  ;;  %v2356_v35 = vrot.slane %v5747_v19, 2  ;;  %v2115_v19 = vpack.c.bf16 %v5505_v9, %v5505_v9  ;;  %v1314_v9 = vpop.permute.xlu0 %1313 }
 0x3ab   : > { %1768 = vrot.lane.b32.xlu2 %v1700_v28, %s4904_s5  ;;  %2199 = vrot.lane.b32.xlu1 %v2132_v56, %s4905_s6  ;;  %1385 = vst.msk [vmem:[#allocation3 + $0x60] sm:$0xf] %vm1372_vm2, %v1322_v29  ;;  %v2120_v28 = vpack.c.bf16 %v5655_v47, %v5655_v47  ;;  %v7171_v47 = vrot.slane %v5374_v41, 4  ;;  %v1336_v56 = vpop.permute.xlu2 %1335 }
 0x3ac   : > { %2457 = vst [vmem:[#allocation1 + $0x23] ss:$4 sm:$0xff] %v2356_v35  ;;  %2165 = vrot.lane.b32.xlu0 %v2115_v19, %s4905_s6  ;;  %v2129_v35 = vpack.c.bf16 %v5587_v27, %v5587_v27  ;;  %v4532_v27 = vld [vmem:[#allocation2 + $0x9a] sm:$0x3f] }
 0x3ad   : > { %1381 = vst.msk [vmem:[#allocation3 + $0x40] sm:$0xf] %vm1372_vm2, %v1314_v9  ;;  %v2367_v29 = vrot.slane %v4532_v27, 4 }
 0x3ae   : > { %1392 = vst.msk [vmem:[#allocation3 + $0x98] sm:$0xf] %vm1372_vm2, %v1336_v56  ;;  %v7177_v56 = vrot.slane %v5434_v17, 6 }
 0x3b1   : > { %v5970_v40 = vld.sshfl [vmem:[#allocation1] sm:$0xff pattern:$0x73625140]  ;;  %v1340_v19 = vpop.permute.xlu1 %1339 }
 0x3b2   : > { %2875 = vst [vmem:[#allocation1] ss:$4 sm:$0xff] %v4552_v36  ;;  %v7121_v36 = vrot.slane %v5750_v4, 6  ;;  %v1332_v52 = vpop.permute.xlu0 %1331 }
 0x3b3   : > { %2876 = vst [vmem:[#allocation1 + $0x1] ss:$4 sm:$0xff] %v2781_v31  ;;  %v5995_v20 = vld.sshfl [vmem:[#allocation1 + $0x20] sm:$0xff pattern:$0x73625140]  ;;  %v2361_v31 = vrot.slane %v4530_v63, 2  ;;  %2175 = vrot.lane.b32.xlu2 %v2120_v28, %s4905_s6  ;;  %2193 = vrot.lane.b32.xlu1 %v2129_v35, %s4905_s6 }
 0x3b4   : > { %2877 = vst [vmem:[#allocation1 + $0x2] ss:$4 sm:$0xff] %v2782_v61  ;;  %v2362_v61 = vrot.slane %v4530_v63, 4  ;;  %v2371_v28 = vrot.slane %v5813_v25, 2  ;;  %v2372_v35 = vrot.slane %v5813_v25, 4 }
 0x3b5   : > { %2878 = vst [vmem:[#allocation1 + $0x3] ss:$4 sm:$0xff] %v5316_v2  ;;  %v6052_v25 = vld [vmem:[#allocation2 + $0xb8] sm:$0x3f] }
 0x3b6   : > { %7168 = vst [vmem:[#allocation51_spill] sm:$0xff] %v5995_v20  ;;  %v7194_v20 = vld [vmem:[#allocation42_spill] sm:$0xff] }
 0x3b7   : > { %2464 = vst [vmem:[#allocation1 + $0x20] ss:$4 sm:$0xff] %v7121_v36  ;;  %v6117_v36 = vld [vmem:[#allocation2 + $0xf8] sm:$0x3f] }
 0x3b8   : > { %2465 = vst [vmem:[#allocation1 + $0x21] ss:$4 sm:$0xff] %v4530_v63  ;;  %v1706_v63 = vpack.c.bf16 %v5500_v42, %v5500_v42  ;;  %v7172_v42 = vrot.slane %v5402_v44, 2  ;;  %v2826_v11 = vrot.slane %v6117_v36, 2 }
 0x3b9   : > { %2466 = vst [vmem:[#allocation1 + $0x22] ss:$4 sm:$0xff] %v2361_v31 }
 0x3ba   : > { %2467 = vst [vmem:[#allocation1 + $0x23] ss:$4 sm:$0xff] %v2362_v61  ;;  %v7173_v61 = vrot.slane %v5402_v44, 4 }
 0x3bb   : > { %1394 = vst.msk [vmem:[#allocation3 + $0xa8] sm:$0xf] %vm1372_vm2, %v1340_v19  ;;  %1780 = vrot.lane.b32.xlu2 %v1706_v63, %s4904_s5  ;;  %v2377_v19 = vrot.slane %v5827_v21, 4  ;;  %v7119_v63 = vrot.slane %v5840_v7, 2 }
 0x3bc   : > { %v5982_v54 = vld.sshfl [vmem:[#allocation1] sm:$0xff pattern:$0x73625140]  ;;  %1390 = vst.msk [vmem:[#allocation3 + $0x88] sm:$0xf] %vm1372_vm2, %v1332_v52  ;;  %v2134_v52 = vpack.c.bf16 %v5793_v30, %v5793_v30  ;;  %v7178_v30 = vrot.slane %v5456_v23, 4 }
 0x3bd   : > { %7166 = vst [vmem:[#allocation50_spill] sm:$0xff] %v5982_v54  ;;  %v7225_v54 = vld [vmem:[#allocation38_spill] sm:$0xff] }
 0x3be   : > { %2885 = vst [vmem:[#allocation1] ss:$4 sm:$0xff] %v2786_v49  ;;  %v2128_v49 = vpack.c.bf16 %v5727_v38, %v5727_v38  ;;  %v7170_v38 = vrot.slane %v5374_v41, 2 }
 0x3bf   : > { %2886 = vst [vmem:[#allocation1 + $0x1] ss:$4 sm:$0xff] %v2787_v58 }
 0x3c0   : > { %2887 = vst [vmem:[#allocation1 + $0x2] ss:$4 sm:$0xff] %v5352_v45  ;;  %2191 = vrot.lane.b32.xlu0 %v2128_v49, %s4905_s6  ;;  %v7126_v49 = vrot.slane %v5823_v22, 2 }
 0x3c1   : > { %2888 = vst [vmem:[#allocation1 + $0x3] ss:$4 sm:$0xff] %v7167_v15  ;;  %v2366_v15 = vrot.slane %v4532_v27, 2  ;;  %v6026_v9 = vld.sshfl [vmem:[#allocation1 + $0x20] sm:$0xff pattern:$0x73625140] }
 0x3c2   : > { %2474 = vst [vmem:[#allocation1 + $0x20] ss:$4 sm:$0xff] %v4532_v27 }
 0x3c3   : > { %2475 = vst [vmem:[#allocation1 + $0x21] ss:$4 sm:$0xff] %v2366_v15  ;;  %v2549_v15 = vpack.c.bf16 %v5852_v18, %v5852_v18 }
 0x3c4   : > { %2476 = vst [vmem:[#allocation1 + $0x22] ss:$4 sm:$0xff] %v2367_v29 }
 0x3c5   : > { %2477 = vst [vmem:[#allocation1 + $0x23] ss:$4 sm:$0xff] %v5795_v14  ;;  %2600 = vrot.lane.b32.xlu1 %v2549_v15, %s4906_s7 }
 0x3c8   : > { %v6012_v58 = vld.sshfl [vmem:[#allocation1] sm:$0xff pattern:$0x73625140]  ;;  %2203 = vrot.lane.b32.xlu0 %v2134_v52, %s4905_s6 }
 0x3c9   : > { %7169 = vst [vmem:[#allocation52_spill] sm:$0xff] %v6012_v58  ;;  %v4560_v58 = vld [vmem:[#allocation2 + $0xa8] sm:$0x3f] }
 0x3ca   : > { %2895 = vst [vmem:[#allocation1] ss:$4 sm:$0xff] %v2792_v8  ;;  %v7174_v8 = vrot.slane %v5402_v44, 6 }
 0x3cb   : > { %2896 = vst [vmem:[#allocation1 + $0x1] ss:$4 sm:$0xff] %v5374_v41 }
 0x3cc   : > { %2897 = vst [vmem:[#allocation1 + $0x2] ss:$4 sm:$0xff] %v7170_v38  ;;  %v6041_v27 = vld.sshfl [vmem:[#allocation1 + $0x20] sm:$0xff pattern:$0x73625140] }
 0x3cd   : > { %2898 = vst [vmem:[#allocation1 + $0x3] ss:$4 sm:$0xff] %v7171_v47  ;;  %v7176_v47 = vrot.slane %v5434_v17, 4 }
 0x3ce   : > { %2484 = vst [vmem:[#allocation1 + $0x20] ss:$4 sm:$0xff] %v2371_v28  ;;  %v1330_v28 = vpop.permute.xlu2 %1329 }
 0x3cf   : > { %2485 = vst [vmem:[#allocation1 + $0x21] ss:$4 sm:$0xff] %v2372_v35  ;;  %v2117_v35 = vpack.c.bf16 %v5523_v60, %v5523_v60  ;;  %v7180_v60 = vrot.slane %v5468_v62, 6 }
 0x3d0   : > { %2486 = vst [vmem:[#allocation1 + $0x22] ss:$4 sm:$0xff] %v5823_v22 }
 0x3d1   : > { %2487 = vst [vmem:[#allocation1 + $0x23] ss:$4 sm:$0xff] %v7126_v49  ;;  %2169 = vrot.lane.b32.xlu2 %v2117_v35, %s4905_s6  ;;  %v7193_v49 = vld [vmem:[#allocation21_spill] sm:$0xff] }
 0x3d2   : > { %1389 = vst.msk [vmem:[#allocation3 + $0x80] sm:$0xf] %vm1372_vm2, %v1330_v28  ;;  %v4568_v28 = vld [vmem:[#allocation2 + $0xe8] sm:$0x3f] }
 0x3d4   : > { %v6028_v31 = vld.sshfl [vmem:[#allocation1] sm:$0xff pattern:$0x73625140] }
 0x3d5   : > { %2905 = vst [vmem:[#allocation1] ss:$4 sm:$0xff] %v5402_v44  ;;  %v7175_v44 = vrot.slane %v5434_v17, 2 }
 0x3d6   : > { %2906 = vst [vmem:[#allocation1 + $0x1] ss:$4 sm:$0xff] %v7172_v42  ;;  %v6068_v42 = vld [vmem:[#allocation2 + $0xc8] sm:$0x3f] }
 0x3d7   : > { %2907 = vst [vmem:[#allocation1 + $0x2] ss:$4 sm:$0xff] %v7173_v61  ;;  %v2811_v18 = vrot.slane %v6068_v42, 2  ;;  %v7179_v61 = vrot.slane %v5456_v23, 6 }
 0x3d8   : > { %2908 = vst [vmem:[#allocation1 + $0x3] ss:$4 sm:$0xff] %v7174_v8  ;;  %v6063_v29 = vld.sshfl [vmem:[#allocation1 + $0x20] sm:$0xff pattern:$0x73625140]  ;;  %v7125_v8 = vrot.slane %v5840_v7, 4 }
 0x3d9   : > { %2494 = vst [vmem:[#allocation1 + $0x20] ss:$4 sm:$0xff] %v2377_v19 }
 0x3da   : > { %2495 = vst [vmem:[#allocation1 + $0x21] ss:$4 sm:$0xff] %v5840_v7 }
 0x3db   : > { %2496 = vst [vmem:[#allocation1 + $0x22] ss:$4 sm:$0xff] %v7119_v63  ;;  %v2390_v63 = vrot.slane %v5854_v48, 6 }
 0x3dc   : > { %2497 = vst [vmem:[#allocation1 + $0x23] ss:$4 sm:$0xff] %v7125_v8 }
 0x3df   : > { %v6044_v38 = vld.sshfl [vmem:[#allocation1] sm:$0xff pattern:$0x73625140] }
 0x3e0   : > { %2915 = vst [vmem:[#allocation1] ss:$4 sm:$0xff] %v7175_v44  ;;  %v1334_v44 = vpop.permute.xlu1 %1333 }
 0x3e1   : > { %2916 = vst [vmem:[#allocation1 + $0x1] ss:$4 sm:$0xff] %v7176_v47  ;;  %v1326_v47 = vpop.permute.xlu0 %1325 }
 0x3e2   : > { %2917 = vst [vmem:[#allocation1 + $0x2] ss:$4 sm:$0xff] %v7177_v56  ;;  %v4566_v56 = vld [vmem:[#allocation2 + $0xd8] sm:$0x3f] }
 0x3e3   : > { %2918 = vst [vmem:[#allocation1 + $0x3] ss:$4 sm:$0xff] %v6052_v25  ;;  %v2816_v19 = vrot.slane %v4566_v56, 2  ;;  %v2817_v15 = vrot.slane %v4566_v56, 4 }
 0x3e4   : > { %1391 = vst.msk [vmem:[#allocation3 + $0x90] sm:$0xf] %vm1372_vm2, %v1334_v44  ;;  %v6098_v44 = vld.sshfl [vmem:[#allocation1 + $0x20] sm:$0xff pattern:$0x73625140] }
 0x3e5   : > { %1387 = vst.msk [vmem:[#allocation3 + $0x70] sm:$0xf] %vm1372_vm2, %v1326_v47  ;;  %v2821_v47 = vrot.slane %v4568_v28, 2 }
 0x3ea   : > { %v6073_v21 = vld.sshfl [vmem:[#allocation1] sm:$0xff pattern:$0x73625140] }
 0x3eb   : > { %2925 = vst [vmem:[#allocation1] ss:$4 sm:$0xff] %v7178_v30 }
 0x3ec   : > { %2926 = vst [vmem:[#allocation1 + $0x1] ss:$4 sm:$0xff] %v7179_v61 }
 0x3ed   : > { %2927 = vst [vmem:[#allocation1 + $0x2] ss:$4 sm:$0xff] %v6068_v42 }
 0x3ee   : > { %2928 = vst [vmem:[#allocation1 + $0x3] ss:$4 sm:$0xff] %v2811_v18  ;;  %v6093_v18 = vld [vmem:[#allocation2 + $0xd2] sm:$0xff] }
 0x3ef   : > { %v7118_v30 = vrot.slane %v6093_v18, 2  ;;  %v7120_v61 = vrot.slane %v6093_v18, 4  ;;  %v7124_v35 = vrot.slane %v6093_v18, 6  ;;  %2504 = vst [vmem:[#allocation1 + $0x20] ss:$4 sm:$0xff] %v6093_v18 }
 0x3f1   : > { %2505 = vst [vmem:[#allocation1 + $0x21] ss:$4 sm:$0xff] %v7118_v30  ;;  %v2389_v30 = vrot.slane %v5854_v48, 4 }
 0x3f2   : > { %2506 = vst [vmem:[#allocation1 + $0x22] ss:$4 sm:$0xff] %v7120_v61 }
 0x3f3   : > { %2507 = vst [vmem:[#allocation1 + $0x23] ss:$4 sm:$0xff] %v7124_v35 }
 0x3f5   : > { %v6089_v52 = vld.sshfl [vmem:[#allocation1] sm:$0xff pattern:$0x73625140] }
 0x3f6   : > { %2935 = vst [vmem:[#allocation1] ss:$4 sm:$0xff] %v7180_v60  ;;  %v2388_v60 = vrot.slane %v5854_v48, 2 }
 0x3f7   : > { %2936 = vst [vmem:[#allocation1 + $0x1] ss:$4 sm:$0xff] %v4566_v56  ;;  %v2822_v56 = vrot.slane %v4568_v28, 4 }
 0x3f8   : > { %2937 = vst [vmem:[#allocation1 + $0x2] ss:$4 sm:$0xff] %v2816_v19 }
 0x3f9   : > { %2938 = vst [vmem:[#allocation1 + $0x3] ss:$4 sm:$0xff] %v2817_v15  ;;  %v6109_v15 = vld [vmem:[#allocation2 + $0xf0] sm:$0xff] }
 0x3fa   : > { %v6115_v61 = vld.sshfl [vmem:[#allocation1 + $0x20] sm:$0xff pattern:$0x73625140] }
 0x3fb   : > { %2514 = vst [vmem:[#allocation1 + $0x20] ss:$4 sm:$0xff] %v2388_v60 }
 0x3fc   : > { %2515 = vst [vmem:[#allocation1 + $0x21] ss:$4 sm:$0xff] %v2389_v30 }
 0x3fd   : > { %2516 = vst [vmem:[#allocation1 + $0x22] ss:$4 sm:$0xff] %v2390_v63  ;;  %v7182_v63 = vrot.slane %v5496_v24, 2 }
 0x3fe   : > { %2517 = vst [vmem:[#allocation1 + $0x23] ss:$4 sm:$0xff] %v5858_v51  ;;  %v7183_v51 = vrot.slane %v5496_v24, 4 }
 0x400   : > { %v6107_v19 = vld.sshfl [vmem:[#allocation1] sm:$0xff pattern:$0x73625140] }
 0x401   : > { %2945 = vst [vmem:[#allocation1] ss:$4 sm:$0xff] %v4568_v28  ;;  %v2827_v28 = vrot.slane %v6117_v36, 4 }
 0x402   : > { %2946 = vst [vmem:[#allocation1 + $0x1] ss:$4 sm:$0xff] %v2821_v47 }
 0x403   : > { %2947 = vst [vmem:[#allocation1 + $0x2] ss:$4 sm:$0xff] %v2822_v56  ;;  %v4544_v56 = vld [vmem:[#allocation2 + $0x28] sm:$0x3f] }
 0x404   : > { %2948 = vst [vmem:[#allocation1 + $0x3] ss:$4 sm:$0xff] %v6109_v15  ;;  %v2761_v33 = vrot.slane %v4544_v56, 2  ;;  %v2762_v48 = vrot.slane %v4544_v56, 4 }
 0x405   : > { %v6124_v35 = vld.sshfl [vmem:[#allocation1 + $0x20] sm:$0xff pattern:$0x73625140] }
 0x406   : > { %2836 = vst [vmem:[#allocation1 + $0x20] ss:$4 sm:$0xff] %v4544_v56  ;;  %v7186_v56 = vrot.slane %v5516_v6, 4 }
 0x407   : > { %2838 = vst [vmem:[#allocation1 + $0x21] ss:$4 sm:$0xff] %v2761_v33  ;;  %v7185_v33 = vrot.slane %v5516_v6, 2 }
 0x408   : > { %2840 = vst [vmem:[#allocation1 + $0x22] ss:$4 sm:$0xff] %v2762_v48  ;;  %v2767_v48 = vrot.slane %v5900_v0, 4 }
 0x409   : > { %2842 = vst [vmem:[#allocation1 + $0x23] ss:$4 sm:$0xff] %v5886_v59  ;;  %v2768_v59 = vrot.slane %v5908_v46, 2 }
 0x40b   : > { %v6122_v47 = vld.sshfl [vmem:[#allocation1] sm:$0xff pattern:$0x73625140] }
 0x40c   : > { %2955 = vst [vmem:[#allocation1] ss:$4 sm:$0xff] %v2826_v11  ;;  %v7184_v11 = vrot.slane %v5496_v24, 6 }
 0x40d   : > { %2956 = vst [vmem:[#allocation1 + $0x1] ss:$4 sm:$0xff] %v2827_v28  ;;  %v2766_v28 = vrot.slane %v5900_v0, 2  ;;  %v1342_v0 = vpop.permute.xlu2 %1341 }
 0x40e   : > { %1395 = vst.msk [vmem:[#allocation3 + $0xb0] sm:$0xf] %vm1372_vm2, %v1342_v0  ;;  %v7190_v0 = vrot.slane %v5297_v43, 2 }
 0x414   : > { %v6126_v60 = vld.sshfl [vmem:[#allocation1] sm:$0xff pattern:$0x73625140] }
 0x415   : > { %7181 = vst [vmem:[#allocation53_spill] sm:$0xff] %v6126_v60 }
 0x416   : > { %3261 = vst [vmem:[#allocation1] ss:$4 sm:$0xff] %v5496_v24  ;;  %v7187_v24 = vrot.slane %v5516_v6, 6 }
 0x417   : > { %3263 = vst [vmem:[#allocation1 + $0x1] ss:$4 sm:$0xff] %v7182_v63  ;;  %v6144_v63 = vld.sshfl [vmem:[#allocation1 + $0x20] sm:$0xff pattern:$0x73625140] }
 0x418   : > { %3265 = vst [vmem:[#allocation1 + $0x2] ss:$4 sm:$0xff] %v7183_v51  ;;  %v6146_v51 = vld [vmem:[#allocation2 + $0x39] sm:$0x3f] }
 0x419   : > { %3267 = vst [vmem:[#allocation1 + $0x3] ss:$4 sm:$0xff] %v7184_v11  ;;  %v2563_v11 = vpack.c.bf16 %v6041_v27, %v6041_v27 }
 0x41a   : > { %2849 = vst [vmem:[#allocation1 + $0x20] ss:$4 sm:$0xff] %v2766_v28  ;;  %v2772_v28 = vrot.slane %v5912_v37, 4 }
 0x41b   : > { %2850 = vst [vmem:[#allocation1 + $0x21] ss:$4 sm:$0xff] %v2767_v48  ;;  %2628 = vrot.lane.b32.xlu1 %v2563_v11, %s4906_s7  ;;  %v2130_v48 = vpack.c.bf16 %v5745_v50, %v5745_v50  ;;  %v2131_v11 = vpack.c.bf16 %v5605_v26, %v5605_v26  ;;  %v4578_v50 = vld [vmem:[#allocation2 + $0x59] sm:$0x3f]  ;;  %v7191_v26 = vrot.slane %v5297_v43, 4 }
 0x41c   : > { %2851 = vst [vmem:[#allocation1 + $0x22] ss:$4 sm:$0xff] %v5908_v46  ;;  %v7189_v46 = vrot.slane %v5530_v12, 6 }
 0x41d   : > { %2852 = vst [vmem:[#allocation1 + $0x23] ss:$4 sm:$0xff] %v2768_v59  ;;  %v2560_v59 = vpack.c.bf16 %v5779_v3, %v5779_v3  ;;  %2195 = vrot.lane.b32.xlu2 %v2130_v48, %s4905_s6 }
 0x420   : > { %v6136_v30 = vld.sshfl [vmem:[#allocation1] sm:$0xff pattern:$0x73625140] }
 0x421   : > { %3278 = vst [vmem:[#allocation1] ss:$4 sm:$0xff] %v7185_v33  ;;  %v2136_v33 = vpack.c.bf16 %v5821_v10, %v5821_v10  ;;  %v7188_v10 = vrot.slane %v5530_v12, 4 }
 0x422   : > { %3279 = vst [vmem:[#allocation1 + $0x1] ss:$4 sm:$0xff] %v7186_v56  ;;  %v6159_v56 = vld [vmem:[#allocation2 + $0x49] sm:$0x3f] }
 0x423   : > { %3280 = vst [vmem:[#allocation1 + $0x2] ss:$4 sm:$0xff] %v7187_v24  ;;  %2207 = vrot.lane.b32.xlu0 %v2136_v33, %s4905_s6  ;;  %v1344_v24 = vpop.permute.xlu0 %1343  ;;  %v3204_v27 = vrot.slane %v6159_v56, 2  ;;  %2622 = vrot.lane.b32.xlu1 %v2560_v59, %s4906_s7  ;;  %v1346_v33 = vpop.permute.xlu1 %1345  ;;  %v4551_v59 = vld [vmem:[#allocation2 + $0x60] sm:$0xff] }
 0x424   : > { %3281 = vst [vmem:[#allocation1 + $0x3] ss:$4 sm:$0xff] %v6146_v51  ;;  %v6180_v37 = vld.sshfl [vmem:[#allocation1 + $0x20] sm:$0xff pattern:$0x73625140] }
 0x425   : > { %1396 = vst.msk [vmem:[#allocation3 + $0xb8] sm:$0xf] %vm1372_vm2, %v1344_v24  ;;  %v3209_v24 = vrot.slane %v4578_v50, 2 }
 0x426   : > { %2859 = vst [vmem:[#allocation1 + $0x20] ss:$4 sm:$0xff] %v2772_v28  ;;  %v2551_v28 = vpack.c.bf16 %v5870_v16, %v5870_v16  ;;  %v2780_v16 = vrot.slane %v4551_v59, 6 }
 0x427   : > { %2860 = vst [vmem:[#allocation1 + $0x21] ss:$4 sm:$0xff] %v5297_v43  ;;  %v2778_v43 = vrot.slane %v4551_v59, 2 }
 0x428   : > { %2861 = vst [vmem:[#allocation1 + $0x22] ss:$4 sm:$0xff] %v7190_v0  ;;  %v4580_v0 = vld [vmem:[#allocation2 + $0x69] sm:$0x3f] }
 0x429   : > { %2862 = vst [vmem:[#allocation1 + $0x23] ss:$4 sm:$0xff] %v7191_v26 }
 0x42a   : > { %1398 = vst.msk [vmem:[#allocation3 + $0xc0] sm:$0x3] %vm1397_vm5, %v1346_v33 }
 0x42b   : > { %v6163_v8 = vld.sshfl [vmem:[#allocation1] sm:$0xff pattern:$0x73625140]  ;;  %2197 = vrot.lane.b32.xlu0 %v2131_v11, %s4905_s6  ;;  %v1338_v3 = vpop.permute.xlu0 %1337  ;;  %v7192_v11 = vrot.slane %v5650_v5, 6  ;;  %v1743_v26 = vpop.permute.xlu1 %1742 }
 0x42c   : > { %3288 = vst [vmem:[#allocation1] ss:$4 sm:$0xff] %v7188_v10  ;;  %v2566_v10 = vpack.c.bf16 %v5843_v53, %v5843_v53 }
 0x42d   : > { %3289 = vst [vmem:[#allocation1 + $0x1] ss:$4 sm:$0xff] %v7189_v46  ;;  %v3210_v46 = vrot.slane %v4578_v50, 4 }
 0x42e   : > { %3290 = vst [vmem:[#allocation1 + $0x2] ss:$4 sm:$0xff] %v6159_v56  ;;  %2634 = vrot.lane.b32.xlu1 %v2566_v10, %s4906_s7  ;;  %v7195_v10 = vld [vmem:[#allocation46_spill] sm:$0xff] }
 0x42f   : > { %3291 = vst [vmem:[#allocation1 + $0x3] ss:$4 sm:$0xff] %v3204_v27  ;;  %v2127_v27 = vpack.c.bf16 %v5573_v13, %v5573_v13  ;;  %v2779_v13 = vrot.slane %v4551_v59, 4 }
 0x430   : > { %1393 = vst.msk [vmem:[#allocation3 + $0xa0] sm:$0xf] %vm1372_vm2, %v1338_v3  ;;  %v1739_v3 = vpop.permute.xlu2 %1738  ;;  %v6202_v53 = vld.sshfl [vmem:[#allocation1 + $0x20] sm:$0xff pattern:$0x73625140]  ;;  %vm4321_vm2 = vcmask 257024  }
 0x431   : > { %2189 = vrot.lane.b32.xlu2 %v2127_v27, %s4905_s6  ;;  %2869 = vst [vmem:[#allocation1 + $0x20] ss:$4 sm:$0xff] %v4551_v59  ;;  %v2568_v27 = vpack.c.bf16 %v7194_v20, %v7194_v20  ;;  %v7196_v20 = vld [vmem:[#allocation13_spill] sm:$0xff]  ;;  %v7197_v59 = vld [vmem:[#allocation22_spill] sm:$0xff] }
 0x432   : > { %2870 = vst [vmem:[#allocation1 + $0x21] ss:$4 sm:$0xff] %v2778_v43  ;;  %v2135_v43 = vpack.c.bf16 %v7197_v59, %v7197_v59  ;;  %v7201_v59 = vrot.slane %v5316_v2, 2 }
 0x433   : > { %2604 = vrot.lane.b32.xlu0 %v2551_v28, %s4906_s7  ;;  %2871 = vst [vmem:[#allocation1 + $0x22] ss:$4 sm:$0xff] %v2779_v13  ;;  %v3215_v28 = vrot.slane %v4580_v0, 4  ;;  %v1737_v13 = vpop.permute.xlu1 %1736 }
 0x434   : > { %2872 = vst [vmem:[#allocation1 + $0x23] ss:$4 sm:$0xff] %v2780_v16  ;;  %v1735_v16 = vpop.permute.xlu0 %1734 }
 0x435   : > { %1811 = vst.msk [vmem:[#allocation3 + $0x18] sm:$0xf] %vm1807_vm6, %v1739_v3  ;;  %v7199_v3 = vld [vmem:[#allocation15_spill] sm:$0xff] }
 0x436   : > { %v6195_v48 = vld.sshfl [vmem:[#allocation1] sm:$0xff pattern:$0x73625140]  ;;  %2638 = vrot.lane.b32.xlu1 %v2568_v27, %s4906_s7  ;;  %1813 = vst.msk [vmem:[#allocation3 + $0x28] sm:$0xf] %vm1807_vm6, %v1743_v26  ;;  %v7200_v26 = vrot.slane %v7199_v3, 2 }
 0x437   : > { %3298 = vst [vmem:[#allocation1] ss:$4 sm:$0xff] %v7192_v11  ;;  %v2133_v11 = vpack.c.bf16 %v7193_v49, %v7193_v49 }
 0x438   : > { %3299 = vst [vmem:[#allocation1 + $0x1] ss:$4 sm:$0xff] %v4578_v50  ;;  %v2553_v50 = vpack.c.bf16 %v7195_v10, %v7195_v10  ;;  %v1733_v49 = vpop.permute.xlu2 %1732 }
 0x439   : > { %3300 = vst [vmem:[#allocation1 + $0x2] ss:$4 sm:$0xff] %v3209_v24  ;;  %v3214_v24 = vrot.slane %v4580_v0, 2  ;;  %2201 = vrot.lane.b32.xlu2 %v2133_v11, %s4905_s6  ;;  %v6220_v11 = vld [vmem:[#allocation2 + $0x79] sm:$0x3f] }
 0x43a   : > { %3301 = vst [vmem:[#allocation1 + $0x3] ss:$4 sm:$0xff] %v3210_v46  ;;  %v3220_v27 = vrot.slane %v6220_v11, 4 }
 0x43b   : > { %2608 = vrot.lane.b32.xlu0 %v2553_v50, %s4906_s7  ;;  %1808 = vst.msk [vmem:[#allocation3] sm:$0xf] %vm1807_vm6, %v1733_v49  ;;  %v1755_v50 = vpop.permute.xlu1 %1754  ;;  %v6238_v49 = vld [vmem:[#allocation2 + $0x89] sm:$0x3f] }
 0x43c   : > { %1810 = vst.msk [vmem:[#allocation3 + $0x10] sm:$0xf] %vm1807_vm6, %v1737_v13  ;;  %v7202_v13 = vrot.slane %v5316_v2, 4 }
 0x43d   : > { %1809 = vst.msk [vmem:[#allocation3 + $0x8] sm:$0xf] %vm1807_vm6, %v1735_v16  ;;  %v7203_v16 = vrot.slane %v5316_v2, 6  ;;  %v7209_v2 = vrot.slane %v5352_v45, 4 }
 0x43e   : > { %1819 = vst.msk [vmem:[#allocation3 + $0x58] sm:$0xf] %vm1807_vm6, %v1755_v50  ;;  %v2791_v50 = vrot.slane %v5998_v34, 2 }
 0x440   : > { %v1751_v33 = vpop.permute.xlu2 %1750 }
 0x441   : > { %v6213_v46 = vld.sshfl [vmem:[#allocation1] sm:$0xff pattern:$0x73625140]  ;;  %2205 = vrot.lane.b32.xlu2 %v2135_v43, %s4905_s6  ;;  %1817 = vst.msk [vmem:[#allocation3 + $0x48] sm:$0xf] %vm1807_vm6, %v1751_v33  ;;  %v3225_v43 = vrot.slane %v6238_v49, 4 }
 0x442   : > { %3308 = vst [vmem:[#allocation1] ss:$4 sm:$0xff] %v4580_v0  ;;  %v3219_v0 = vrot.slane %v6220_v11, 2 }
 0x443   : > { %3309 = vst [vmem:[#allocation1 + $0x1] ss:$4 sm:$0xff] %v3214_v24  ;;  %v6234_v24 = vld.sshfl [vmem:[#allocation1 + $0x20] sm:$0xff pattern:$0x73625140] }
 0x444   : > { %3310 = vst [vmem:[#allocation1 + $0x2] ss:$4 sm:$0xff] %v3215_v28  ;;  %v1747_v28 = vpop.permute.xlu0 %1746 }
 0x445   : > { %3311 = vst [vmem:[#allocation1 + $0x3] ss:$4 sm:$0xff] %v7196_v20 }
 0x446   : > { %1815 = vst.msk [vmem:[#allocation3 + $0x38] sm:$0xf] %vm1807_vm6, %v1747_v28 }
 0x447   : > { %2879 = vst [vmem:[#allocation1 + $0x20] ss:$4 sm:$0xff] %v7201_v59 }
 0x448   : > { %2880 = vst [vmem:[#allocation1 + $0x21] ss:$4 sm:$0xff] %v7202_v13 }
 0x449   : > { %2881 = vst [vmem:[#allocation1 + $0x22] ss:$4 sm:$0xff] %v7203_v16  ;;  %v4558_v16 = vld [vmem:[#allocation2 + $0x98] sm:$0x3f] }
 0x44a   : > { %2882 = vst [vmem:[#allocation1 + $0x23] ss:$4 sm:$0xff] %v5978_v32  ;;  %v7210_v32 = vrot.slane %v5352_v45, 6  ;;  %v2797_v45 = vrot.slane %v4558_v16, 4 }
 0x44c   : > { %v6228_v10 = vld.sshfl [vmem:[#allocation1] sm:$0xff pattern:$0x73625140] }
 0x44d   : > { %7198 = vst [vmem:[#allocation21_spill] sm:$0xff] %v6228_v10 }
 0x44e   : > { %3318 = vst [vmem:[#allocation1] ss:$4 sm:$0xff] %v3219_v0 }
 0x44f   : > { %3319 = vst [vmem:[#allocation1 + $0x1] ss:$4 sm:$0xff] %v3220_v27  ;;  %v7205_v27 = vld [vmem:[#allocation17_spill] sm:$0xff] }
 0x450   : > { %3320 = vst [vmem:[#allocation1 + $0x2] ss:$4 sm:$0xff] %v7199_v3  ;;  %v7206_v33 = vrot.slane %v7205_v27, 2 }
 0x451   : > { %3321 = vst [vmem:[#allocation1 + $0x3] ss:$4 sm:$0xff] %v7200_v26  ;;  %v7207_v26 = vrot.slane %v7205_v27, 4  ;;  %v6256_v28 = vld.sshfl [vmem:[#allocation1 + $0x20] sm:$0xff pattern:$0x73625140] }
 0x452   : > { %7208 = vst [vmem:[#allocation46_spill] sm:$0xff] %v6256_v28 }
 0x453   : > { %2889 = vst [vmem:[#allocation1 + $0x20] ss:$4 sm:$0xff] %v7209_v2  ;;  %v2796_v2 = vrot.slane %v4558_v16, 2 }
 0x454   : > { %2890 = vst [vmem:[#allocation1 + $0x21] ss:$4 sm:$0xff] %v7210_v32 }
 0x455   : > { %2891 = vst [vmem:[#allocation1 + $0x22] ss:$4 sm:$0xff] %v5998_v34  ;;  %v7216_v34 = vrot.slane %v5374_v41, 6  ;;  %v2801_v41 = vrot.slane %v4560_v58, 2 }
 0x456   : > { %2892 = vst [vmem:[#allocation1 + $0x23] ss:$4 sm:$0xff] %v2791_v50 }
 0x458   : > { %v6248_v0 = vld.sshfl [vmem:[#allocation1] sm:$0xff pattern:$0x73625140] }
 0x459   : > { %7204 = vst [vmem:[#allocation42_spill] sm:$0xff] %v6248_v0 }
 0x45a   : > { %3328 = vst [vmem:[#allocation1] ss:$4 sm:$0xff] %v3225_v43  ;;  %v7211_v43 = vld [vmem:[#allocation18_spill] sm:$0xff] }
 0x45b   : > { %3329 = vst [vmem:[#allocation1 + $0x1] ss:$4 sm:$0xff] %v7205_v27  ;;  %v7212_v13 = vrot.slane %v7211_v43, 2 }
 0x45c   : > { %3330 = vst [vmem:[#allocation1 + $0x2] ss:$4 sm:$0xff] %v7206_v33  ;;  %v7213_v33 = vrot.slane %v7211_v43, 4 }
 0x45d   : > { %3331 = vst [vmem:[#allocation1 + $0x3] ss:$4 sm:$0xff] %v7207_v26  ;;  %v7214_v26 = vrot.slane %v7211_v43, 6  ;;  %v6272_v32 = vld.sshfl [vmem:[#allocation1 + $0x20] sm:$0xff pattern:$0x73625140] }
 0x45e   : > { %7215 = vst [vmem:[#allocation13_spill] sm:$0xff] %v6272_v32 }
 0x45f   : > { %2899 = vst [vmem:[#allocation1 + $0x20] ss:$4 sm:$0xff] %v7216_v34  ;;  %v7221_v34 = vld [vmem:[#allocation26_spill] sm:$0xff] }
 0x460   : > { %2900 = vst [vmem:[#allocation1 + $0x21] ss:$4 sm:$0xff] %v4558_v16  ;;  %v2802_v16 = vrot.slane %v4560_v58, 4 }
 0x461   : > { %2901 = vst [vmem:[#allocation1 + $0x22] ss:$4 sm:$0xff] %v2796_v2 }
 0x462   : > { %2902 = vst [vmem:[#allocation1 + $0x23] ss:$4 sm:$0xff] %v2797_v45  ;;  %v6287_v45 = vld [vmem:[#allocation2 + $0xc9] sm:$0x3f] }
 0x463   : > { %v3244_v32 = vrot.slane %v6287_v45, 2 }
 0x464   : > { %v6263_v59 = vld.sshfl [vmem:[#allocation1] sm:$0xff pattern:$0x73625140] }
 0x465   : > { %3338 = vst [vmem:[#allocation1] ss:$4 sm:$0xff] %v7211_v43  ;;  %v6282_v43 = vld [vmem:[#allocation2 + $0xb9] sm:$0x3f] }
 0x466   : > { %3339 = vst [vmem:[#allocation1 + $0x1] ss:$4 sm:$0xff] %v7212_v13  ;;  %v7217_v13 = vld [vmem:[#allocation19_spill] sm:$0xff] }
 0x467   : > { %3340 = vst [vmem:[#allocation1 + $0x2] ss:$4 sm:$0xff] %v7213_v33  ;;  %v7218_v0 = vrot.slane %v7217_v13, 2  ;;  %v7219_v33 = vrot.slane %v7217_v13, 4 }
 0x468   : > { %3341 = vst [vmem:[#allocation1 + $0x3] ss:$4 sm:$0xff] %v7214_v26  ;;  %v7220_v26 = vrot.slane %v7217_v13, 6 }
 0x469   : > { %v2904_v2 = vld.sshfl [vmem:[#allocation1 + $0x20] sm:$0xff pattern:$0x73625140] }
 0x46a   : > { %2909 = vst [vmem:[#allocation1 + $0x20] ss:$4 sm:$0xff] %v4560_v58 }
 0x46b   : > { %2910 = vst [vmem:[#allocation1 + $0x21] ss:$4 sm:$0xff] %v2801_v41  ;;  %v1749_v41 = vpop.permute.xlu1 %1748 }
 0x46c   : > { %2911 = vst [vmem:[#allocation1 + $0x22] ss:$4 sm:$0xff] %v2802_v16  ;;  %v1741_v16 = vpop.permute.xlu0 %1740 }
 0x46d   : > { %2912 = vst [vmem:[#allocation1 + $0x23] ss:$4 sm:$0xff] %v5434_v17  ;;  %v1745_v17 = vpop.permute.xlu2 %1744 }
 0x46e   : > { %1814 = vst.msk [vmem:[#allocation3 + $0x30] sm:$0xf] %vm1807_vm6, %v1745_v17 }
 0x46f   : > { %v6276_v50 = vld.sshfl [vmem:[#allocation1] sm:$0xff pattern:$0x73625140]  ;;  %1816 = vst.msk [vmem:[#allocation3 + $0x40] sm:$0xf] %vm1807_vm6, %v1749_v41 }
 0x470   : > { %3348 = vst [vmem:[#allocation1] ss:$4 sm:$0xff] %v7218_v0  ;;  %v2996_v0 = vpack.c.bf16 %v2904_v2, %v2904_v2  ;;  %v2806_v2 = vrot.slane %v6052_v25, 2 }
 0x471   : > { %3349 = vst [vmem:[#allocation1 + $0x1] ss:$4 sm:$0xff] %v7219_v33  ;;  %v2548_v33 = vpack.c.bf16 %v7221_v34, %v7221_v34 }
 0x472   : > { %3350 = vst [vmem:[#allocation1 + $0x2] ss:$4 sm:$0xff] %v7220_v26  ;;  %v7222_v26 = vld [vmem:[#allocation20_spill] sm:$0xff]  ;;  %3059 = vrot.lane.b32.xlu1 %v2996_v0, %s4907_s8  ;;  %v2561_v0 = vpack.c.bf16 %v6026_v9, %v6026_v9 }
 0x473   : > { %3351 = vst [vmem:[#allocation1 + $0x3] ss:$4 sm:$0xff] %v6282_v43  ;;  %v7223_v60 = vrot.slane %v7222_v26, 4  ;;  %2598 = vrot.lane.b32.xlu0 %v2548_v33, %s4906_s7  ;;  %v7224_v58 = vrot.slane %v7222_v26, 6  ;;  %v2985_v33 = vpack.c.bf16 %v5922_v57, %v5922_v57  ;;  %v1767_v10 = vpop.permute.xlu1 %1766  ;;  %v7226_v57 = vrot.slane %v7225_v54, 6 }
 0x474   : > { %v6304_v34 = vld.sshfl [vmem:[#allocation1 + $0x20] sm:$0xff pattern:$0x73625140]  ;;  %1812 = vst.msk [vmem:[#allocation3 + $0x20] sm:$0xf] %vm1807_vm6, %v1741_v16  ;;  %2624 = vrot.lane.b32.xlu2 %v2561_v0, %s4906_s7  ;;  %v1759_v55 = vpop.permute.xlu0 %1758  ;;  %v2807_v0 = vrot.slane %v6052_v25, 4 }
 0x475   : > { %2921 = vst [vmem:[#allocation1 + $0x22] ss:$4 sm:$0xff] %v5456_v23  ;;  %v1763_v9 = vpop.permute.xlu2 %1762 }
 0x476   : > { %2919 = vst [vmem:[#allocation1 + $0x20] ss:$4 sm:$0xff] %v2806_v2  ;;  %v2987_v2 = vpack.c.bf16 %v5949_v1, %v5949_v1 }
 0x477   : > { %1823 = vst.msk [vmem:[#allocation3 + $0x78] sm:$0xf] %vm1807_vm6, %v1763_v9 }
 0x478   : > { %1825 = vst.msk [vmem:[#allocation3 + $0x88] sm:$0xf] %vm1807_vm6, %v1767_v10 }
 0x479   : > { %1821 = vst.msk [vmem:[#allocation3 + $0x68] sm:$0xf] %vm1807_vm6, %v1759_v55  ;;  %v6340_v55 = vld [vmem:[#allocation2 + $0xf1] sm:$0xff] }
 0x47a   : > { %v6293_v28 = vld.sshfl [vmem:[#allocation1] sm:$0xff pattern:$0x73625140]  ;;  %3037 = vrot.lane.b32.xlu1 %v2985_v33, %s4907_s8  ;;  %v4596_v33 = vld [vmem:[#allocation2 + $0xe9] sm:$0x3f] }
 0x47b   : > { %3358 = vst [vmem:[#allocation1] ss:$4 sm:$0xff] %v7223_v60  ;;  %v4594_v60 = vld [vmem:[#allocation2 + $0xd9] sm:$0x3f]  ;;  %v1761_v1 = vpop.permute.xlu1 %1760  ;;  %v3255_v25 = vrot.slane %v4596_v33, 4 }
 0x47c   : > { %3359 = vst [vmem:[#allocation1 + $0x1] ss:$4 sm:$0xff] %v7224_v58  ;;  %v3249_v58 = vrot.slane %v4594_v60, 2  ;;  %v3250_v17 = vrot.slane %v4594_v60, 4  ;;  %v1753_v9 = vpop.permute.xlu0 %1752 }
 0x47d   : > { %3360 = vst [vmem:[#allocation1 + $0x2] ss:$4 sm:$0xff] %v6287_v45 }
 0x47e   : > { %3361 = vst [vmem:[#allocation1 + $0x3] ss:$4 sm:$0xff] %v3244_v32  ;;  %v2565_v32 = vpack.c.bf16 %v6063_v29, %v6063_v29  ;;  %v7227_v29 = vld [vmem:[#allocation29_spill] sm:$0xff] }
 0x47f   : > { %v2550_v16 = vpack.c.bf16 %v7227_v29, %v7227_v29  ;;  %2920 = vst [vmem:[#allocation1 + $0x21] ss:$4 sm:$0xff] %v2807_v0 }
 0x480   : > { %2632 = vrot.lane.b32.xlu0 %v2565_v32, %s4906_s7  ;;  %v3254_v32 = vrot.slane %v4596_v33, 2  ;;  %1822 = vst.msk [vmem:[#allocation3 + $0x70] sm:$0xf] %vm1807_vm6, %v1761_v1  ;;  %v4567_v1 = vld [vmem:[#allocation2 + $0xe0] sm:$0xff] }
 0x481   : > { %2602 = vrot.lane.b32.xlu2 %v2550_v16, %s4906_s7  ;;  %1818 = vst.msk [vmem:[#allocation3 + $0x50] sm:$0xf] %vm1807_vm6, %v1753_v9  ;;  %v6346_v16 = vld [vmem:[#allocation2 + $0xf9] sm:$0x3f]  ;;  %v7235_v9 = vld [vmem:[#allocation25_spill] sm:$0xff] }
 0x482   : > { %3041 = vrot.lane.b32.xlu1 %v2987_v2, %s4907_s8  ;;  %v7230_v2 = vrot.slane %v5456_v23, 2  ;;  %v3259_v0 = vrot.slane %v6346_v16, 2  ;;  %v7233_v23 = vrot.slane %v5468_v62, 4 }
 0x484   : > { %2922 = vst [vmem:[#allocation1 + $0x23] ss:$4 sm:$0xff] %v7230_v2  ;;  %v2819_v2 = vrot.slane %v4567_v1, 4 }
 0x485   : > { %v6318_v41 = vld.sshfl [vmem:[#allocation1] sm:$0xff pattern:$0x73625140] }
 0x486   : > { %3368 = vst [vmem:[#allocation1] ss:$4 sm:$0xff] %v7226_v57  ;;  %v7229_v57 = vld [vmem:[#allocation32_spill] sm:$0xff] }
 0x487   : > { %3369 = vst [vmem:[#allocation1 + $0x1] ss:$4 sm:$0xff] %v4594_v60  ;;  %v1757_v60 = vpop.permute.xlu2 %1756  ;;  %v2552_v29 = vpack.c.bf16 %v7229_v57, %v7229_v57  ;;  %v2818_v57 = vrot.slane %v4567_v1, 2 }
 0x488   : > { %3370 = vst [vmem:[#allocation1 + $0x2] ss:$4 sm:$0xff] %v3249_v58  ;;  %v7228_v58 = vld [vmem:[#allocation39_spill] sm:$0xff] }
 0x489   : > { %3371 = vst [vmem:[#allocation1 + $0x3] ss:$4 sm:$0xff] %v3250_v17  ;;  %v2562_v17 = vpack.c.bf16 %v7228_v58, %v7228_v58  ;;  %2606 = vrot.lane.b32.xlu2 %v2552_v29, %s4906_s7  ;;  %v7237_v29 = vrot.slane %v7235_v9, 4 }
 0x48a   : > { %1820 = vst.msk [vmem:[#allocation3 + $0x60] sm:$0xf] %vm1807_vm6, %v1757_v60  ;;  %v3260_v60 = vrot.slane %v6346_v16, 4 }
 0x48b   : > { %2626 = vrot.lane.b32.xlu0 %v2562_v17, %s4906_s7  ;;  %v7232_v17 = vrot.slane %v5468_v62, 2 }
 0x490   : > { %v6336_v10 = vld.sshfl [vmem:[#allocation1] sm:$0xff pattern:$0x73625140] }
 0x491   : > { %3378 = vst [vmem:[#allocation1] ss:$4 sm:$0xff] %v4596_v33  ;;  %v2812_v33 = vrot.slane %v6068_v42, 4  ;;  %v7236_v42 = vrot.slane %v7235_v9, 2 }
 0x492   : > { %3379 = vst [vmem:[#allocation1 + $0x1] ss:$4 sm:$0xff] %v3254_v32  ;;  %v6355_v32 = vld.sshfl [vmem:[#allocation1 + $0x20] sm:$0xff pattern:$0x73625140] }
 0x493   : > { %3380 = vst [vmem:[#allocation1 + $0x2] ss:$4 sm:$0xff] %v3255_v25 }
 0x494   : > { %3381 = vst [vmem:[#allocation1 + $0x3] ss:$4 sm:$0xff] %v6340_v55 }
 0x495   : > { %2929 = vst [vmem:[#allocation1 + $0x20] ss:$4 sm:$0xff] %v2812_v33  ;;  %v2820_v33 = vrot.slane %v4567_v1, 6 }
 0x496   : > { %2930 = vst [vmem:[#allocation1 + $0x21] ss:$4 sm:$0xff] %v5468_v62 }
 0x497   : > { %2931 = vst [vmem:[#allocation1 + $0x22] ss:$4 sm:$0xff] %v7232_v17  ;;  %v2984_v17 = vpack.c.bf16 %v6144_v63, %v6144_v63 }
 0x498   : > { %2932 = vst [vmem:[#allocation1 + $0x23] ss:$4 sm:$0xff] %v7233_v23  ;;  %v1775_v23 = vpop.permute.xlu2 %1774 }
 0x499   : > { %3035 = vrot.lane.b32.xlu0 %v2984_v17, %s4907_s8  ;;  %1829 = vst.msk [vmem:[#allocation3 + $0xa8] sm:$0xf] %vm1807_vm6, %v1775_v23  ;;  %v2824_v17 = vrot.slane %v6109_v15, 4 }
 0x49b   : > { %v6353_v58 = vld.sshfl [vmem:[#allocation1] sm:$0xff pattern:$0x73625140] }
 0x49c   : > { %7231 = vst [vmem:[#allocation22_spill] sm:$0xff] %v6353_v58  ;;  %v3001_v58 = vpack.c.bf16 %v6089_v52, %v6089_v52  ;;  %v3205_v52 = vrot.slane %v6159_v56, 4 }
 0x49d   : > { %3388 = vst [vmem:[#allocation1] ss:$4 sm:$0xff] %v3259_v0  ;;  %v7238_v0 = vrot.slane %v7235_v9, 6 }
 0x49e   : > { %3389 = vst [vmem:[#allocation1 + $0x1] ss:$4 sm:$0xff] %v3260_v60 }
 0x49f   : > { %v2934_v60 = vld.sshfl [vmem:[#allocation1 + $0x20] sm:$0xff pattern:$0x73625140] }
 0x4a0   : > { %v3002_v62 = vpack.c.bf16 %v2934_v60, %v2934_v60  ;;  %2939 = vst [vmem:[#allocation1 + $0x20] ss:$4 sm:$0xff] %v4567_v1  ;;  %v2567_v1 = vpack.c.bf16 %v6098_v44, %v6098_v44  ;;  %v2823_v60 = vrot.slane %v6109_v15, 2  ;;  %v2825_v44 = vrot.slane %v6109_v15, 6 }
 0x4a1   : > { %2940 = vst [vmem:[#allocation1 + $0x21] ss:$4 sm:$0xff] %v2818_v57  ;;  %v6385_v57 = vld [vmem:[#allocation2 + $0x3a] sm:$0x3f] }
 0x4a2   : > { %3071 = vrot.lane.b32.xlu1 %v3002_v62, %s4907_s8  ;;  %2941 = vst [vmem:[#allocation1 + $0x22] ss:$4 sm:$0xff] %v2819_v2  ;;  %2636 = vrot.lane.b32.xlu2 %v2567_v1, %s4906_s7  ;;  %v4572_v1 = vld [vmem:[#allocation2 + $0x29] sm:$0x3f] }
 0x4a3   : > { %2942 = vst [vmem:[#allocation1 + $0x23] ss:$4 sm:$0xff] %v2820_v33  ;;  %v1771_v33 = vpop.permute.xlu0 %1770 }
 0x4a4   : > { %1827 = vst.msk [vmem:[#allocation3 + $0x98] sm:$0xf] %vm1807_vm6, %v1771_v33 }
 0x4a5   : > { %v6362_v25 = vld.sshfl [vmem:[#allocation1] sm:$0xff pattern:$0x73625140] }
 0x4a6   : > { %7234 = vst [vmem:[#allocation15_spill] sm:$0xff] %v6362_v25 }
 0x4a7   : > { %3694 = vst [vmem:[#allocation1] ss:$4 sm:$0xff] %v7235_v9 }
 0x4a8   : > { %3696 = vst [vmem:[#allocation1 + $0x1] ss:$4 sm:$0xff] %v7236_v42  ;;  %v1779_v42 = vpop.permute.xlu1 %1778 }
 0x4a9   : > { %3698 = vst [vmem:[#allocation1 + $0x2] ss:$4 sm:$0xff] %v7237_v29  ;;  %v7239_v29 = vld [vmem:[#allocation28_spill] sm:$0xff] }
 0x4aa   : > { %3700 = vst [vmem:[#allocation1 + $0x3] ss:$4 sm:$0xff] %v7238_v0  ;;  %v7240_v0 = vrot.slane %v7239_v29, 2  ;;  %v7241_v63 = vrot.slane %v7239_v29, 4  ;;  %v7242_v2 = vrot.slane %v7239_v29, 6 }
 0x4ab   : > { %1831 = vst.msk [vmem:[#allocation3 + $0xb8] sm:$0xf] %vm1807_vm6, %v1779_v42  ;;  %v2944_v62 = vld.sshfl [vmem:[#allocation1 + $0x20] sm:$0xff pattern:$0x73625140]  ;;  %v2998_v42 = vpack.c.bf16 %v6304_v34, %v6304_v34 }
 0x4ac   : > { %v3004_v23 = vpack.c.bf16 %v2944_v62, %v2944_v62  ;;  %2952 = vst [vmem:[#allocation1 + $0x23] ss:$4 sm:$0xff] %v6117_v36  ;;  %v7243_v36 = vld [vmem:[#allocation31_spill] sm:$0xff]  ;;  %v3194_v62 = vrot.slane %v4572_v1, 2 }
 0x4ad   : > { %2949 = vst [vmem:[#allocation1 + $0x20] ss:$4 sm:$0xff] %v2823_v60  ;;  %3063 = vrot.lane.b32.xlu0 %v2998_v42, %s4907_s8  ;;  %v7244_v15 = vrot.slane %v7243_v36, 4  ;;  %v7245_v34 = vrot.slane %v7243_v36, 6  ;;  %v2569_v60 = vpack.c.bf16 %v6115_v61, %v6115_v61  ;;  %v4606_v42 = vld [vmem:[#allocation2 + $0x5a] sm:$0x3f] }
 0x4ae   : > { %3075 = vrot.lane.b32.xlu1 %v3004_v23, %s4907_s8  ;;  %2950 = vst [vmem:[#allocation1 + $0x21] ss:$4 sm:$0xff] %v2824_v17  ;;  %v1765_v17 = vpop.permute.xlu0 %1764  ;;  %v3195_v23 = vrot.slane %v4572_v1, 4 }
 0x4af   : > { %2951 = vst [vmem:[#allocation1 + $0x22] ss:$4 sm:$0xff] %v2825_v44  ;;  %2640 = vrot.lane.b32.xlu2 %v2569_v60, %s4906_s7  ;;  %v2995_v60 = vpack.c.bf16 %v6028_v31, %v6028_v31 }
 0x4b0   : > { %1824 = vst.msk [vmem:[#allocation3 + $0x80] sm:$0xf] %vm1807_vm6, %v1765_v17  ;;  %v4608_v17 = vld [vmem:[#allocation2 + $0x6a] sm:$0x3f] }
 0x4b1   : > { %v6376_v9 = vld.sshfl [vmem:[#allocation1] sm:$0xff pattern:$0x73625140] }
 0x4b2   : > { %3711 = vst [vmem:[#allocation1] ss:$4 sm:$0xff] %v7240_v0  ;;  %v6399_v0 = vld [vmem:[#allocation2 + $0x4a] sm:$0x3f] }
 0x4b3   : > { %3712 = vst [vmem:[#allocation1 + $0x1] ss:$4 sm:$0xff] %v7241_v63  ;;  %v1769_v63 = vpop.permute.xlu2 %1768 }
 0x4b4   : > { %3713 = vst [vmem:[#allocation1 + $0x2] ss:$4 sm:$0xff] %v7242_v2  ;;  %v3637_v2 = vrot.slane %v6399_v0, 2 }
 0x4b5   : > { %3714 = vst [vmem:[#allocation1 + $0x3] ss:$4 sm:$0xff] %v6385_v57  ;;  %3057 = vrot.lane.b32.xlu0 %v2995_v60, %s4907_s8 }
 0x4b6   : > { %1826 = vst.msk [vmem:[#allocation3 + $0x90] sm:$0xf] %vm1807_vm6, %v1769_v63  ;;  %v6415_v44 = vld.sshfl [vmem:[#allocation1 + $0x20] sm:$0xff pattern:$0x73625140]  ;;  %v2168_v63 = vpop.permute.xlu1 %2167  ;;  %v2172_v31 = vpop.permute.xlu0 %2171 }
 0x4b7   : > { %3269 = vst [vmem:[#allocation1 + $0x20] ss:$4 sm:$0xff] %v4572_v1  ;;  %v3199_v1 = vrot.slane %v6146_v51, 2 }
 0x4b8   : > { %3271 = vst [vmem:[#allocation1 + $0x21] ss:$4 sm:$0xff] %v3194_v62  ;;  %v3200_v62 = vrot.slane %v6146_v51, 4 }
 0x4b9   : > { %3273 = vst [vmem:[#allocation1 + $0x22] ss:$4 sm:$0xff] %v3195_v23  ;;  %v3647_v23 = vrot.slane %v4608_v17, 2 }
 0x4ba   : > { %3275 = vst [vmem:[#allocation1 + $0x23] ss:$4 sm:$0xff] %v5516_v6 }
 0x4bb   : > { %2242 = vst.msk [vmem:[#allocation3 + $0x8] sm:$0xf] %vm2240_vm7, %v2168_v63  ;;  %v2176_v51 = vpop.permute.xlu2 %2175  ;;  %v6446_v63 = vld [vmem:[#allocation2 + $0x7a] sm:$0x3f] }
 0x4bc   : > { %v6403_v33 = vld.sshfl [vmem:[#allocation1] sm:$0xff pattern:$0x73625140]  ;;  %2246 = vst.msk [vmem:[#allocation3 + $0x28] sm:$0xf] %vm2240_vm7, %v2176_v51  ;;  %v7253_v51 = vrot.slane %v5650_v5, 4 }
 0x4bd   : > { %3721 = vst [vmem:[#allocation1] ss:$4 sm:$0xff] %v7244_v15  ;;  %v3642_v15 = vrot.slane %v4606_v42, 2  ;;  %3069 = vrot.lane.b32.xlu0 %v3001_v58, %s4907_s8  ;;  %v2986_v58 = vpack.c.bf16 %v6180_v37, %v6180_v37  ;;  %v7251_v37 = vrot.slane %v5650_v5, 2 }
 0x4be   : > { %3722 = vst [vmem:[#allocation1 + $0x1] ss:$4 sm:$0xff] %v7245_v34  ;;  %v3643_v34 = vrot.slane %v4606_v42, 4 }
 0x4bf   : > { %3723 = vst [vmem:[#allocation1 + $0x2] ss:$4 sm:$0xff] %v6399_v0 }
 0x4c0   : > { %3724 = vst [vmem:[#allocation1 + $0x3] ss:$4 sm:$0xff] %v3637_v2  ;;  %v7247_v2 = vld [vmem:[#allocation45_spill] sm:$0xff] }
 0x4c1   : > { %v7248_v25 = vrot.slane %v7247_v2, 6  ;;  %v6427_v6 = vld.sshfl [vmem:[#allocation1 + $0x20] sm:$0xff pattern:$0x73625140]  ;;  %2244 = vst.msk [vmem:[#allocation3 + $0x18] sm:$0xf] %vm2240_vm7, %v2172_v31 }
 0x4c2   : > { %3282 = vst [vmem:[#allocation1 + $0x20] ss:$4 sm:$0xff] %v3199_v1 }
 0x4c3   : > { %3283 = vst [vmem:[#allocation1 + $0x21] ss:$4 sm:$0xff] %v3200_v62  ;;  %v1781_v31 = vpop.permute.xlu2 %1780 }
 0x4c4   : > { %3284 = vst [vmem:[#allocation1 + $0x22] ss:$4 sm:$0xff] %v5530_v12 }
 0x4c5   : > { %1833 = vst.msk [vmem:[#allocation3 + $0xc0] sm:$0x3] %vm1832_vm8, %v1781_v31 }
 0x4c7   : > { %v6418_v61 = vld.sshfl [vmem:[#allocation1] sm:$0xff pattern:$0x73625140] }
 0x4c8   : > { %7246 = vst [vmem:[#allocation17_spill] sm:$0xff] %v6418_v61 }
 0x4c9   : > { %3731 = vst [vmem:[#allocation1] ss:$4 sm:$0xff] %v7248_v25  ;;  %v1773_v25 = vpop.permute.xlu1 %1772 }
 0x4ca   : > { %3732 = vst [vmem:[#allocation1 + $0x1] ss:$4 sm:$0xff] %v4606_v42  ;;  %v3648_v42 = vrot.slane %v4608_v17, 4 }
 0x4cb   : > { %3733 = vst [vmem:[#allocation1 + $0x2] ss:$4 sm:$0xff] %v3642_v15  ;;  %v7249_v15 = vrot.slane %v5530_v12, 2 }
 0x4cc   : > { %3734 = vst [vmem:[#allocation1 + $0x3] ss:$4 sm:$0xff] %v3643_v34  ;;  %v7250_v34 = vld [vmem:[#allocation40_spill] sm:$0xff] }
 0x4cd   : > { %3285 = vst [vmem:[#allocation1 + $0x23] ss:$4 sm:$0xff] %v7249_v15  ;;  %v2564_v60 = vpack.c.bf16 %v7250_v34, %v7250_v34  ;;  %v7252_v15 = vrot.slane %v5750_v4, 2  ;;  %v3003_v34 = vpack.c.bf16 %v6107_v19, %v6107_v19 }
 0x4ce   : > { %1828 = vst.msk [vmem:[#allocation3 + $0xa0] sm:$0xf] %vm1807_vm6, %v1773_v25  ;;  %v3653_v25 = vrot.slane %v6446_v63, 4 }
 0x4cf   : > { %2630 = vrot.lane.b32.xlu2 %v2564_v60, %s4906_s7  ;;  %v6471_v60 = vld [vmem:[#allocation2 + $0x8a] sm:$0x3f]  ;;  %3073 = vrot.lane.b32.xlu0 %v3003_v34, %s4907_s8  ;;  %v7257_v34 = vrot.slane %v5795_v14, 2 }
 0x4d1   : > { %v2174_v62 = vpop.permute.xlu1 %2173 }
 0x4d2   : > { %2245 = vst.msk [vmem:[#allocation3 + $0x20] sm:$0xf] %vm2240_vm7, %v2174_v62  ;;  %v7254_v62 = vld [vmem:[#allocation37_spill] sm:$0xff] }
 0x4d3   : > { %v6437_v61 = vld.sshfl [vmem:[#allocation1] sm:$0xff pattern:$0x73625140] }
 0x4d4   : > { %3741 = vst [vmem:[#allocation1] ss:$4 sm:$0xff] %v4608_v17  ;;  %v3287_v12 = vld.sshfl [vmem:[#allocation1 + $0x20] sm:$0xff pattern:$0x73625140]  ;;  %v3652_v17 = vrot.slane %v6446_v63, 2 }
 0x4d5   : > { %3742 = vst [vmem:[#allocation1 + $0x1] ss:$4 sm:$0xff] %v3647_v23  ;;  %v3419_v1 = vpack.c.bf16 %v3287_v12, %v3287_v12  ;;  %v1777_v23 = vpop.permute.xlu0 %1776  ;;  %v3658_v12 = vrot.slane %v6471_v60, 4 }
 0x4d6   : > { %3743 = vst [vmem:[#allocation1 + $0x2] ss:$4 sm:$0xff] %v3648_v42  ;;  %v2999_v42 = vpack.c.bf16 %v6073_v21, %v6073_v21  ;;  %v2170_v21 = vpop.permute.xlu2 %2169 }
 0x4d7   : > { %3744 = vst [vmem:[#allocation1 + $0x3] ss:$4 sm:$0xff] %v5733_v39  ;;  %3472 = vrot.lane.b32.xlu1 %v3419_v1, %s4908_s9  ;;  %3039 = vrot.lane.b32.xlu2 %v2986_v58, %s4907_s8  ;;  %v4579_v1 = vld [vmem:[#allocation2 + $0x61] sm:$0xff]  ;;  %v2988_v58 = vpack.c.bf16 %v6202_v53, %v6202_v53  ;;  %v3416_v53 = vpack.c.bf16 %v6136_v30, %v6136_v30  ;;  %v7260_v30 = vrot.slane %v7196_v20, 2 }
 0x4d8   : > { %3293 = vst [vmem:[#allocation1 + $0x21] ss:$4 sm:$0xff] %v5650_v5  ;;  %v3211_v31 = vrot.slane %v4579_v1, 2 }
 0x4d9   : > { %1830 = vst.msk [vmem:[#allocation3 + $0xb0] sm:$0xf] %vm1807_vm6, %v1777_v23  ;;  %v7256_v23 = vrot.slane %v7254_v62, 4 }
 0x4da   : > { %3292 = vst [vmem:[#allocation1 + $0x20] ss:$4 sm:$0xff] %v3205_v52 }
 0x4db   : > { %3294 = vst [vmem:[#allocation1 + $0x22] ss:$4 sm:$0xff] %v7251_v37 }
 0x4dc   : > { %3295 = vst [vmem:[#allocation1 + $0x23] ss:$4 sm:$0xff] %v7253_v51 }
 0x4dd   : > { %2243 = vst.msk [vmem:[#allocation3 + $0x10] sm:$0xf] %vm2240_vm7, %v2170_v21  ;;  %v2166_v37 = vpop.permute.xlu0 %2165  ;;  %v7259_v21 = vrot.slane %v5795_v14, 6 }
 0x4de   : > { %v6457_v56 = vld.sshfl [vmem:[#allocation1] sm:$0xff pattern:$0x73625140]  ;;  %2241 = vst.msk [vmem:[#allocation3] sm:$0xf] %vm2240_vm7, %v2166_v37 }
 0x4df   : > { %3751 = vst [vmem:[#allocation1] ss:$4 sm:$0xff] %v3652_v17  ;;  %3065 = vrot.lane.b32.xlu1 %v2999_v42, %s4907_s8  ;;  %v7255_v17 = vrot.slane %v7254_v62, 2  ;;  %3043 = vrot.lane.b32.xlu2 %v2988_v58, %s4907_s8  ;;  %v3212_v42 = vrot.slane %v4579_v1, 4  ;;  %v6516_v37 = vld [vmem:[#allocation2 + $0xba] sm:$0x3f] }
 0x4e0   : > { %3752 = vst [vmem:[#allocation1 + $0x1] ss:$4 sm:$0xff] %v3653_v25  ;;  %v2200_v25 = vpop.permute.xlu1 %2199 }
 0x4e1   : > { %3753 = vst [vmem:[#allocation1 + $0x2] ss:$4 sm:$0xff] %v5750_v4 }
 0x4e2   : > { %3754 = vst [vmem:[#allocation1 + $0x3] ss:$4 sm:$0xff] %v7252_v15  ;;  %v3213_v15 = vrot.slane %v4579_v1, 6 }
 0x4e3   : > { %v3297_v5 = vld.sshfl [vmem:[#allocation1 + $0x20] sm:$0xff pattern:$0x73625140]  ;;  %2258 = vst.msk [vmem:[#allocation3 + $0x88] sm:$0xf] %vm2240_vm7, %v2200_v25  ;;  %v7264_v25 = vrot.slane %v5823_v22, 4 }
 0x4e4   : > { %v3421_v19 = vpack.c.bf16 %v3297_v5, %v3297_v5  ;;  %3302 = vst [vmem:[#allocation1 + $0x20] ss:$4 sm:$0xff] %v4579_v1  ;;  %v7261_v1 = vrot.slane %v7196_v20, 4 }
 0x4e5   : > { %3303 = vst [vmem:[#allocation1 + $0x21] ss:$4 sm:$0xff] %v3211_v31  ;;  %v2192_v31 = vpop.permute.xlu0 %2191 }
 0x4e6   : > { %3304 = vst [vmem:[#allocation1 + $0x22] ss:$4 sm:$0xff] %v3212_v42  ;;  %v7265_v42 = vrot.slane %v5823_v22, 6 }
 0x4e7   : > { %3476 = vrot.lane.b32.xlu1 %v3421_v19, %s4908_s9  ;;  %3305 = vst [vmem:[#allocation1 + $0x23] ss:$4 sm:$0xff] %v3213_v15  ;;  %v7262_v19 = vrot.slane %v7196_v20, 6  ;;  %v7266_v20 = vld [vmem:[#allocation47_spill] sm:$0xff]  ;;  %v3224_v15 = vrot.slane %v6238_v49, 2 }
 0x4e8   : > { %2254 = vst.msk [vmem:[#allocation3 + $0x68] sm:$0xf] %vm2240_vm7, %v2192_v31 }
 0x4e9   : > { %v6475_v52 = vld.sshfl [vmem:[#allocation1] sm:$0xff pattern:$0x73625140] }
 0x4ea   : > { %3761 = vst [vmem:[#allocation1] ss:$4 sm:$0xff] %v3658_v12  ;;  %v7258_v12 = vrot.slane %v5795_v14, 4 }
 0x4eb   : > { %3762 = vst [vmem:[#allocation1 + $0x1] ss:$4 sm:$0xff] %v7254_v62 }
 0x4ec   : > { %3763 = vst [vmem:[#allocation1 + $0x2] ss:$4 sm:$0xff] %v7255_v17  ;;  %v7263_v17 = vrot.slane %v5823_v22, 2 }
 0x4ed   : > { %3764 = vst [vmem:[#allocation1 + $0x3] ss:$4 sm:$0xff] %v7256_v23  ;;  %v2194_v23 = vpop.permute.xlu1 %2193 }
 0x4ee   : > { %v6501_v5 = vld.sshfl [vmem:[#allocation1 + $0x20] sm:$0xff pattern:$0x73625140]  ;;  %2255 = vst.msk [vmem:[#allocation3 + $0x70] sm:$0xf] %vm2240_vm7, %v2194_v23  ;;  %v7269_v23 = vrot.slane %v5840_v7, 4 }
 0x4ef   : > { %3466 = vrot.lane.b32.xlu1 %v3416_v53, %s4908_s9  ;;  %3312 = vst [vmem:[#allocation1 + $0x20] ss:$4 sm:$0xff] %v7260_v30 }
 0x4f0   : > { %3313 = vst [vmem:[#allocation1 + $0x21] ss:$4 sm:$0xff] %v7261_v1 }
 0x4f1   : > { %3314 = vst [vmem:[#allocation1 + $0x22] ss:$4 sm:$0xff] %v7262_v19  ;;  %v2204_v19 = vpop.permute.xlu0 %2203 }
 0x4f2   : > { %3315 = vst [vmem:[#allocation1 + $0x23] ss:$4 sm:$0xff] %v6220_v11  ;;  %v2983_v11 = vpack.c.bf16 %v7266_v20, %v7266_v20 }
 0x4f3   : > { %2260 = vst.msk [vmem:[#allocation3 + $0x98] sm:$0xf] %vm2240_vm7, %v2204_v19  ;;  %v7272_v19 = vrot.slane %v6093_v18, 6 }
 0x4f4   : > { %v6491_v51 = vld.sshfl [vmem:[#allocation1] sm:$0xff pattern:$0x73625140]  ;;  %3033 = vrot.lane.b32.xlu2 %v2983_v11, %s4907_s8 }
 0x4f5   : > { %3771 = vst [vmem:[#allocation1] ss:$4 sm:$0xff] %v5795_v14  ;;  %v2196_v14 = vpop.permute.xlu2 %2195  ;;  %v2601_v1 = vpop.permute.xlu1 %2600 }
 0x4f6   : > { %3772 = vst [vmem:[#allocation1 + $0x1] ss:$4 sm:$0xff] %v7257_v34  ;;  %v7267_v34 = vrot.slane %v7199_v3, 4 }
 0x4f7   : > { %3773 = vst [vmem:[#allocation1 + $0x2] ss:$4 sm:$0xff] %v7258_v12  ;;  %v6531_v12 = vld [vmem:[#allocation2 + $0xca] sm:$0x3f] }
 0x4f8   : > { %3774 = vst [vmem:[#allocation1 + $0x3] ss:$4 sm:$0xff] %v7259_v21  ;;  %v7268_v21 = vrot.slane %v7199_v3, 6  ;;  %v4586_v3 = vld [vmem:[#allocation2 + $0x99] sm:$0x3f] }
 0x4f9   : > { %2256 = vst.msk [vmem:[#allocation3 + $0x78] sm:$0xf] %vm2240_vm7, %v2196_v14  ;;  %v6525_v53 = vld.sshfl [vmem:[#allocation1 + $0x20] sm:$0xff pattern:$0x73625140]  ;;  %v3230_v20 = vrot.slane %v4586_v3, 4 }
 0x4fa   : > { %3322 = vst [vmem:[#allocation1 + $0x20] ss:$4 sm:$0xff] %v7267_v34  ;;  %v4622_v34 = vld [vmem:[#allocation2 + $0xda] sm:$0x3f] }
 0x4fb   : > { %3323 = vst [vmem:[#allocation1 + $0x21] ss:$4 sm:$0xff] %v7268_v21  ;;  %v7271_v21 = vrot.slane %v7205_v27, 6 }
 0x4fc   : > { %3324 = vst [vmem:[#allocation1 + $0x22] ss:$4 sm:$0xff] %v6238_v49  ;;  %v3000_v49 = vpack.c.bf16 %v6355_v32, %v6355_v32  ;;  %v2208_v32 = vpop.permute.xlu0 %2207 }
 0x4fd   : > { %v2190_v30 = vpop.permute.xlu2 %2189  ;;  %3325 = vst [vmem:[#allocation1 + $0x23] ss:$4 sm:$0xff] %v3224_v15  ;;  %v2629_v15 = vpop.permute.xlu1 %2628 }
 0x4fe   : > { %3067 = vrot.lane.b32.xlu2 %v3000_v49, %s4907_s8  ;;  %2253 = vst.msk [vmem:[#allocation3 + $0x60] sm:$0xf] %vm2240_vm7, %v2190_v30  ;;  %v3683_v30 = vrot.slane %v4622_v34, 4 }
 0x4ff   : > { %v6510_v58 = vld.sshfl [vmem:[#allocation1] sm:$0xff pattern:$0x73625140]  ;;  %2675 = vst.msk [vmem:[#allocation3 + $0x8] sm:$0xf] %vm2673_vm9, %v2601_v1 }
 0x500   : > { %3781 = vst [vmem:[#allocation1] ss:$4 sm:$0xff] %v7263_v17  ;;  %v3677_v17 = vrot.slane %v6531_v12, 2  ;;  %v4588_v1 = vld [vmem:[#allocation2 + $0xa9] sm:$0x3f] }
 0x501   : > { %3782 = vst [vmem:[#allocation1 + $0x1] ss:$4 sm:$0xff] %v7264_v25  ;;  %v7270_v25 = vrot.slane %v5840_v7, 6 }
 0x502   : > { %3783 = vst [vmem:[#allocation1 + $0x2] ss:$4 sm:$0xff] %v7265_v42  ;;  %v3229_v42 = vrot.slane %v4586_v3, 2 }
 0x503   : > { %3784 = vst [vmem:[#allocation1 + $0x3] ss:$4 sm:$0xff] %v6516_v37 }
 0x504   : > { %v6549_v31 = vld.sshfl [vmem:[#allocation1 + $0x20] sm:$0xff pattern:$0x73625140]  ;;  %v2198_v49 = vpop.permute.xlu0 %2197  ;;  %2689 = vst.msk [vmem:[#allocation3 + $0x78] sm:$0xf] %vm2673_vm9, %v2629_v15 }
 0x505   : > { %v2202_v11 = vpop.permute.xlu2 %2201  ;;  %3332 = vst [vmem:[#allocation1 + $0x20] ss:$4 sm:$0xff] %v7271_v21 }
 0x506   : > { %3333 = vst [vmem:[#allocation1 + $0x21] ss:$4 sm:$0xff] %v4586_v3  ;;  %v2623_v3 = vpop.permute.xlu1 %2622 }
 0x507   : > { %3334 = vst [vmem:[#allocation1 + $0x22] ss:$4 sm:$0xff] %v3229_v42  ;;  %v4624_v42 = vld [vmem:[#allocation2 + $0xea] sm:$0x3f] }
 0x508   : > { %3335 = vst [vmem:[#allocation1 + $0x23] ss:$4 sm:$0xff] %v3230_v20  ;;  %v3688_v21 = vrot.slane %v4624_v42, 4 }
 0x509   : > { %2259 = vst.msk [vmem:[#allocation3 + $0x90] sm:$0xf] %vm2240_vm7, %v2202_v11 }
 0x50a   : > { %v6537_v14 = vld.sshfl [vmem:[#allocation1] sm:$0xff pattern:$0x73625140]  ;;  %2262 = vst.msk [vmem:[#allocation3 + $0xa8] sm:$0xf] %vm2240_vm7, %v2208_v32  ;;  %v3418_v32 = vpack.c.bf16 %v6163_v8, %v6163_v8 }
 0x50b   : > { %3791 = vst [vmem:[#allocation1] ss:$4 sm:$0xff] %v7269_v23  ;;  %v3417_v23 = vpack.c.bf16 %v6427_v6, %v6427_v6  ;;  %v2997_v6 = vpack.c.bf16 %v6044_v38, %v6044_v38 }
 0x50c   : > { %3792 = vst [vmem:[#allocation1 + $0x1] ss:$4 sm:$0xff] %v7270_v25 }
 0x50d   : > { %3793 = vst [vmem:[#allocation1 + $0x2] ss:$4 sm:$0xff] %v6531_v12  ;;  %3468 = vrot.lane.b32.xlu2 %v3417_v23, %s4908_s9  ;;  %v2206_v27 = vpop.permute.xlu2 %2205  ;;  %v3234_v23 = vrot.slane %v4588_v1, 2 }
 0x50e   : > { %3794 = vst [vmem:[#allocation1 + $0x3] ss:$4 sm:$0xff] %v3677_v17  ;;  %v3682_v17 = vrot.slane %v4622_v34, 2 }
 0x50f   : > { %v3337_v20 = vld.sshfl [vmem:[#allocation1 + $0x20] sm:$0xff pattern:$0x73625140]  ;;  %2261 = vst.msk [vmem:[#allocation3 + $0xa0] sm:$0xf] %vm2240_vm7, %v2206_v27 }
 0x510   : > { %v3429_v11 = vpack.c.bf16 %v3337_v20, %v3337_v20  ;;  %3345 = vst [vmem:[#allocation1 + $0x23] ss:$4 sm:$0xff] %v7217_v13  ;;  %v2605_v13 = vpop.permute.xlu0 %2604  ;;  %v6581_v27 = vld [vmem:[#allocation2 + $0xfa] sm:$0x3f]  ;;  %v3420_v20 = vpack.c.bf16 %v6195_v48, %v6195_v48 }
 0x511   : > { %2686 = vst.msk [vmem:[#allocation3 + $0x60] sm:$0xf] %vm2673_vm9, %v2623_v3  ;;  %v3692_v3 = vrot.slane %v6581_v27, 2 }
 0x512   : > { %3492 = vrot.lane.b32.xlu0 %v3429_v11, %s4908_s9  ;;  %2257 = vst.msk [vmem:[#allocation3 + $0x80] sm:$0xf] %vm2240_vm7, %v2198_v49 }
 0x513   : > { %3342 = vst [vmem:[#allocation1 + $0x20] ss:$4 sm:$0xff] %v4588_v1 }
 0x514   : > { %3343 = vst [vmem:[#allocation1 + $0x21] ss:$4 sm:$0xff] %v3234_v23 }
 0x515   : > { %v6556_v25 = vld.sshfl [vmem:[#allocation1] sm:$0xff pattern:$0x73625140]  ;;  %3061 = vrot.lane.b32.xlu2 %v2997_v6, %s4907_s8  ;;  %v2625_v15 = vpop.permute.xlu2 %2624  ;;  %2677 = vst.msk [vmem:[#allocation3 + $0x18] sm:$0xf] %vm2673_vm9, %v2605_v13 }
 0x516   : > { %3801 = vst [vmem:[#allocation1] ss:$4 sm:$0xff] %v7272_v19  ;;  %v3235_v19 = vrot.slane %v4588_v1, 4 }
 0x517   : > { %3802 = vst [vmem:[#allocation1 + $0x1] ss:$4 sm:$0xff] %v4622_v34  ;;  %v3687_v34 = vrot.slane %v4624_v42, 2 }
 0x518   : > { %3803 = vst [vmem:[#allocation1 + $0x2] ss:$4 sm:$0xff] %v3682_v17  ;;  %v2635_v17 = vpop.permute.xlu1 %2634  ;;  %v2609_v6 = vpop.permute.xlu0 %2608 }
 0x519   : > { %3804 = vst [vmem:[#allocation1 + $0x3] ss:$4 sm:$0xff] %v3683_v30  ;;  %v6577_v30 = vld [vmem:[#allocation2 + $0xf2] sm:$0xff] }
 0x51a   : > { %3470 = vrot.lane.b32.xlu0 %v3418_v32, %s4908_s9  ;;  %3344 = vst [vmem:[#allocation1 + $0x22] ss:$4 sm:$0xff] %v3235_v19  ;;  %v7273_v32 = vld [vmem:[#allocation27_spill] sm:$0xff] }
 0x51b   : > { %2687 = vst.msk [vmem:[#allocation3 + $0x68] sm:$0xf] %vm2673_vm9, %v2625_v15  ;;  %v2122_v23 = vpack.c.bf16 %v7273_v32, %v7273_v32 }
 0x51c   : > { %2692 = vst.msk [vmem:[#allocation3 + $0x90] sm:$0xf] %vm2673_vm9, %v2635_v17 }
 0x51d   : > { %v2603_v49 = vpop.permute.xlu2 %2602  ;;  %2679 = vst.msk [vmem:[#allocation3 + $0x28] sm:$0xf] %vm2673_vm9, %v2609_v6 }
 0x51e   : > { %2676 = vst.msk [vmem:[#allocation3 + $0x10] sm:$0xf] %vm2673_vm9, %v2603_v49  ;;  %v3428_v49 = vpack.c.bf16 %v6263_v59, %v6263_v59  ;;  %v7275_v59 = vld [vmem:[#allocation34_spill] sm:$0xff] }
 0x520   : > { %v6572_v38 = vld.sshfl [vmem:[#allocation1] sm:$0xff pattern:$0x73625140]  ;;  %v2639_v8 = vpop.permute.xlu1 %2638  ;;  %v2599_v13 = vpop.permute.xlu0 %2598 }
 0x521   : > { %3811 = vst [vmem:[#allocation1] ss:$4 sm:$0xff] %v4624_v42  ;;  %v3693_v42 = vrot.slane %v6581_v27, 4  ;;  %v3347_v1 = vld.sshfl [vmem:[#allocation1 + $0x20] sm:$0xff pattern:$0x73625140] }
 0x522   : > { %3812 = vst [vmem:[#allocation1 + $0x1] ss:$4 sm:$0xff] %v3687_v34  ;;  %v3239_v34 = vrot.slane %v6282_v43, 2  ;;  %3474 = vrot.lane.b32.xlu0 %v3420_v20, %s4908_s9  ;;  %v3431_v15 = vpack.c.bf16 %v3347_v1, %v3347_v1  ;;  %v7276_v1 = vrot.slane %v7225_v54, 2 }
 0x523   : > { %3813 = vst [vmem:[#allocation1 + $0x2] ss:$4 sm:$0xff] %v3688_v21  ;;  %v3240_v21 = vrot.slane %v6282_v43, 4  ;;  %v7274_v43 = vrot.slane %v7222_v26, 2 }
 0x524   : > { %3814 = vst [vmem:[#allocation1 + $0x3] ss:$4 sm:$0xff] %v6577_v30  ;;  %3496 = vrot.lane.b32.xlu2 %v3431_v15, %s4908_s9  ;;  %v7278_v15 = vld [vmem:[#allocation12_spill] sm:$0xff] }
 0x525   : > { %2694 = vst.msk [vmem:[#allocation3 + $0xa0] sm:$0xf] %vm2673_vm9, %v2639_v8  ;;  %v2607_v48 = vpop.permute.xlu2 %2606 }
 0x526   : > { %3352 = vst [vmem:[#allocation1 + $0x20] ss:$4 sm:$0xff] %v3239_v34 }
 0x527   : > { %3353 = vst [vmem:[#allocation1 + $0x21] ss:$4 sm:$0xff] %v3240_v21  ;;  %v2554_v21 = vpack.c.bf16 %v7275_v59, %v7275_v59 }
 0x528   : > { %v3060_v17 = vpop.permute.xlu1 %3059  ;;  %3354 = vst [vmem:[#allocation1 + $0x22] ss:$4 sm:$0xff] %v7222_v26  ;;  %v3245_v26 = vrot.slane %v6287_v45, 4  ;;  %v2633_v20 = vpop.permute.xlu0 %2632  ;;  %v7277_v45 = vrot.slane %v7225_v54, 4 }
 0x529   : > { %3355 = vst [vmem:[#allocation1 + $0x23] ss:$4 sm:$0xff] %v7274_v43 }
 0x52a   : > { %2678 = vst.msk [vmem:[#allocation3 + $0x20] sm:$0xf] %vm2673_vm9, %v2607_v48  ;;  %2179 = vrot.lane.b32.xlu0 %v2122_v23, %s4905_s6  ;;  %v2121_v48 = vpack.c.bf16 %v7278_v15, %v7278_v15 }
 0x52b   : > { %v6590_v11 = vld.sshfl [vmem:[#allocation1] sm:$0xff pattern:$0x73625140]  ;;  %3122 = vst.msk [vmem:[#allocation3 + $0x68] sm:$0xf] %vm3108_vm10, %v3060_v17  ;;  %v4595_v17 = vld [vmem:[#allocation2 + $0xe1] sm:$0xff] }
 0x52c   : > { %3821 = vst [vmem:[#allocation1] ss:$4 sm:$0xff] %v3692_v3  ;;  %3490 = vrot.lane.b32.xlu2 %v3428_v49, %s4908_s9  ;;  %v3251_v43 = vrot.slane %v4595_v17, 2  ;;  %v3253_v49 = vrot.slane %v4595_v17, 6 }
 0x52d   : > { %3822 = vst [vmem:[#allocation1 + $0x1] ss:$4 sm:$0xff] %v3693_v42  ;;  %v2637_v8 = vpop.permute.xlu2 %2636 }
 0x52e   : > { %2674 = vst.msk [vmem:[#allocation3] sm:$0xf] %vm2673_vm9, %v2599_v13 }
 0x52f   : > { %2693 = vst.msk [vmem:[#allocation3 + $0x98] sm:$0xf] %vm2673_vm9, %v2637_v8 }
 0x530   : > { %v3038_v42 = vpop.permute.xlu1 %3037  ;;  %v3357_v6 = vld.sshfl [vmem:[#allocation1 + $0x20] sm:$0xff pattern:$0x73625140]  ;;  %2691 = vst.msk [vmem:[#allocation3 + $0x88] sm:$0xf] %vm2673_vm9, %v2633_v20  ;;  %v2627_v23 = vpop.permute.xlu0 %2626 }
 0x531   : > { %v3433_v34 = vpack.c.bf16 %v3357_v6, %v3357_v6  ;;  %3363 = vst [vmem:[#allocation1 + $0x21] ss:$4 sm:$0xff] %v7225_v54  ;;  %v2990_v54 = vpack.c.bf16 %v6234_v24, %v6234_v24  ;;  %v7279_v6 = vld [vmem:[#allocation23_spill] sm:$0xff] }
 0x532   : > { %3362 = vst [vmem:[#allocation1 + $0x20] ss:$4 sm:$0xff] %v3245_v26  ;;  %2610 = vrot.lane.b32.xlu0 %v2554_v21, %s4906_s7  ;;  %v2137_v20 = vpack.c.bf16 %v7279_v6, %v7279_v6 }
 0x533   : > { %3500 = vrot.lane.b32.xlu1 %v3433_v34, %s4908_s9  ;;  %3364 = vst [vmem:[#allocation1 + $0x22] ss:$4 sm:$0xff] %v7276_v1  ;;  %v7280_v34 = vld [vmem:[#allocation48_spill] sm:$0xff] }
 0x534   : > { %v3823_v19 = vld.sshfl [vmem:[#allocation1] sm:$0xff pattern:$0x73625140]  ;;  %3365 = vst [vmem:[#allocation1 + $0x23] ss:$4 sm:$0xff] %v7277_v45  ;;  %2177 = vrot.lane.b32.xlu2 %v2121_v48, %s4905_s6  ;;  %v2555_v59 = vpack.c.bf16 %v7280_v34, %v7280_v34  ;;  %v7282_v34 = vld [vmem:[#allocation41_spill] sm:$0xff] }
 0x535   : > { %v3873_v3 = vpack.c.bf16 %v3823_v19, %v3823_v19  ;;  %3111 = vst.msk [vmem:[#allocation3 + $0x10] sm:$0xf] %vm3108_vm10, %v3038_v42  ;;  %v2641_v13 = vpop.permute.xlu2 %2640  ;;  %v3252_v19 = vrot.slane %v4595_v17, 4 }
 0x536   : > { %2695 = vst.msk [vmem:[#allocation3 + $0xa8] sm:$0xf] %vm2673_vm9, %v2641_v13  ;;  %v3430_v13 = vpack.c.bf16 %v6276_v50, %v6276_v50  ;;  %v4807_v50 = vld [vmem:[%s7011_s1 + $0x38] sm:$0xff] }
 0x537   : > { %3898 = vst.msk [vmem:[#allocation3 + $0xc4] sm:$0x3] %vm531_vm3, %v3873_v3  ;;  %4150 = vmatpush.bf16.msra.mxu0 %v4807_v50  ;;  %4809 = vmatpush.bf16.msra.mxu2 %v4807_v50 }
 0x538   : > { %v3042_v32 = vpop.permute.xlu1 %3041  ;;  %2688 = vst.msk [vmem:[#allocation3 + $0x70] sm:$0xf] %vm2673_vm9, %v2627_v23  ;;  %v3036_v24 = vpop.permute.xlu0 %3035  ;;  %v3258_v23 = vrot.slane %v6340_v55, 6 }
 0x539   : > { %3113 = vst.msk [vmem:[#allocation3 + $0x20] sm:$0xf] %vm3108_vm10, %v3042_v32  ;;  %v3256_v32 = vrot.slane %v6340_v55, 2 }
 0x53a   : > { %3047 = vrot.lane.b32.xlu0 %v2990_v54, %s4907_s8  ;;  %3110 = vst.msk [vmem:[#allocation3 + $0x8] sm:$0xf] %vm3108_vm10, %v3036_v24 }
 0x53b   : > { %v3367_v3 = vld.sshfl [vmem:[#allocation1 + $0x20] sm:$0xff pattern:$0x73625140] }
 0x53c   : > { %v3435_v26 = vpack.c.bf16 %v3367_v3, %v3367_v3  ;;  %3372 = vst [vmem:[#allocation1 + $0x20] ss:$4 sm:$0xff] %v4595_v17  ;;  %v2571_v17 = vpack.c.bf16 %v6124_v35, %v6124_v35  ;;  %v2989_v35 = vpack.c.bf16 %v5970_v40, %v5970_v40  ;;  %v3422_v40 = vpack.c.bf16 %v6213_v46, %v6213_v46  ;;  %v4600_v3 = vld [vmem:[#allocation2 + $0x2a] sm:$0x3f] }
 0x53d   : > { %3373 = vst [vmem:[#allocation1 + $0x21] ss:$4 sm:$0xff] %v3251_v43  ;;  %v2631_v8 = vpop.permute.xlu2 %2630  ;;  %v3628_v6 = vrot.slane %v4600_v3, 4 }
 0x53e   : > { %3504 = vrot.lane.b32.xlu1 %v3435_v26, %s4908_s9  ;;  %3374 = vst [vmem:[#allocation1 + $0x22] ss:$4 sm:$0xff] %v3252_v19  ;;  %v3432_v19 = vpack.c.bf16 %v6293_v28, %v6293_v28  ;;  %v4806_v28 = vld [vmem:[%s7011_s1 + $0x30] sm:$0xff] }
 0x53f   : > { %3375 = vst [vmem:[#allocation1 + $0x23] ss:$4 sm:$0xff] %v3253_v49  ;;  %v3423_v49 = vpack.c.bf16 %v6501_v5, %v6501_v5  ;;  %4151 = vmatpush.bf16.msra.mxu0 %v4806_v28  ;;  %v4805_v5 = vld [vmem:[%s7011_s1 + $0x28] sm:$0xff]  ;;  %4810 = vmatpush.bf16.msra.mxu2 %v4806_v28 }
 0x540   : > { %v3072_v42 = vpop.permute.xlu1 %3071  ;;  %2690 = vst.msk [vmem:[#allocation3 + $0x80] sm:$0xf] %vm2673_vm9, %v2631_v8  ;;  %v3064_v48 = vpop.permute.xlu0 %3063 }
 0x541   : > { %3128 = vst.msk [vmem:[#allocation3 + $0x98] sm:$0xf] %vm3108_vm10, %v3072_v42  ;;  %v3627_v42 = vrot.slane %v4600_v3, 2 }
 0x542   : > { %2209 = vrot.lane.b32.xlu0 %v2137_v20, %s4905_s6  ;;  %3124 = vst.msk [vmem:[#allocation3 + $0x78] sm:$0xf] %vm3108_vm10, %v3064_v48  ;;  %v7281_v20 = vld [vmem:[#allocation14_spill] sm:$0xff] }
 0x543   : > { %4152 = vmatpush.bf16.msra.mxu0 %v4805_v5  ;;  %4811 = vmatpush.bf16.msra.mxu2 %v4805_v5  ;;  %v4808_v48 = vld [vmem:[%s7011_s1 + $0x40] sm:$0xff] }
 0x544   : > { %4230 = vmatpush.bf16.msra.mxu1 %v4808_v48  ;;  %4817 = vmatpush.bf16.msra.mxu3 %v4808_v48  ;;  %v7289_v48 = vld [vmem:[#allocation21_spill] sm:$0xff] }
 0x545   : > { %v3040_v45 = vpop.permute.xlu2 %3039 }
 0x546   : > { %2612 = vrot.lane.b32.xlu1 %v2555_v59, %s4906_s7  ;;  %v3377_v21 = vld.sshfl [vmem:[#allocation1 + $0x20] sm:$0xff pattern:$0x73625140]  ;;  %3112 = vst.msk [vmem:[#allocation3 + $0x18] sm:$0xf] %vm3108_vm10, %v3040_v45  ;;  %v2138_v59 = vpack.c.bf16 %v7282_v34, %v7282_v34 }
 0x547   : > { %v3437_v1 = vpack.c.bf16 %v3377_v21, %v3377_v21  ;;  %3385 = vst [vmem:[#allocation1 + $0x23] ss:$4 sm:$0xff] %v6346_v16  ;;  %v3257_v16 = vrot.slane %v6340_v55, 4  ;;  %v3849_v21 = vpack.c.bf16 %v6376_v9, %v6376_v9 }
 0x548   : > { %v3076_v15 = vpop.permute.xlu1 %3075  ;;  %3382 = vst [vmem:[#allocation1 + $0x20] ss:$4 sm:$0xff] %v3256_v32  ;;  %v3058_v55 = vpop.permute.xlu0 %3057  ;;  %v3434_v32 = vpack.c.bf16 %v6318_v41, %v6318_v41  ;;  %v3006_v41 = vpack.c.bf16 %v6415_v44, %v6415_v44  ;;  %v4801_v44 = vld [vmem:[%s7011_s1 + $0x8] sm:$0xff] }
 0x549   : > { %3508 = vrot.lane.b32.xlu2 %v3437_v1, %s4908_s9  ;;  %3130 = vst.msk [vmem:[#allocation3 + $0xa8] sm:$0xf] %vm3108_vm10, %v3076_v15  ;;  %v7283_v1 = vld [vmem:[#allocation43_spill] sm:$0xff]  ;;  %v4804_v15 = vld [vmem:[%s7011_s1 + $0x20] sm:$0xff] }
 0x54a   : > { %2644 = vrot.lane.b32.xlu0 %v2571_v17, %s4906_s7  ;;  %3383 = vst [vmem:[#allocation1 + $0x21] ss:$4 sm:$0xff] %v3257_v16  ;;  %v2570_v45 = vpack.c.bf16 %v7283_v1, %v7283_v1  ;;  %4153 = vmatpush.bf16.msra.mxu0 %v4804_v15 }
 0x54b   : > { %3384 = vst [vmem:[#allocation1 + $0x22] ss:$4 sm:$0xff] %v3258_v23  ;;  %4812 = vmatpush.bf16.msra.mxu2 %v4804_v15  ;;  %v3005_v23 = vpack.c.bf16 %v6122_v47, %v6122_v47  ;;  %v4802_v47 = vld [vmem:[%s7011_s1 + $0x10] sm:$0xff]  ;;  %v3638_v15 = vrot.slane %v6399_v0, 4  ;;  %v3425_v0 = vpack.c.bf16 %v6525_v53, %v6525_v53 }
 0x54c   : > { %3121 = vst.msk [vmem:[#allocation3 + $0x60] sm:$0xf] %vm3108_vm10, %v3058_v55 }
 0x54d   : > { %v3044_v54 = vpop.permute.xlu2 %3043  ;;  %3874 = vst.msk [vmem:[#allocation3 + $0x4] sm:$0xf] %vm506_vm0, %v3849_v21  ;;  %v7288_v21 = vld [vmem:[#allocation35_spill] sm:$0xff] }
 0x54e   : > { %3494 = vrot.lane.b32.xlu1 %v3430_v13, %s4908_s9  ;;  %3114 = vst.msk [vmem:[#allocation3 + $0x28] sm:$0xf] %vm3108_vm10, %v3044_v54  ;;  %v4803_v13 = vld [vmem:[%s7011_s1 + $0x18] sm:$0xff]  ;;  %v3633_v54 = vrot.slane %v6385_v57, 4  ;;  %v2556_v1 = vpack.c.bf16 %v7288_v21, %v7288_v21  ;;  %v7299_v21 = vld [vmem:[#allocation16_spill] sm:$0xff] }
 0x54f   : > { %4154 = vmatpush.bf16.msra.mxu0 %v4803_v13  ;;  %4813 = vmatpush.bf16.msra.mxu2 %v4803_v13  ;;  %v7291_v13 = vrot.slane %v7247_v2, 4 }
 0x550   : > { %v3473_v43 = vpop.permute.xlu1 %3472  ;;  %v3070_v24 = vpop.permute.xlu0 %3069 }
 0x551   : > { %3045 = vrot.lane.b32.xlu2 %v2989_v35, %s4907_s8  ;;  %3545 = vst.msk [vmem:[#allocation3 + $0x18] sm:$0xf] %vm3541_vm11, %v3473_v43  ;;  %v3632_v35 = vrot.slane %v6385_v57, 2 }
 0x552   : > { %3498 = vrot.lane.b32.xlu0 %v3432_v19, %s4908_s9  ;;  %v6674_v26 = vld.sshfl [vmem:[#allocation1 + $0x20] sm:$0xff pattern:$0x73625140]  ;;  %3127 = vst.msk [vmem:[#allocation3 + $0x90] sm:$0xf] %vm3108_vm10, %v3070_v24 }
 0x553   : > { %3708 = vst [vmem:[#allocation1 + $0x23] ss:$4 sm:$0xff] %v7239_v29  ;;  %v2123_v29 = vpack.c.bf16 %v7281_v20, %v7281_v20  ;;  %4155 = vmatpush.bf16.msra.mxu0 %v4802_v47  ;;  %v3439_v19 = vpack.c.bf16 %v6674_v26, %v6674_v26  ;;  %4814 = vmatpush.bf16.msra.mxu2 %v4802_v47  ;;  %v7287_v20 = vld [vmem:[#allocation50_spill] sm:$0xff] }
 0x554   : > { %3702 = vst [vmem:[#allocation1 + $0x20] ss:$4 sm:$0xff] %v4600_v3  ;;  %v4776_v28 = vld [vmem:[#allocation3 + $0x4] sm:$0xf] }
 0x555   : > { %v3034_v8 = vpop.permute.xlu2 %3033  ;;  %3704 = vst [vmem:[#allocation1 + $0x21] ss:$4 sm:$0xff] %v3627_v42 }
 0x556   : > { %3478 = vrot.lane.b32.xlu1 %v3422_v40, %s4908_s9  ;;  %3109 = vst.msk [vmem:[#allocation3] sm:$0xf] %vm3108_vm10, %v3034_v8  ;;  %v7284_v40 = vld [vmem:[#allocation30_spill] sm:$0xff]  ;;  %v3851_v8 = vpack.c.bf16 %v6403_v33, %v6403_v33 }
 0x557   : > { %3706 = vst [vmem:[#allocation1 + $0x22] ss:$4 sm:$0xff] %v3628_v6  ;;  %v2124_v3 = vpack.c.bf16 %v7284_v40, %v7284_v40  ;;  %4156 = vmatpush.bf16.msra.mxu0 %v4801_v44  ;;  %4815 = vmatpush.bf16.msra.mxu2 %v4801_v44  ;;  %v7294_v44 = vld [vmem:[#allocation53_spill] sm:$0xff]  ;;  %v7295_v40 = vld [vmem:[#allocation46_spill] sm:$0xff] }
 0x558   : > { %v3066_v46 = vpop.permute.xlu1 %3065  ;;  %v3074_v16 = vpop.permute.xlu0 %3073  ;;  %3876 = vst.msk [vmem:[#allocation3 + $0x14] sm:$0xf] %vm506_vm0, %v3851_v8 }
 0x559   : > { %3480 = vrot.lane.b32.xlu2 %v3423_v49, %s4908_s9  ;;  %3125 = vst.msk [vmem:[#allocation3 + $0x80] sm:$0xf] %vm3108_vm10, %v3066_v46  ;;  %v7285_v49 = vrot.slane %v7243_v36, 2  ;;  %v7286_v46 = vld [vmem:[#allocation49_spill] sm:$0xff] }
 0x55a   : > { %2181 = vrot.lane.b32.xlu0 %v2123_v29, %s4905_s6  ;;  %3129 = vst.msk [vmem:[#allocation3 + $0xa0] sm:$0xf] %vm3108_vm10, %v3074_v16  ;;  %v2557_v42 = vpack.c.bf16 %v7286_v46, %v7286_v46  ;;  %v2991_v29 = vpack.c.bf16 %v7287_v20, %v7287_v20  ;;  %v3436_v16 = vpack.c.bf16 %v6336_v10, %v6336_v10 }
 0x55d   : > { %v3068_v17 = vpop.permute.xlu2 %3067 }
 0x55e   : > { %2211 = vrot.lane.b32.xlu1 %v2138_v59, %s4905_s6  ;;  %3126 = vst.msk [vmem:[#allocation3 + $0x88] sm:$0xf] %vm3108_vm10, %v3068_v17  ;;  %v3710_v50 = vld.sshfl [vmem:[#allocation1 + $0x20] sm:$0xff pattern:$0x73625140]  ;;  %v3424_v17 = vpack.c.bf16 %v7289_v48, %v7289_v48  ;;  %v7302_v48 = vrot.slane %v5733_v39, 4 }
 0x55f   : > { %v3850_v43 = vpack.c.bf16 %v3710_v50, %v3710_v50  ;;  %3717 = vst [vmem:[#allocation1 + $0x22] ss:$4 sm:$0xff] %v7243_v36  ;;  %v4800_v36 = vld [vmem:[%s7011_s1] sm:$0xff] }
 0x560   : > { %v3477_v9 = vpop.permute.xlu1 %3476  ;;  %3715 = vst [vmem:[#allocation1 + $0x20] ss:$4 sm:$0xff] %v3632_v35  ;;  %4157 = vmatpush.bf16.msra.mxu0 %v4800_v36  ;;  %4816 = vmatpush.bf16.msra.mxu2 %v4800_v36 }
 0x561   : > { %2642 = vrot.lane.b32.xlu2 %v2570_v45, %s4906_s7  ;;  %3547 = vst.msk [vmem:[#allocation3 + $0x28] sm:$0xf] %vm3541_vm11, %v3477_v9  ;;  %v7290_v9 = vrot.slane %v7247_v2, 2 }
 0x562   : > { %3502 = vrot.lane.b32.xlu0 %v3434_v32, %s4908_s9  ;;  %3875 = vst.msk [vmem:[#allocation3 + $0xc] sm:$0xf] %vm506_vm0, %v3850_v43  ;;  %v4778_v32 = vld [vmem:[#allocation3 + $0x14] sm:$0xf] }
 0x563   : > { %3716 = vst [vmem:[#allocation1 + $0x21] ss:$4 sm:$0xff] %v3633_v54  ;;  %v7292_v54 = vld [vmem:[#allocation17_spill] sm:$0xff] }
 0x564   : > { %3718 = vst [vmem:[#allocation1 + $0x23] ss:$4 sm:$0xff] %v7285_v49  ;;  %v3853_v43 = vpack.c.bf16 %v7292_v54, %v7292_v54 }
 0x566   : > { %3077 = vrot.lane.b32.xlu1 %v3005_v23, %s4907_s8  ;;  %v4607_v23 = vld [vmem:[#allocation2 + $0x62] sm:$0xff]  ;;  %3878 = vst.msk [vmem:[#allocation3 + $0x24] sm:$0xf] %vm506_vm0, %v3853_v43 }
 0x567   : > { %v3469_v57 = vpop.permute.xlu2 %3468  ;;  %v3645_v53 = vrot.slane %v4607_v23, 4  ;;  %v3646_v10 = vrot.slane %v4607_v23, 6 }
 0x568   : > { %v3467_v55 = vpop.permute.xlu1 %3466  ;;  %3543 = vst.msk [vmem:[#allocation3 + $0x8] sm:$0xf] %vm3541_vm11, %v3469_v57 }
 0x569   : > { %3079 = vrot.lane.b32.xlu2 %v3006_v41, %s4907_s8  ;;  %3542 = vst.msk [vmem:[#allocation3] sm:$0xf] %vm3541_vm11, %v3467_v55  ;;  %v4631_v26 = vld [vmem:[#allocation3 + $0x8] sm:$0xf0]  ;;  %v3644_v41 = vrot.slane %v4607_v23, 2 }
 0x56a   : > { %3512 = vrot.lane.b32.xlu0 %v3439_v19, %s4908_s9  ;;  %v4634_v24 = vor.u32 %v4776_v28, %v4631_v26  ;;  %v3007_v19 = vpack.c.bf16 %v7294_v44, %v7294_v44  ;;  %v7296_v28 = vld [vmem:[#allocation22_spill] sm:$0xff] }
 0x56b   : > { %v3720_v59 = vld.sshfl [vmem:[#allocation1 + $0x20] sm:$0xff pattern:$0x73625140]  ;;  %v3438_v8 = vpack.c.bf16 %v7296_v28, %v7296_v28 }
 0x56c   : > { %4759 = vmatmul.msk.bf16.vlgmr.msra.gmra.mxu1 %vm4110_vm12, %v4634_v24  ;;  %v3852_v45 = vpack.c.bf16 %v3720_v59, %v3720_v59  ;;  %3726 = vst [vmem:[#allocation1 + $0x21] ss:$4 sm:$0xff] %v7247_v2  ;;  %v7293_v2 = vld [vmem:[#allocation44_spill] sm:$0xff]  ;;  %v7309_v28 = vld [vmem:[#allocation42_spill] sm:$0xff] }
 0x56d   : > { %3725 = vst [vmem:[#allocation1 + $0x20] ss:$4 sm:$0xff] %v3638_v15  ;;  %v2572_v47 = vpack.c.bf16 %v7293_v2, %v7293_v2  ;;  %v4780_v24 = vld [vmem:[#allocation3 + $0x24] sm:$0xf] }
 0x56e   : > { %2183 = vrot.lane.b32.xlu1 %v2124_v3, %s4905_s6  ;;  %3877 = vst.msk [vmem:[#allocation3 + $0x1c] sm:$0xf] %vm506_vm0, %v3852_v45  ;;  %v2992_v3 = vpack.c.bf16 %v7295_v40, %v7295_v40  ;;  %v7300_v45 = vrot.slane %v5733_v39, 2 }
 0x56f   : > { %v3062_v5 = vpop.permute.xlu2 %3061  ;;  %v4777_v6 = vld [vmem:[#allocation3 + $0x4] sm:$0xf0]  ;;  %3727 = vst [vmem:[#allocation1 + $0x22] ss:$4 sm:$0xff] %v7290_v9 }
 0x570   : > { %3123 = vst.msk [vmem:[#allocation3 + $0x70] sm:$0xf] %vm3108_vm10, %v3062_v5  ;;  %v4629_v33 = vld [vmem:[#allocation3] sm:$0xf]  ;;  %v7298_v5 = vld [vmem:[#allocation24_spill] sm:$0xff] }
 0x571   : > { %2616 = vrot.lane.b32.xlu2 %v2557_v42, %s4906_s7  ;;  %v4630_v34 = vor.u32 %v4777_v6, %v4629_v33  ;;  %3728 = vst [vmem:[#allocation1 + $0x23] ss:$4 sm:$0xff] %v7291_v13  ;;  %v7297_v42 = vld [vmem:[#allocation33_spill] sm:$0xff]  ;;  %v2139_v33 = vpack.c.bf16 %v7298_v5, %v7298_v5 }
 0x572   : > { %3049 = vrot.lane.b32.xlu0 %v2991_v29, %s4907_s8  ;;  %v2126_v26 = vpack.c.bf16 %v7297_v42, %v7297_v42 }
 0x573   : > { %4158 = vmatmul.bf16.vlgmr.msra.gmra.mxu0 %v4630_v34  ;;  %v3855_v34 = vpack.c.bf16 %v6437_v61, %v6437_v61  ;;  %v7301_v61 = vld [vmem:[#allocation52_spill] sm:$0xff] }
 0x575   : > { %v4639_v35 = vld [vmem:[#allocation3 + $0x18] sm:$0xf0]  ;;  %3880 = vst.msk [vmem:[#allocation3 + $0x34] sm:$0xf] %vm506_vm0, %v3855_v34 }
 0x576   : > { %2614 = vrot.lane.b32.xlu1 %v2556_v1, %s4906_s7  ;;  %v4642_v50 = vor.u32 %v4778_v32, %v4639_v35  ;;  %v2125_v1 = vpack.c.bf16 %v7299_v21, %v7299_v21  ;;  %v7305_v35 = vld [vmem:[#allocation51_spill] sm:$0xff] }
 0x578   : > { %v3730_v57 = vld.sshfl [vmem:[#allocation1 + $0x20] sm:$0xff pattern:$0x73625140] }
 0x579   : > { %3482 = vrot.lane.b32.xlu2 %v3424_v17, %s4908_s9  ;;  %v3854_v55 = vpack.c.bf16 %v3730_v57, %v3730_v57  ;;  %3735 = vst [vmem:[#allocation1 + $0x20] ss:$4 sm:$0xff] %v4607_v23  ;;  %v7303_v17 = vld [vmem:[#allocation36_spill] sm:$0xff] }
 0x57a   : > { %3484 = vrot.lane.b32.xlu0 %v3425_v0, %s4908_s9  ;;  %3736 = vst [vmem:[#allocation1 + $0x21] ss:$4 sm:$0xff] %v3644_v41  ;;  %v2558_v9 = vpack.c.bf16 %v7303_v17, %v7303_v17  ;;  %v4779_v41 = vld [vmem:[#allocation3 + $0x14] sm:$0xf0] }
 0x57b   : > { %3879 = vst.msk [vmem:[#allocation3 + $0x2c] sm:$0xf] %vm506_vm0, %v3854_v55  ;;  %v3657_v55 = vrot.slane %v6471_v60, 2 }
 0x57c   : > { %4760 = vmatmul.msk.bf16.gmra.mxu1 %vm4110_vm12, %v4642_v50  ;;  %3737 = vst [vmem:[#allocation1 + $0x22] ss:$4 sm:$0xff] %v3645_v53  ;;  %v2559_v50 = vpack.c.bf16 %v7305_v35, %v7305_v35 }
 0x57d   : > { %3738 = vst [vmem:[#allocation1 + $0x23] ss:$4 sm:$0xff] %v3646_v10  ;;  %v7306_v10 = vld [vmem:[#allocation15_spill] sm:$0xff] }
 0x57e   : > { %3506 = vrot.lane.b32.xlu1 %v3436_v16, %s4908_s9  ;;  %v3497_v49 = vpop.permute.xlu2 %3496  ;;  %v7304_v16 = vrot.slane %v5733_v39, 6  ;;  %v3427_v39 = vpack.c.bf16 %v6549_v31, %v6549_v31  ;;  %v3440_v44 = vpack.c.bf16 %v7306_v10, %v7306_v10 }
 0x57f   : > { %3557 = vst.msk [vmem:[#allocation3 + $0x78] sm:$0xf] %vm3541_vm11, %v3497_v49  ;;  %v7308_v49 = vrot.slane %v5750_v4, 6 }
 0x581   : > { %2646 = vrot.lane.b32.xlu2 %v2572_v47, %s4906_s7  ;;  %v4782_v47 = vld [vmem:[#allocation3 + $0x34] sm:$0xf] }
 0x582   : > { %3081 = vrot.lane.b32.xlu0 %v3007_v19, %s4907_s8  ;;  %v4647_v36 = vld [vmem:[#allocation3 + $0x28] sm:$0xf0]  ;;  %v7307_v19 = vrot.slane %v5750_v4, 4  ;;  %v7310_v4 = vld [vmem:[#allocation13_spill] sm:$0xff] }
 0x583   : > { %v4650_v29 = vor.u32 %v4780_v24, %v4647_v36 }
 0x584   : > { %v3493_v46 = vpop.permute.xlu0 %3492  ;;  %v3740_v20 = vld.sshfl [vmem:[#allocation1 + $0x20] sm:$0xff pattern:$0x73625140] }
 0x585   : > { %3555 = vst.msk [vmem:[#allocation3 + $0x68] sm:$0xf] %vm3541_vm11, %v3493_v46  ;;  %v3856_v59 = vpack.c.bf16 %v3740_v20, %v3740_v20  ;;  %v4614_v46 = vld [vmem:[#allocation2 + $0x9a] sm:$0x3f] }
 0x586   : > { %3051 = vrot.lane.b32.xlu1 %v2992_v3, %s4907_s8  ;;  %v3491_v6 = vpop.permute.xlu2 %3490  ;;  %3748 = vst [vmem:[#allocation1 + $0x23] ss:$4 sm:$0xff] %v6446_v63  ;;  %v2993_v63 = vpack.c.bf16 %v7301_v61, %v7301_v61  ;;  %v3857_v3 = vpack.c.bf16 %v6457_v56, %v6457_v56  ;;  %v2994_v56 = vpack.c.bf16 %v7310_v4, %v7310_v4  ;;  %v3663_v20 = vrot.slane %v4614_v46, 4  ;;  %v4616_v61 = vld [vmem:[#allocation2 + $0xaa] sm:$0x3f] }
 0x587   : > { %3554 = vst.msk [vmem:[#allocation3 + $0x60] sm:$0xf] %vm3541_vm11, %v3491_v6  ;;  %v7311_v6 = vrot.slane %v7254_v62, 6  ;;  %v3667_v17 = vrot.slane %v4616_v61, 2  ;;  %v7314_v4 = vrot.slane %v6093_v18, 4 }
 0x588   : > { %3745 = vst [vmem:[#allocation1 + $0x20] ss:$4 sm:$0xff] %v7300_v45  ;;  %v3859_v45 = vpack.c.bf16 %v6475_v52, %v6475_v52 }
 0x589   : > { %3510 = vrot.lane.b32.xlu2 %v3438_v8, %s4908_s9  ;;  %3881 = vst.msk [vmem:[#allocation3 + $0x3c] sm:$0xf] %vm506_vm0, %v3856_v59  ;;  %v3426_v8 = vpack.c.bf16 %v7309_v28, %v7309_v28 }
 0x58a   : > { %2187 = vrot.lane.b32.xlu0 %v2126_v26, %s4905_s6  ;;  %3746 = vst [vmem:[#allocation1 + $0x21] ss:$4 sm:$0xff] %v7302_v48  ;;  %v4781_v26 = vld [vmem:[#allocation3 + $0x24] sm:$0xf0] }
 0x58b   : > { %3747 = vst [vmem:[#allocation1 + $0x22] ss:$4 sm:$0xff] %v7304_v16  ;;  %v3672_v16 = vrot.slane %v6516_v37, 2 }
 0x58c   : > { %v3471_v15 = vpop.permute.xlu0 %3470  ;;  %4761 = vmatmul.msk.bf16.gmra.mxu1 %vm4110_vm12, %v4650_v29  ;;  %v4789_v32 = vld [vmem:[#allocation3 + $0x64] sm:$0xf0]  ;;  %3882 = vst.msk [vmem:[#allocation3 + $0x44] sm:$0xf] %vm506_vm0, %v3857_v3 }
 0x58d   : > { %3544 = vst.msk [vmem:[#allocation3 + $0x10] sm:$0xf] %vm3541_vm11, %v3471_v15 }
 0x58e   : > { %2213 = vrot.lane.b32.xlu1 %v2139_v33, %s4905_s6  ;;  %v2178_v13 = vpop.permute.xlu2 %2177  ;;  %v4677_v0 = vld [vmem:[#allocation3 + $0x60] sm:$0xf]  ;;  %v3662_v33 = vrot.slane %v4614_v46, 2  ;;  %3884 = vst.msk [vmem:[#allocation3 + $0x54] sm:$0xf] %vm506_vm0, %v3859_v45 }
 0x58f   : > { %2247 = vst.msk [vmem:[#allocation3 + $0x30] sm:$0xf] %vm2240_vm7, %v2178_v13  ;;  %v4678_v23 = vor.u32 %v4789_v32, %v4677_v0  ;;  %v3668_v13 = vrot.slane %v4616_v61, 4 }
 0x590   : > { %v4655_v57 = vld [vmem:[#allocation3 + $0x38] sm:$0xf0] }
 0x591   : > { %2185 = vrot.lane.b32.xlu2 %v2125_v1, %s4905_s6  ;;  %4188 = vmatmul.bf16.vlgmr.msra.gmra.mxu2 %v4678_v23  ;;  %v4658_v40 = vor.u32 %v4782_v47, %v4655_v57  ;;  %v3867_v57 = vpack.c.bf16 %v6556_v25, %v6556_v25 }
 0x592   : > { %3053 = vrot.lane.b32.xlu0 %v2993_v63, %s4907_s8  ;;  %v3750_v53 = vld.sshfl [vmem:[#allocation1 + $0x20] sm:$0xff pattern:$0x73625140]  ;;  %v3865_v63 = vpack.c.bf16 %v6537_v14, %v6537_v14 }
 0x593   : > { %3757 = vst [vmem:[#allocation1 + $0x22] ss:$4 sm:$0xff] %v6471_v60  ;;  %v3858_v31 = vpack.c.bf16 %v3750_v53, %v3750_v53  ;;  %v4784_v59 = vld [vmem:[#allocation3 + $0x44] sm:$0xf] }
 0x594   : > { %v3475_v54 = vpop.permute.xlu0 %3474  ;;  %v4637_v43 = vld [vmem:[#allocation3 + $0x10] sm:$0xf]  ;;  %3755 = vst [vmem:[#allocation1 + $0x20] ss:$4 sm:$0xff] %v7307_v19 }
 0x595   : > { %3546 = vst.msk [vmem:[#allocation3 + $0x20] sm:$0xf] %vm3541_vm11, %v3475_v54  ;;  %v4638_v2 = vor.u32 %v4779_v41, %v4637_v43  ;;  %v4786_v23 = vld [vmem:[#allocation3 + $0x54] sm:$0xf]  ;;  %v3861_v41 = vpack.c.bf16 %v6491_v51, %v6491_v51 }
 0x596   : > { %2618 = vrot.lane.b32.xlu1 %v2558_v9, %s4906_s7  ;;  %3756 = vst [vmem:[#allocation1 + $0x21] ss:$4 sm:$0xff] %v7308_v49 }
 0x597   : > { %4163 = vmatmul.bf16.gmra.mxu0 %v4638_v2  ;;  %3758 = vst [vmem:[#allocation1 + $0x23] ss:$4 sm:$0xff] %v3657_v55  ;;  %v4791_v55 = vld [vmem:[#allocation3 + $0x74] sm:$0xf0] }
 0x598   : > { %3883 = vst.msk [vmem:[#allocation3 + $0x4c] sm:$0xf] %vm506_vm0, %v3858_v31 }
 0x599   : > { %2620 = vrot.lane.b32.xlu2 %v2559_v50, %s4906_s7  ;;  %3890 = vst.msk [vmem:[#allocation3 + $0x84] sm:$0xf] %vm506_vm0, %v3865_v63  ;;  %v3673_v50 = vrot.slane %v6516_v37, 4  ;;  %v7312_v37 = vrot.slane %v5840_v7, 2 }
 0x59a   : > { %3488 = vrot.lane.b32.xlu0 %v3427_v39, %s4908_s9  ;;  %3886 = vst.msk [vmem:[#allocation3 + $0x64] sm:$0xf] %vm506_vm0, %v3861_v41 }
 0x59b   : > { %3892 = vst.msk [vmem:[#allocation3 + $0x94] sm:$0xf] %vm506_vm0, %v3867_v57 }
 0x59c   : > { %v2180_v60 = vpop.permute.xlu0 %2179  ;;  %4762 = vmatmul.msk.bf16.gmra.mxu1 %vm4110_vm12, %v4658_v40  ;;  %v4645_v5 = vld [vmem:[#allocation3 + $0x20] sm:$0xf]  ;;  %v3678_v40 = vrot.slane %v6531_v12, 4 }
 0x59d   : > { %2248 = vst.msk [vmem:[#allocation3 + $0x38] sm:$0xf] %vm2240_vm7, %v2180_v60  ;;  %v4646_v34 = vor.u32 %v4781_v26, %v4645_v5  ;;  %v7313_v60 = vrot.slane %v6093_v18, 2 }
 0x59e   : > { %3514 = vrot.lane.b32.xlu1 %v3440_v44, %s4908_s9  ;;  %v3760_v24 = vld.sshfl [vmem:[#allocation1 + $0x20] sm:$0xff pattern:$0x73625140] }
 0x59f   : > { %3765 = vst [vmem:[#allocation1 + $0x20] ss:$4 sm:$0xff] %v7311_v6  ;;  %v4663_v21 = vld [vmem:[#allocation3 + $0x48] sm:$0xf0]  ;;  %v3860_v15 = vpack.c.bf16 %v3760_v24, %v3760_v24 }
 0x5a0   : > { %3766 = vst [vmem:[#allocation1 + $0x21] ss:$4 sm:$0xff] %v4614_v46  ;;  %v4666_v62 = vor.u32 %v4784_v59, %v4663_v21  ;;  %v4792_v46 = vld [vmem:[#allocation3 + $0x84] sm:$0xf] }
 0x5a1   : > { %3486 = vrot.lane.b32.xlu2 %v3426_v8, %s4908_s9  ;;  %3767 = vst [vmem:[#allocation1 + $0x22] ss:$4 sm:$0xff] %v3662_v33  ;;  %v4788_v3 = vld [vmem:[#allocation3 + $0x64] sm:$0xf]  ;;  %v3863_v8 = vpack.c.bf16 %v6510_v58, %v6510_v58 }
 0x5a2   : > { %3768 = vst [vmem:[#allocation1 + $0x23] ss:$4 sm:$0xff] %v3663_v20 }
 0x5a3   : > { %v3509_v42 = vpop.permute.xlu2 %3508  ;;  %3885 = vst.msk [vmem:[#allocation3 + $0x5c] sm:$0xf] %vm506_vm0, %v3860_v15 }
 0x5a4   : > { %3563 = vst.msk [vmem:[#allocation3 + $0xa8] sm:$0xf] %vm3541_vm11, %v3509_v42  ;;  %v2611_v29 = vpop.permute.xlu0 %2610 }
 0x5a5   : > { %v3501_v36 = vpop.permute.xlu1 %3500  ;;  %2680 = vst.msk [vmem:[#allocation3 + $0x30] sm:$0xf] %vm2673_vm9, %v2611_v29 }
 0x5a6   : > { %3055 = vrot.lane.b32.xlu1 %v2994_v56, %s4907_s8  ;;  %3559 = vst.msk [vmem:[#allocation3 + $0x88] sm:$0xf] %vm3541_vm11, %v3501_v36  ;;  %v4623_v36 = vld [vmem:[#allocation2 + $0xe2] sm:$0xff] }
 0x5a7   : > { %4168 = vmatmul.bf16.gmra.mxu0 %v4646_v34  ;;  %3888 = vst.msk [vmem:[#allocation3 + $0x74] sm:$0xf] %vm506_vm0, %v3863_v8  ;;  %v3684_v20 = vrot.slane %v4623_v36, 2  ;;  %v3686_v45 = vrot.slane %v4623_v36, 6 }
 0x5a9   : > { %v3770_v52 = vld.sshfl [vmem:[#allocation1 + $0x20] sm:$0xff pattern:$0x73625140] }
 0x5aa   : > { %3775 = vst [vmem:[#allocation1 + $0x20] ss:$4 sm:$0xff] %v4616_v61  ;;  %v4671_v35 = vld [vmem:[#allocation3 + $0x58] sm:$0xf0]  ;;  %v3862_v47 = vpack.c.bf16 %v3770_v52, %v3770_v52  ;;  %v4794_v52 = vld [vmem:[#allocation3 + $0x94] sm:$0xf] }
 0x5ab   : > { %v3046_v1 = vpop.permute.xlu2 %3045  ;;  %3776 = vst [vmem:[#allocation1 + $0x21] ss:$4 sm:$0xff] %v3667_v17 }
 0x5ac   : > { %3115 = vst.msk [vmem:[#allocation3 + $0x30] sm:$0xf] %vm3108_vm10, %v3046_v1  ;;  %v3048_v48 = vpop.permute.xlu0 %3047  ;;  %4763 = vmatmul.msk.bf16.gmra.mxu1 %vm4110_vm12, %v4666_v62 }
 0x5ad   : > { %3777 = vst [vmem:[#allocation1 + $0x22] ss:$4 sm:$0xff] %v3668_v13  ;;  %v4793_v62 = vld [vmem:[#allocation3 + $0x84] sm:$0xf0] }
 0x5ae   : > { %3778 = vst [vmem:[#allocation1 + $0x23] ss:$4 sm:$0xff] %v5823_v22  ;;  %v4674_v22 = vor.u32 %v4786_v23, %v4671_v35  ;;  %v4790_v61 = vld [vmem:[#allocation3 + $0x74] sm:$0xf]  ;;  %v3690_v23 = vrot.slane %v6577_v30, 4 }
 0x5af   : > { %3887 = vst.msk [vmem:[#allocation3 + $0x6c] sm:$0xf] %vm506_vm0, %v3862_v47 }
 0x5b0   : > { %v3505_v9 = vpop.permute.xlu1 %3504 }
 0x5b1   : > { %3561 = vst.msk [vmem:[#allocation3 + $0x98] sm:$0xf] %vm3541_vm11, %v3505_v9  ;;  %v3871_v9 = vpack.c.bf16 %v6590_v11, %v6590_v11 }
 0x5b3   : > { %v3481_v0 = vpop.permute.xlu2 %3480  ;;  %3896 = vst.msk [vmem:[#allocation3 + $0xb4] sm:$0xf] %vm506_vm0, %v3871_v9 }
 0x5b4   : > { %v2210_v14 = vpop.permute.xlu0 %2209 }
 0x5b5   : > { %2263 = vst.msk [vmem:[#allocation3 + $0xb0] sm:$0xf] %vm2240_vm7, %v2210_v14  ;;  %v3780_v43 = vld.sshfl [vmem:[#allocation1 + $0x20] sm:$0xff pattern:$0x73625140]  ;;  %v3689_v14 = vrot.slane %v6577_v30, 2 }
 0x5b6   : > { %3785 = vst [vmem:[#allocation1 + $0x20] ss:$4 sm:$0xff] %v3672_v16  ;;  %v4679_v31 = vld [vmem:[#allocation3 + $0x68] sm:$0xf0]  ;;  %v3864_v24 = vpack.c.bf16 %v3780_v43, %v3780_v43 }
 0x5b7   : > { %3786 = vst [vmem:[#allocation1 + $0x21] ss:$4 sm:$0xff] %v3673_v50  ;;  %v4682_v28 = vor.u32 %v4788_v3, %v4679_v31  ;;  %v3691_v50 = vrot.slane %v6577_v30, 6  ;;  %v4797_v31 = vld [vmem:[#allocation3 + $0xa4] sm:$0xf0] }
 0x5b8   : > { %v2613_v32 = vpop.permute.xlu1 %2612  ;;  %3787 = vst [vmem:[#allocation1 + $0x22] ss:$4 sm:$0xff] %v5840_v7 }
 0x5b9   : > { %2681 = vst.msk [vmem:[#allocation3 + $0x38] sm:$0xf] %vm2673_vm9, %v2613_v32 }
 0x5ba   : > { %3116 = vst.msk [vmem:[#allocation3 + $0x38] sm:$0xf] %vm3108_vm10, %v3048_v48 }
 0x5bb   : > { %3549 = vst.msk [vmem:[#allocation3 + $0x38] sm:$0xf] %vm3541_vm11, %v3481_v0  ;;  %v2643_v54 = vpop.permute.xlu2 %2642 }
 0x5bc   : > { %2696 = vst.msk [vmem:[#allocation3 + $0xb0] sm:$0xf] %vm2673_vm9, %v2643_v54  ;;  %v2645_v2 = vpop.permute.xlu0 %2644  ;;  %4764 = vmatmul.msk.bf16.gmra.mxu1 %vm4110_vm12, %v4674_v22 }
 0x5bd   : > { %3788 = vst [vmem:[#allocation1 + $0x23] ss:$4 sm:$0xff] %v7312_v37 }
 0x5be   : > { %3889 = vst.msk [vmem:[#allocation3 + $0x7c] sm:$0xf] %vm506_vm0, %v3864_v24 }
 0x5c0   : > { %v3495_v39 = vpop.permute.xlu1 %3494 }
 0x5c1   : > { %3556 = vst.msk [vmem:[#allocation3 + $0x70] sm:$0xf] %vm3541_vm11, %v3495_v39 }
 0x5c2   : > { %v4783_v12 = vld [vmem:[#allocation3 + $0x34] sm:$0xf0] }
 0x5c3   : > { %v3080_v53 = vpop.permute.xlu2 %3079 }
 0x5c4   : > { %v3499_v51 = vpop.permute.xlu0 %3498  ;;  %v3790_v10 = vld.sshfl [vmem:[#allocation1 + $0x20] sm:$0xff pattern:$0x73625140] }
 0x5c5   : > { %3558 = vst.msk [vmem:[#allocation3 + $0x80] sm:$0xf] %vm3541_vm11, %v3499_v51  ;;  %v3866_v19 = vpack.c.bf16 %v3790_v10, %v3790_v10  ;;  %v4687_v48 = vld [vmem:[#allocation3 + $0x78] sm:$0xf0] }
 0x5c6   : > { %3796 = vst [vmem:[#allocation1 + $0x21] ss:$4 sm:$0xff] %v6093_v18  ;;  %v3869_v18 = vpack.c.bf16 %v6572_v38, %v6572_v38  ;;  %v3685_v38 = vrot.slane %v4623_v36, 4  ;;  %v4690_v17 = vor.u32 %v4790_v61, %v4687_v48 }
 0x5c7   : > { %3891 = vst.msk [vmem:[#allocation3 + $0x8c] sm:$0xf] %vm506_vm0, %v3866_v19 }
 0x5c8   : > { %v3479_v44 = vpop.permute.xlu1 %3478  ;;  %v4685_v7 = vld [vmem:[#allocation3 + $0x70] sm:$0xf]  ;;  %3795 = vst [vmem:[#allocation1 + $0x20] ss:$4 sm:$0xff] %v3678_v40 }
 0x5c9   : > { %3548 = vst.msk [vmem:[#allocation3 + $0x30] sm:$0xf] %vm3541_vm11, %v3479_v44  ;;  %v4686_v25 = vor.u32 %v4791_v55, %v4685_v7 }
 0x5ca   : > { %3797 = vst [vmem:[#allocation1 + $0x22] ss:$4 sm:$0xff] %v7313_v60  ;;  %v4798_v60 = vld [vmem:[#allocation3 + $0xb4] sm:$0xf] }
 0x5cb   : > { %4193 = vmatmul.bf16.gmra.mxu2 %v4686_v25  ;;  %v2617_v49 = vpop.permute.xlu2 %2616  ;;  %3798 = vst [vmem:[#allocation1 + $0x23] ss:$4 sm:$0xff] %v7314_v4 }
 0x5cc   : > { %v2182_v56 = vpop.permute.xlu0 %2181  ;;  %4765 = vmatmul.msk.bf16.gmra.mxu1 %vm4110_vm12, %v4682_v28  ;;  %3894 = vst.msk [vmem:[#allocation3 + $0xa4] sm:$0xf] %vm506_vm0, %v3869_v18  ;;  %v4693_v34 = vld [vmem:[#allocation3 + $0x80] sm:$0xf] }
 0x5cd   : > { %2249 = vst.msk [vmem:[#allocation3 + $0x40] sm:$0xf] %vm2240_vm7, %v2182_v56  ;;  %v4694_v15 = vor.u32 %v4793_v62, %v4693_v34 }
 0x5ce   : > { %v4695_v5 = vld [vmem:[#allocation3 + $0x88] sm:$0xf0] }
 0x5cf   : > { %v4698_v33 = vor.u32 %v4792_v46, %v4695_v5 }
 0x5d0   : > { %v2212_v42 = vpop.permute.xlu1 %2211  ;;  %v4653_v26 = vld [vmem:[#allocation3 + $0x30] sm:$0xf] }
 0x5d1   : > { %2264 = vst.msk [vmem:[#allocation3 + $0xb8] sm:$0xf] %vm2240_vm7, %v2212_v42  ;;  %v4654_v58 = vor.u32 %v4783_v12, %v4653_v26  ;;  %4767 = vmatmul.msk.bf16.vlgmr.msra.gmra.mxu3 %vm4110_vm12, %v4698_v33 }
 0x5d2   : > { %2697 = vst.msk [vmem:[#allocation3 + $0xb8] sm:$0xf] %vm2673_vm9, %v2645_v2  ;;  %v3800_v29 = vld.sshfl [vmem:[#allocation1 + $0x20] sm:$0xff pattern:$0x73625140] }
 0x5d3   : > { %3132 = vst.msk [vmem:[#allocation3 + $0xb8] sm:$0xf] %vm3108_vm10, %v3080_v53  ;;  %4173 = vmatmul.bf16.gmra.mxu0 %v4654_v58  ;;  %v3483_v6 = vpop.permute.xlu2 %3482  ;;  %v3868_v59 = vpack.c.bf16 %v3800_v29, %v3800_v29  ;;  %v4795_v2 = vld [vmem:[#allocation3 + $0x94] sm:$0xf0]  ;;  %v4796_v39 = vld [vmem:[#allocation3 + $0xa4] sm:$0xf] }
 0x5d4   : > { %3805 = vst [vmem:[#allocation1 + $0x20] ss:$4 sm:$0xff] %v4623_v36  ;;  %v3503_v21 = vpop.permute.xlu0 %3502 }
 0x5d5   : > { %3806 = vst [vmem:[#allocation1 + $0x21] ss:$4 sm:$0xff] %v3684_v20 }
 0x5d6   : > { %3560 = vst.msk [vmem:[#allocation3 + $0x90] sm:$0xf] %vm3541_vm11, %v3503_v21 }
 0x5d7   : > { %3893 = vst.msk [vmem:[#allocation3 + $0x9c] sm:$0xf] %vm506_vm0, %v3868_v59 }
 0x5d8   : > { %v3078_v1 = vpop.permute.xlu1 %3077  ;;  %3807 = vst [vmem:[#allocation1 + $0x22] ss:$4 sm:$0xff] %v3685_v38 }
 0x5d9   : > { %3131 = vst.msk [vmem:[#allocation3 + $0xb0] sm:$0xf] %vm3108_vm10, %v3078_v1 }
 0x5da   : > { %3808 = vst [vmem:[#allocation1 + $0x23] ss:$4 sm:$0xff] %v3686_v45 }
 0x5db   : > { %4198 = vmatmul.bf16.gmra.mxu2 %v4694_v15  ;;  %v6911_v63 = vpop.permute.xlu2 %2646 }
 0x5dc   : > { %v3513_v13 = vpop.permute.xlu0 %3512  ;;  %4766 = vmatmul.msk.bf16.gmra.mxu1 %vm4110_vm12, %v4690_v17 }
 0x5dd   : > { %3565 = vst.msk [vmem:[#allocation3 + $0xb8] sm:$0xf] %vm3541_vm11, %v3513_v13  ;;  %v4701_v22 = vld [vmem:[#allocation3 + $0x90] sm:$0xf] }
 0x5de   : > { %v4703_v32 = vld [vmem:[#allocation3 + $0x98] sm:$0xf0]  ;;  %v4702_v47 = vor.u32 %v4795_v2, %v4701_v22 }
 0x5df   : > { %v4706_v16 = vor.u32 %v4794_v52, %v4703_v32 }
 0x5e0   : > { %v2184_v0 = vpop.permute.xlu1 %2183 }
 0x5e1   : > { %2250 = vst.msk [vmem:[#allocation3 + $0x48] sm:$0xf] %vm2240_vm7, %v2184_v0  ;;  %v3810_v35 = vld.sshfl [vmem:[#allocation1 + $0x20] sm:$0xff pattern:$0x73625140]  ;;  %4768 = vmatmul.msk.bf16.gmra.mxu3 %vm4110_vm12, %v4706_v16 }
 0x5e2   : > { %2683 = vst.msk [vmem:[#allocation3 + $0x48] sm:$0xf] %vm2673_vm9, %v2617_v49  ;;  %v3870_v54 = vpack.c.bf16 %v3810_v35, %v3810_v35 }
 0x5e3   : > { %v3511_v11 = vpop.permute.xlu2 %3510  ;;  %3815 = vst [vmem:[#allocation1 + $0x20] ss:$4 sm:$0xff] %v3689_v14 }
 0x5e4   : > { %3564 = vst.msk [vmem:[#allocation3 + $0xb0] sm:$0xf] %vm3541_vm11, %v3511_v11  ;;  %v3050_v43 = vpop.permute.xlu0 %3049  ;;  %v4799_v20 = vld [vmem:[#allocation3 + $0xb4] sm:$0xf0] }
 0x5e5   : > { %3895 = vst.msk [vmem:[#allocation3 + $0xac] sm:$0xf] %vm506_vm0, %v3870_v54 }
 0x5e6   : > { %3816 = vst [vmem:[#allocation1 + $0x21] ss:$4 sm:$0xff] %v3690_v23 }
 0x5e7   : > { %3817 = vst [vmem:[#allocation1 + $0x22] ss:$4 sm:$0xff] %v3691_v50 }
 0x5e8   : > { %v2615_v41 = vpop.permute.xlu1 %2614  ;;  %3818 = vst [vmem:[#allocation1 + $0x23] ss:$4 sm:$0xff] %v6581_v27 }
 0x5e9   : > { %2682 = vst.msk [vmem:[#allocation3 + $0x40] sm:$0xf] %vm2673_vm9, %v2615_v41  ;;  %v4232_v57 = vpop.f32.mrf.mxu1 }
 0x5ea   : > { %3117 = vst.msk [vmem:[#allocation3 + $0x40] sm:$0xf] %vm3108_vm10, %v3050_v43 }
 0x5eb   : > { %4203 = vmatmul.bf16.gmra.mxu2 %v4702_v47  ;;  %3550 = vst.msk [vmem:[#allocation3 + $0x40] sm:$0xf] %vm3541_vm11, %v3483_v6  ;;  %v2186_v30 = vpop.permute.xlu2 %2185  ;;  %v4717_v18 = vld [vmem:[#allocation3 + $0xb0] sm:$0xf] }
 0x5ec   : > { %v4711_v37 = vld [vmem:[#allocation3 + $0xa8] sm:$0xf0]  ;;  %2251 = vst.msk [vmem:[#allocation3 + $0x50] sm:$0xf] %vm2240_vm7, %v2186_v30  ;;  %v3485_v53 = vpop.permute.xlu0 %3484  ;;  %v4718_v34 = vor.u32 %v4799_v20, %v4717_v18 }
 0x5ed   : > { %v4714_v55 = vor.u32 %v4796_v39, %v4711_v37 }
 0x5ef   : > { %v3820_v7 = vld.sshfl [vmem:[#allocation1 + $0x20] sm:$0xff pattern:$0x73625140] }
 0x5f0   : > { %v3507_v51 = vpop.permute.xlu1 %3506  ;;  %v4159_v10 = vpop.f32.mrf.mxu0  ;;  %v3872_v27 = vpack.c.bf16 %v3820_v7, %v3820_v7 }
 0x5f1   : > { %3562 = vst.msk [vmem:[#allocation3 + $0xa0] sm:$0xf] %vm3541_vm11, %v3507_v51  ;;  %v4233_v44 = vadd.f32 %v4232_v57, %v4159_v10  ;;  %4769 = vmatmul.msk.bf16.gmra.mxu3 %vm4110_vm12, %v4714_v55  ;;  %v4234_v19 = vpop.f32.mrf.mxu1 }
 0x5f2   : > { %3897 = vst.msk [vmem:[#allocation3 + $0xbc] sm:$0xf] %vm506_vm0, %v3872_v27  ;;  %vm3133_vm0 = vcmask 911104   ;;  %v4661_v24 = vld [vmem:[#allocation3 + $0x40] sm:$0xf] }
 0x5f3   : > { %4297 = vst.msk [vmem:[%s4948_s23] sm:$0xff] %vm4296_vm13, %v4233_v44  ;;  %v2621_v56 = vpop.permute.xlu2 %2620 }
 0x5f4   : > { %v3082_v40 = vpop.permute.xlu0 %3081 }
 0x5f8   : > { %v3052_v25 = vpop.permute.xlu1 %3051  ;;  %v4709_v3 = vld [vmem:[#allocation3 + $0xa0] sm:$0xf]  ;;  %v4161_v49 = vpop.f32.mrf.mxu0 }
 0x5f9   : > { %3118 = vst.msk [vmem:[#allocation3 + $0x48] sm:$0xf] %vm3108_vm10, %v3052_v25  ;;  %v4710_v28 = vor.u32 %v4797_v31, %v4709_v3  ;;  %v4235_v8 = vadd.f32 %v4234_v19, %v4161_v49  ;;  %v4719_v12 = vld [vmem:[#allocation3 + $0xb8] sm:$0xf0]  ;;  %v4237_v4 = vpop.f32.mrf.mxu1 }
 0x5fa   : > { %3551 = vst.msk [vmem:[#allocation3 + $0x48] sm:$0xf] %vm3541_vm11, %v3485_v53  ;;  %v4722_v26 = vor.u32 %v4798_v60, %v4719_v12 }
 0x5fb   : > { %4208 = vmatmul.bf16.gmra.mxu2 %v4710_v28  ;;  %4298 = vst.msk [vmem:[%s4948_s23 + $0x8] sm:$0xff] %vm4296_vm13, %v4235_v8  ;;  %v3487_v29 = vpop.permute.xlu2 %3486 }
 0x5fc   : > { %v2188_v46 = vpop.permute.xlu0 %2187 }
 0x5fd   : > { %2252 = vst.msk [vmem:[#allocation3 + $0x58] sm:$0xf] %vm2240_vm7, %v2188_v46 }
 0x5fe   : > { %2685 = vst.msk [vmem:[#allocation3 + $0x58] sm:$0xf] %vm2673_vm9, %v2621_v56 }
 0x600   : > { %v2214_v42 = vpop.permute.xlu1 %2213 }
 0x601   : > { %2266 = vst.msk [vmem:[#allocation3 + $0xc0] sm:$0x3] %vm2265_vm14, %v2214_v42  ;;  %v4785_v36 = vld [vmem:[#allocation3 + $0x44] sm:$0xf0]  ;;  %4770 = vmatmul.msk.bf16.gmra.mxu3 %vm4110_vm12, %v4722_v26  ;;  %v4239_v5 = vpop.f32.mrf.mxu1 }
 0x602   : > { %2699 = vst.msk [vmem:[#allocation3 + $0xc0] sm:$0x3] %vm2698_vm15, %v6911_v63  ;;  %v4662_v58 = vor.u32 %v4785_v36, %v4661_v24 }
 0x603   : > { %3134 = vst.msk [vmem:[#allocation3 + $0xc0] sm:$0x3] %vm3133_vm0, %v3082_v40 }
 0x604   : > { %4178 = vmatmul.bf16.gmra.mxu0 %v4662_v58  ;;  %v3054_v33 = vpop.permute.xlu0 %3053 }
 0x608   : > { %v2619_v6 = vpop.permute.xlu1 %2618 }
 0x609   : > { %2684 = vst.msk [vmem:[#allocation3 + $0x50] sm:$0xf] %vm2673_vm9, %v2619_v6  ;;  %v4242_v59 = vpop.f32.mrf.mxu1 }
 0x60a   : > { %3119 = vst.msk [vmem:[#allocation3 + $0x50] sm:$0xf] %vm3108_vm10, %v3054_v33 }
 0x60b   : > { %4213 = vmatmul.bf16.gmra.mxu2 %v4718_v34  ;;  %3552 = vst.msk [vmem:[#allocation3 + $0x50] sm:$0xf] %vm3541_vm11, %v3487_v29 }
 0x60c   : > { %v3489_v1 = vpop.permute.xlu0 %3488 }
 0x610   : > { %v3515_v21 = vpop.permute.xlu1 %3514 }
 0x611   : > { %3567 = vst.msk [vmem:[#allocation3 + $0xc0] sm:$0x3] %vm3566_vm1, %v3515_v21  ;;  %v4244_v38 = vpop.f32.mrf.mxu1 }
 0x612   : > { %v4669_v52 = vld [vmem:[#allocation3 + $0x50] sm:$0xf] }
 0x614   : > { %v4164_v62 = vpop.f32.mrf.mxu0  ;;  %v4189_v41 = vpop.f32.mrf.mxu2 }
 0x615   : > { %v4238_v61 = vadd.f32 %v4237_v4, %v4164_v62 }
 0x617   : > { %4299 = vst.msk [vmem:[%s4948_s23 + $0x10] sm:$0xff] %vm4296_vm13, %v4238_v61 }
 0x618   : > { %v3056_v45 = vpop.permute.xlu1 %3055  ;;  %v3923_v15 = vld [vmem:[#allocation3 + $0xc0] sm:$0x33] }
 0x619   : > { %3120 = vst.msk [vmem:[#allocation3 + $0x58] sm:$0xf] %vm3108_vm10, %v3056_v45  ;;  %v4015_v63 = vunpack.c.l.b16 %v3923_v15  ;;  %v4016_v48 = vunpack.c.h.b16 %v3923_v15  ;;  %v4247_v13 = vpop.f32.mrf.mxu1 }
 0x61a   : > { %3553 = vst.msk [vmem:[#allocation3 + $0x58] sm:$0xf] %vm3541_vm11, %v3489_v1 }
 0x61b   : > { %v4041_v17 = vpack.c.b16 %v4015_v63, %v4015_v63  ;;  %v4042_v9 = vpack.c.b16 %v4016_v48, %v4016_v48 }
 0x61c   : > { %v4166_v0 = vpop.f32.mrf.mxu0  ;;  %v4191_v30 = vpop.f32.mrf.mxu2 }
 0x61d   : > { %4218 = vmatmul.bf16.gmra.mxu2 %v4041_v17  ;;  %4771 = vmatmul.msk.bf16.gmra.mxu3 %vm4110_vm12, %v4042_v9  ;;  %v4240_v14 = vadd.f32 %v4239_v5, %v4166_v0 }
 0x61f   : > { %4300 = vst.msk [vmem:[%s4948_s23 + $0x18] sm:$0xff] %vm4296_vm13, %v4240_v14 }
 0x621   : > { %v4787_v32 = vld [vmem:[#allocation3 + $0x54] sm:$0xf0]  ;;  %v4249_v23 = vpop.f32.mrf.mxu1 }
 0x622   : > { %v4670_v16 = vor.u32 %v4787_v32, %v4669_v52 }
 0x624   : > { %4183 = vmatmul.bf16.gmra.mxu0 %v4670_v16  ;;  %v4169_v11 = vpop.f32.mrf.mxu0 }
 0x625   : > { %v4243_v35 = vadd.f32 %v4242_v59, %v4169_v11 }
 0x627   : > { %4301 = vst.msk [vmem:[%s4948_s23 + $0x20] sm:$0xff] %vm4296_vm13, %v4243_v35 }
 0x629   : > { %v4252_v50 = vpop.f32.mrf.mxu1 }
 0x62c   : > { %v4171_v54 = vpop.f32.mrf.mxu0 }
 0x62d   : > { %v4245_v22 = vadd.f32 %v4244_v38, %v4171_v54 }
 0x62f   : > { %4302 = vst.msk [vmem:[%s4948_s23 + $0x28] sm:$0xff] %vm4296_vm13, %v4245_v22 }
 0x631   : > { %v4254_v43 = vpop.f32.mrf.mxu1 }
 0x639   : > { %v6958_v2 = vpop.f32.mrf.mxu1 }
 0x641   : > { %v6960_v47 = vpop.f32.mrf.mxu1 }
 0x649   : > { %v4262_v39 = vpop.f32.mrf.mxu1 }
 0x64a   : > { %v4263_v57 = vadd.f32 %v4262_v39, %v4189_v41 }
 0x64c   : > { %4309 = vst.msk [vmem:[%s4948_s23 + $0x60] sm:$0xff] %vm4296_vm13, %v4263_v57 }
 0x64e   : > { %v4194_v37 = vpop.f32.mrf.mxu2 }
 0x650   : > { %v4174_v53 = vpop.f32.mrf.mxu0 }
 0x651   : > { %v4248_v51 = vadd.f32 %v4247_v13, %v4174_v53  ;;  %v4264_v55 = vpop.f32.mrf.mxu1 }
 0x652   : > { %v4265_v44 = vadd.f32 %v4264_v55, %v4191_v30 }
 0x653   : > { %4303 = vst.msk [vmem:[%s4948_s23 + $0x30] sm:$0xff] %vm4296_vm13, %v4248_v51 }
 0x654   : > { %v4272_v7 = vpop.f32.mrf.mxu3  ;;  %4310 = vst.msk [vmem:[%s4948_s23 + $0x68] sm:$0xff] %vm4296_vm13, %v4265_v44 }
 0x656   : > { %v4196_v10 = vpop.f32.mrf.mxu2 }
 0x658   : > { %v4176_v27 = vpop.f32.mrf.mxu0 }
 0x659   : > { %v4250_v19 = vadd.f32 %v4249_v23, %v4176_v27  ;;  %v4267_v40 = vpop.f32.mrf.mxu1 }
 0x65a   : > { %v4268_v3 = vadd.f32 %v4267_v40, %v4194_v37 }
 0x65b   : > { %4304 = vst.msk [vmem:[%s4948_s23 + $0x38] sm:$0xff] %vm4296_vm13, %v4250_v19 }
 0x65c   : > { %v4274_v49 = vpop.f32.mrf.mxu3  ;;  %4311 = vst.msk [vmem:[%s4948_s23 + $0x70] sm:$0xff] %vm4296_vm13, %v4268_v3 }
 0x65e   : > { %v4199_v25 = vpop.f32.mrf.mxu2 }
 0x65f   : > { %v4273_v31 = vadd.f32 %v4272_v7, %v4199_v25 }
 0x661   : > { %4313 = vst.msk [vmem:[%s4948_s23 + $0x80] sm:$0xff] %vm4296_vm13, %v4273_v31  ;;  %v4269_v28 = vpop.f32.mrf.mxu1 }
 0x662   : > { %v4270_v60 = vadd.f32 %v4269_v28, %v4196_v10 }
 0x664   : > { %v4277_v4 = vpop.f32.mrf.mxu3  ;;  %4312 = vst.msk [vmem:[%s4948_s23 + $0x78] sm:$0xff] %vm4296_vm13, %v4270_v60 }
 0x666   : > { %v4201_v8 = vpop.f32.mrf.mxu2 }
 0x667   : > { %v4275_v12 = vadd.f32 %v4274_v49, %v4201_v8 }
 0x669   : > { %4314 = vst.msk [vmem:[%s4948_s23 + $0x88] sm:$0xff] %vm4296_vm13, %v4275_v12 }
 0x66c   : > { %v4279_v42 = vpop.f32.mrf.mxu3 }
 0x66e   : > { %v4204_v56 = vpop.f32.mrf.mxu2 }
 0x66f   : > { %v4278_v46 = vadd.f32 %v4277_v4, %v4204_v56 }
 0x671   : > { %4315 = vst.msk [vmem:[%s4948_s23 + $0x90] sm:$0xff] %vm4296_vm13, %v4278_v46 }
 0x674   : > { %v4282_v36 = vpop.f32.mrf.mxu3 }
 0x676   : > { %v4206_v26 = vpop.f32.mrf.mxu2 }
 0x677   : > { %v4280_v24 = vadd.f32 %v4279_v42, %v4206_v26 }
 0x679   : > { %4316 = vst.msk [vmem:[%s4948_s23 + $0x98] sm:$0xff] %vm4296_vm13, %v4280_v24 }
 0x67c   : > { %v4284_v6 = vpop.f32.mrf.mxu3 }
 0x67e   : > { %v4209_v58 = vpop.f32.mrf.mxu2 }
 0x67f   : > { %v4283_v5 = vadd.f32 %v4282_v36, %v4209_v58 }
 0x681   : > { %4317 = vst.msk [vmem:[%s4948_s23 + $0xa0] sm:$0xff] %vm4296_vm13, %v4283_v5  ;;  %v4179_v18 = vpop.f32.mrf.mxu0 }
 0x682   : > { %v4253_v33 = vadd.f32 %v4252_v50, %v4179_v18 }
 0x684   : > { %4305 = vst.msk [vmem:[%s4948_s23 + $0x40] sm:$0xff] %vm4296_vm13, %v4253_v33  ;;  %v4287_v21 = vpop.f32.mrf.mxu3 }
 0x686   : > { %v4211_v20 = vpop.f32.mrf.mxu2 }
 0x687   : > { %v4285_v29 = vadd.f32 %v4284_v6, %v4211_v20 }
 0x689   : > { %4318 = vst.msk [vmem:[%s4948_s23 + $0xa8] sm:$0xff] %vm4296_vm13, %v4285_v29  ;;  %v4181_v34 = vpop.f32.mrf.mxu0 }
 0x68a   : > { %v4255_v59 = vadd.f32 %v4254_v43, %v4181_v34 }
 0x68c   : > { %4306 = vst.msk [vmem:[%s4948_s23 + $0x48] sm:$0xff] %vm4296_vm13, %v4255_v59  ;;  %v4289_v62 = vpop.f32.mrf.mxu3 }
 0x68e   : > { %v4214_v38 = vpop.f32.mrf.mxu2 }
 0x68f   : > { %v4288_v1 = vadd.f32 %v4287_v21, %v4214_v38 }
 0x691   : > { %4319 = vst.msk [vmem:[%s4948_s23 + $0xb0] sm:$0xff] %vm4296_vm13, %v4288_v1 }
 0x696   : > { %v4216_v45 = vpop.f32.mrf.mxu2 }
 0x697   : > { %v4290_v15 = vadd.f32 %v4289_v62, %v4216_v45 }
 0x699   : > { %4320 = vst.msk [vmem:[%s4948_s23 + $0xb8] sm:$0xff] %vm4296_vm13, %v4290_v15 }
 0x6a0   : > { %v4219_v61 = vpop.f32.mrf.mxu2  ;;  %v4292_v63 = vpop.f32.mrf.mxu3 }
 0x6a1   : > { %v4293_v48 = vadd.f32 %v4292_v63, %v4219_v61  ;;  %v4184_v17 = vpop.f32.mrf.mxu0 }
 0x6a2   : > { %v4258_v9 = vadd.f32 %v6958_v2, %v4184_v17 }
 0x6a3   : > { %4322 = vst.msk [vmem:[%s4948_s23 + $0xc0] sm:$0xf] %vm4321_vm2, %v4293_v48 }
 0x6a4   : > { %4307 = vst.msk [vmem:[%s4948_s23 + $0x50] sm:$0xff] %vm4296_vm13, %v4258_v9 }
 0x6a8   : > { %v4221_v13 = vpop.f32.mrf.mxu2  ;;  %v4294_v52 = vpop.f32.mrf.mxu3 }
 0x6a9   : > { %v4186_v0 = vpop.f32.mrf.mxu0 }
 0x6aa   : > { %v4260_v14 = vadd.f32 %v6960_v47, %v4186_v0 }
 0x6ac   : > { %4308 = vst.msk [vmem:[%s4948_s23 + $0x58] sm:$0xff] %vm4296_vm13, %v4260_v14 }
 0x6ad PF: > { %s12_s11 = sadd.s32 1, %s4899_s11   ;;  %s7315_s9 = smov %s4895_s10 }
 0x6ae   : > { %p9_p10 = scmp.ge.s32.totalorder %s12_s11, 4   ;;  %s7316_s10 = smov %s7318_s12 }
 0x6b0   :  { %11 = sbr.rel (!%p9_p10) target bundleno = 2 (0x2), region = 141 }
 0x6b5   :  { %4360 = vsyncmov [#allocation4] }
 0x6b8   :  { %s4361_s4 = vpop.sfrf %4360 }
 0x6b9   :  { %p4774_p11 = scmp.ne.s32.totalorder %s4361_s4, 0 }
 0x6bb   :  { %4365 = shalt.err (%p4774_p11)  }
 0x6bc   :  { %4367 = vsyncmov [#allocation4 + $0x1] }
 0x6bf   :  { %s4368_s5 = vpop.sfrf %4367 }
 0x6c0   :  { %p4775_p12 = scmp.ne.s32.totalorder %s4368_s5, 0 }
 0x6c2   :  { %4372 = shalt.err (%p4775_p12)  }

</bundles_post_ra>
